<compile_context>
chip_gen: v7x
topology: tpu7x:2x2x1
jax: 0.10.0
libtpu: 0.0.40
codegen_flags: <defaults>
</compile_context>

<pallas_src>
import functools

import numpy as np
import jax
import jax.numpy as jnp
from jax import lax
from jax.experimental import pallas as pl
from jax.experimental.pallas import tpu as pltpu


# ----------------------------------------------------------------------------
# Pallas kernel: one full IR_Block for one batch element, everything in VMEM.
# ----------------------------------------------------------------------------
def _ir_block_kernel(x_ref, mk_ref,
                     wa1_ref, ba1_ref, wa2_ref, ba2_ref,
                     wb1_ref, bb1_ref, wb2_ref, bb2_ref, wb3_ref, bb3_ref,
                     o_ref, *, D, H, W):
    R = D * H * W
    x = x_ref[0]                        # (C, R) f32, R on the lane axis
    mk = mk_ref[...]                    # (27, R) 0/1 boundary masks
    C = x.shape[0]
    C2 = C // 2

    def shift_lanes(a, s):
        # result[:, p] = a[:, (p + s) % R], static s (wrap is masked out later)
        if s == 0:
            return a
        return jnp.concatenate([a[:, s:], a[:, :s]], axis=1)

    def conv1x1_relu(inp, w_ref_, b_ref_):
        # relu((Cout, Cin) @ (Cin, R) + b) — lane-dense output.
        y = jnp.dot(w_ref_[...], inp, preferred_element_type=jnp.float32)
        return jnp.maximum(y + b_ref_[...], 0.0)

    def conv3x3x3_relu(inp, w_ref_, b_ref_):
        # 3x3x3 "same" conv: one stacked matmul over all 27 taps
        # (27*Cout, Cin) @ (Cin, R), then shift-and-mask accumulation.
        cout = b_ref_.shape[0]
        z = jnp.dot(w_ref_[...], inp, preferred_element_type=jnp.float32)
        acc = jnp.zeros((cout, R), jnp.float32)
        t = 0
        for kd in (-1, 0, 1):
            for kh in (-1, 0, 1):
                for kw in (-1, 0, 1):
                    off = kd * H * W + kh * W + kw
                    zt = z[t * cout:(t + 1) * cout, :]
                    zt = shift_lanes(zt, off % R)
                    if (kd, kh, kw) != (0, 0, 0):
                        zt = zt * mk[t:t + 1, :]     # zero the padding taps
                    acc = acc + zt
                    t += 1
        return jnp.maximum(acc + b_ref_[...], 0.0)

    # Branch 1: conv_a1 (3^3) -> ReLU -> conv_a2 (3^3) -> ReLU
    a1 = conv3x3x3_relu(x, wa1_ref, ba1_ref)        # (C/4, R)
    a2 = conv3x3x3_relu(a1, wa2_ref, ba2_ref)       # (C/2, R)

    # Branch 2: conv_b1 (1^3) -> ReLU -> conv_b2 (3^3) -> ReLU -> conv_b3 (1^3) -> ReLU
    m1 = conv1x1_relu(x, wb1_ref, bb1_ref)          # (C/4, R)
    b2 = conv3x3x3_relu(m1, wb2_ref, bb2_ref)       # (C/4, R)
    b3 = conv1x1_relu(b2, wb3_ref, bb3_ref)         # (C/2, R)

    # out = indata + concat(branch1, branch2) along channels.
    out = jnp.concatenate([x[:C2] + a2, x[C2:] + b3], axis=0)   # (C, R)
    o_ref[...] = out[None].astype(o_ref.dtype)


def ir_block_pallas(x_ncr, masks, kp, dhw):
    """One IR_Block.  x_ncr: (N, C, R) float32 with R = D*H*W."""
    N, C, R = x_ncr.shape
    D, H, W = dhw
    C4, C2, T = C // 4, C // 2, 27

    kernel = functools.partial(_ir_block_kernel, D=D, H=H, W=W)

    def const_spec(shape):
        return pl.BlockSpec(shape, lambda n: (0,) * len(shape))

    grid_spec = pltpu.PrefetchScalarGridSpec(
        num_scalar_prefetch=0,
        grid=(N,),
        in_specs=[
            pl.BlockSpec((1, C, R), lambda n: (n, 0, 0)),   # activations
            const_spec((T, R)),                              # tap masks
            const_spec((T * C4, C)), const_spec((C4, 1)),    # conv_a1 (3^3)
            const_spec((T * C2, C4)), const_spec((C2, 1)),   # conv_a2 (3^3)
            const_spec((C4, C)), const_spec((C4, 1)),        # conv_b1 (1^3)
            const_spec((T * C4, C4)), const_spec((C4, 1)),   # conv_b2 (3^3)
            const_spec((C2, C4)), const_spec((C2, 1)),       # conv_b3 (1^3)
        ],
        out_specs=pl.BlockSpec((1, C, R), lambda n: (n, 0, 0)),
    )

    return pl.pallas_call(
        kernel,
        out_shape=jax.ShapeDtypeStruct((N, C, R), x_ncr.dtype),
        grid_spec=grid_spec,
        compiler_params=pltpu.CompilerParams(
            dimension_semantics=("parallel",)),
    )(x_ncr, masks,
      kp["a1_w"], kp["a1_b"], kp["a2_w"], kp["a2_b"],
      kp["b1_w"], kp["b1_b"], kp["b2_w"], kp["b2_b"],
      kp["b3_w"], kp["b3_b"])


def irn_forward(x_ncdhw, kparams, masks):
    N, C, D, H, W = x_ncdhw.shape
    x = x_ncdhw.reshape(N, C, D * H * W)      # pure reshape, no transpose
    for kp in kparams:
        x = ir_block_pallas(x, masks, kp, (D, H, W))
    return x.reshape(N, C, D, H, W)


# ----------------------------------------------------------------------------
# Glue: boundary masks + kernel-format weights (done once, outside jit).
# ----------------------------------------------------------------------------
def make_tap_masks(D, H, W):
    d = np.arange(D)[:, None, None]
    h = np.arange(H)[None, :, None]
    w = np.arange(W)[None, None, :]
    ms = []
    for kd in (-1, 0, 1):
        for kh in (-1, 0, 1):
            for kw in (-1, 0, 1):
                valid = ((d + kd >= 0) & (d + kd < D) &
                         (h + kh >= 0) & (h + kh < H) &
                         (w + kw >= 0) & (w + kw < W))
                ms.append(valid.reshape(-1))
    return jnp.asarray(np.stack(ms), dtype=jnp.float32)   # (27, D*H*W)


def _prep3(w_dhwio, b):
    # (3,3,3,Cin,Cout) -> (27*Cout, Cin) stacked along M; bias -> (Cout, 1)
    K, _, _, cin, cout = w_dhwio.shape
    w = jnp.transpose(w_dhwio.reshape(K * K * K, cin, cout), (0, 2, 1))
    return (w.reshape(K * K * K * cout, cin).astype(jnp.float32),
            b.reshape(cout, 1).astype(jnp.float32))


def _prep1(w_dhwio, b):
    # (1,1,1,Cin,Cout) -> (Cout, Cin); bias -> (Cout, 1)
    cin, cout = w_dhwio.shape[3], w_dhwio.shape[4]
    return (w_dhwio.reshape(cin, cout).T.astype(jnp.float32),
            b.reshape(cout, 1).astype(jnp.float32))


def prepare_block_params(p):
    kp = {}
    kp["a1_w"], kp["a1_b"] = _prep3(p["a1_w"], p["a1_b"])
    kp["a2_w"], kp["a2_b"] = _prep3(p["a2_w"], p["a2_b"])
    kp["b1_w"], kp["b1_b"] = _prep1(p["b1_w"], p["b1_b"])
    kp["b2_w"], kp["b2_b"] = _prep3(p["b2_w"], p["b2_b"])
    kp["b3_w"], kp["b3_b"] = _prep1(p["b3_w"], p["b3_b"])
    return kp


# ----------------------------------------------------------------------------
# Deterministic parameter init (mirrors nn.Conv3d shapes, OIDHW -> DHWIO).
# ----------------------------------------------------------------------------
def _init_conv(key, cin, cout, k, scale=0.05):
    kw_, kb_ = jax.random.split(key)
    w_oidhw = scale * jax.random.normal(kw_, (cout, cin, k, k, k), jnp.float32)
    b = scale * jax.random.normal(kb_, (cout,), jnp.float32)
    w_dhwio = jnp.transpose(w_oidhw, (2, 3, 4, 1, 0))
    return w_dhwio, b


def init_ir_block(key, C):
    k1, k2, k3, k4, k5 = jax.random.split(key, 5)
    p = {}
    p["a1_w"], p["a1_b"] = _init_conv(k1, C, C // 4, 3)
    p["a2_w"], p["a2_b"] = _init_conv(k2, C // 4, C // 2, 3)
    p["b1_w"], p["b1_b"] = _init_conv(k3, C, C // 4, 1)
    p["b2_w"], p["b2_b"] = _init_conv(k4, C // 4, C // 4, 3)
    p["b3_w"], p["b3_b"] = _init_conv(k5, C // 4, C // 2, 1)
    return p


# ----------------------------------------------------------------------------
# Pure-JAX reference (lax conv) for a correctness check.
# ----------------------------------------------------------------------------
def _conv3d_ref(x, w, b):
    y = lax.conv_general_dilated(
        x, w, window_strides=(1, 1, 1), padding="SAME",
        dimension_numbers=("NDHWC", "DHWIO", "NDHWC"))
    return jax.nn.relu(y + b)


def _ir_block_ref(x, p):
    b1 = _conv3d_ref(x, p["a1_w"], p["a1_b"])
    b1 = _conv3d_ref(b1, p["a2_w"], p["a2_b"])
    b2 = _conv3d_ref(x, p["b1_w"], p["b1_b"])
    b2 = _conv3d_ref(b2, p["b2_w"], p["b2_b"])
    b2 = _conv3d_ref(b2, p["b3_w"], p["b3_b"])
    return x + jnp.concatenate([b1, b2], axis=-1)


def _irn_ref(x_ncdhw, params):
    x = jnp.transpose(x_ncdhw, (0, 2, 3, 4, 1))
    for p in params:
        x = _ir_block_ref(x, p)
    return jnp.transpose(x, (0, 4, 1, 2, 3))


if __name__ == "__main__":
    num_filters = 8                      # must be divisible by 4
    N, C, D, H, W = 2, num_filters, 8, 8, 8

    key = jax.random.PRNGKey(0)
    k_x, k_p = jax.random.split(key)
    x = jax.random.normal(k_x, (N, C, D, H, W), jnp.float32)   # NCDHW, like PyTorch
    params = [init_ir_block(k, C) for k in jax.random.split(k_p, 3)]
    kparams = [prepare_block_params(p) for p in params]
    masks = make_tap_masks(D, H, W)

    fwd = jax.jit(irn_forward)
    out = jax.block_until_ready(fwd(x, kparams, masks))

    assert out.shape == x.shape and out.dtype == jnp.float32

    ref = jax.block_until_ready(_irn_ref(x, params))
    assert bool(jnp.all(jnp.isfinite(out)))
    assert jnp.allclose(out, ref, atol=5e-2, rtol=5e-2), (
        float(jnp.max(jnp.abs(out - ref))))

    print("KERNEL_OK")
</pallas_src>

<mosaic_0001>
module attributes {stable_mosaic.version = 11 : i64} {
  func.func @_ir_block_kernel(%arg0: i32, %arg1: memref<1x8x512xf32, #tpu.memory_space<vmem>>, %arg2: memref<27x512xf32, #tpu.memory_space<vmem>>, %arg3: memref<54x8xf32, #tpu.memory_space<vmem>>, %arg4: memref<2x1xf32, #tpu.memory_space<vmem>>, %arg5: memref<108x2xf32, #tpu.memory_space<vmem>>, %arg6: memref<4x1xf32, #tpu.memory_space<vmem>>, %arg7: memref<2x8xf32, #tpu.memory_space<vmem>>, %arg8: memref<2x1xf32, #tpu.memory_space<vmem>>, %arg9: memref<54x2xf32, #tpu.memory_space<vmem>>, %arg10: memref<2x1xf32, #tpu.memory_space<vmem>>, %arg11: memref<4x2xf32, #tpu.memory_space<vmem>>, %arg12: memref<4x1xf32, #tpu.memory_space<vmem>>, %arg13: memref<1x8x512xf32, #tpu.memory_space<vmem>>) attributes {dimension_semantics = [#tpu.dimension_semantics<parallel>], iteration_bounds = array<i64: 2>, scalar_prefetch = 0 : i64, scratch_operands = 0 : i64, tpu.core_type = #tpu.core_type<tc>, window_params = [{transform_indices = @transform_0, window_bounds = array<i64: 1, 8, 512>}, {pipeline_mode = #tpu.pipeline_mode<synchronous>, transform_indices = @transform_1, window_bounds = array<i64: 27, 512>}, {pipeline_mode = #tpu.pipeline_mode<synchronous>, transform_indices = @transform_2, window_bounds = array<i64: 54, 8>}, {pipeline_mode = #tpu.pipeline_mode<synchronous>, transform_indices = @transform_3, window_bounds = array<i64: 2, 1>}, {pipeline_mode = #tpu.pipeline_mode<synchronous>, transform_indices = @transform_4, window_bounds = array<i64: 108, 2>}, {pipeline_mode = #tpu.pipeline_mode<synchronous>, transform_indices = @transform_5, window_bounds = array<i64: 4, 1>}, {pipeline_mode = #tpu.pipeline_mode<synchronous>, transform_indices = @transform_6, window_bounds = array<i64: 2, 8>}, {pipeline_mode = #tpu.pipeline_mode<synchronous>, transform_indices = @transform_7, window_bounds = array<i64: 2, 1>}, {pipeline_mode = #tpu.pipeline_mode<synchronous>, transform_indices = @transform_8, window_bounds = array<i64: 54, 2>}, {pipeline_mode = #tpu.pipeline_mode<synchronous>, transform_indices = @transform_9, window_bounds = array<i64: 2, 1>}, {pipeline_mode = #tpu.pipeline_mode<synchronous>, transform_indices = @transform_10, window_bounds = array<i64: 4, 2>}, {pipeline_mode = #tpu.pipeline_mode<synchronous>, transform_indices = @transform_11, window_bounds = array<i64: 4, 1>}, {transform_indices = @transform_12, window_bounds = array<i64: 1, 8, 512>}]} {
    %c0 = arith.constant 0 : index
    %c0_0 = arith.constant 0 : index
    %c0_1 = arith.constant 0 : index
    %0 = vector.load %arg1[%c0, %c0_0, %c0_1] : memref<1x8x512xf32, #tpu.memory_space<vmem>>, vector<1x8x512xf32>
    %1 = vector.shape_cast %0 : vector<1x8x512xf32> to vector<8x512xf32>
    %c0_2 = arith.constant 0 : index
    %c0_3 = arith.constant 0 : index
    %2 = vector.load %arg2[%c0_2, %c0_3] : memref<27x512xf32, #tpu.memory_space<vmem>>, vector<27x512xf32>
    %c0_4 = arith.constant 0 : index
    %c0_5 = arith.constant 0 : index
    %3 = vector.load %arg3[%c0_4, %c0_5] : memref<54x8xf32, #tpu.memory_space<vmem>>, vector<54x8xf32>
    %cst = arith.constant dense<0.000000e+00> : vector<54x512xf32>
    %4 = tpu.matmul %3, %1, %cst {dimension_numbers = #tpu.dot_dimension_numbers<[1], [0], [0], [1], [0, 0, 1, 1], [], []>} : vector<54x8xf32>, vector<8x512xf32>, vector<54x512xf32> -> vector<54x512xf32>
    %cst_6 = arith.constant 0.000000e+00 : f32
    %5 = vector.broadcast %cst_6 : f32 to vector<2x512xf32>
    %6 = vector.extract_strided_slice %4 {offsets = [0, 0], sizes = [2, 512], strides = [1, 1]} : vector<54x512xf32> to vector<2x512xf32>
    %7 = vector.extract_strided_slice %6 {offsets = [0, 439], sizes = [2, 73], strides = [1, 1]} : vector<2x512xf32> to vector<2x73xf32>
    %8 = vector.extract_strided_slice %6 {offsets = [0, 0], sizes = [2, 439], strides = [1, 1]} : vector<2x512xf32> to vector<2x439xf32>
    %9 = tpu.concatenate %7, %8 in 1 : vector<2x73xf32>, vector<2x439xf32> -> vector<2x512xf32>
    %10 = vector.extract_strided_slice %2 {offsets = [0, 0], sizes = [1, 512], strides = [1, 1]} : vector<27x512xf32> to vector<1x512xf32>
    %11 = vector.broadcast %10 : vector<1x512xf32> to vector<2x512xf32>
    %12 = arith.mulf %9, %11 : vector<2x512xf32>
    %13 = arith.addf %5, %12 : vector<2x512xf32>
    %14 = vector.extract_strided_slice %4 {offsets = [2, 0], sizes = [2, 512], strides = [1, 1]} : vector<54x512xf32> to vector<2x512xf32>
    %15 = vector.extract_strided_slice %14 {offsets = [0, 440], sizes = [2, 72], strides = [1, 1]} : vector<2x512xf32> to vector<2x72xf32>
    %16 = vector.extract_strided_slice %14 {offsets = [0, 0], sizes = [2, 440], strides = [1, 1]} : vector<2x512xf32> to vector<2x440xf32>
    %17 = tpu.concatenate %15, %16 in 1 : vector<2x72xf32>, vector<2x440xf32> -> vector<2x512xf32>
    %18 = vector.extract_strided_slice %2 {offsets = [1, 0], sizes = [1, 512], strides = [1, 1]} : vector<27x512xf32> to vector<1x512xf32>
    %19 = vector.broadcast %18 : vector<1x512xf32> to vector<2x512xf32>
    %20 = arith.mulf %17, %19 : vector<2x512xf32>
    %21 = arith.addf %13, %20 : vector<2x512xf32>
    %22 = vector.extract_strided_slice %4 {offsets = [4, 0], sizes = [2, 512], strides = [1, 1]} : vector<54x512xf32> to vector<2x512xf32>
    %23 = vector.extract_strided_slice %22 {offsets = [0, 441], sizes = [2, 71], strides = [1, 1]} : vector<2x512xf32> to vector<2x71xf32>
    %24 = vector.extract_strided_slice %22 {offsets = [0, 0], sizes = [2, 441], strides = [1, 1]} : vector<2x512xf32> to vector<2x441xf32>
    %25 = tpu.concatenate %23, %24 in 1 : vector<2x71xf32>, vector<2x441xf32> -> vector<2x512xf32>
    %26 = vector.extract_strided_slice %2 {offsets = [2, 0], sizes = [1, 512], strides = [1, 1]} : vector<27x512xf32> to vector<1x512xf32>
    %27 = vector.broadcast %26 : vector<1x512xf32> to vector<2x512xf32>
    %28 = arith.mulf %25, %27 : vector<2x512xf32>
    %29 = arith.addf %21, %28 : vector<2x512xf32>
    %30 = vector.extract_strided_slice %4 {offsets = [6, 0], sizes = [2, 512], strides = [1, 1]} : vector<54x512xf32> to vector<2x512xf32>
    %31 = vector.extract_strided_slice %30 {offsets = [0, 447], sizes = [2, 65], strides = [1, 1]} : vector<2x512xf32> to vector<2x65xf32>
    %32 = vector.extract_strided_slice %30 {offsets = [0, 0], sizes = [2, 447], strides = [1, 1]} : vector<2x512xf32> to vector<2x447xf32>
    %33 = tpu.concatenate %31, %32 in 1 : vector<2x65xf32>, vector<2x447xf32> -> vector<2x512xf32>
    %34 = vector.extract_strided_slice %2 {offsets = [3, 0], sizes = [1, 512], strides = [1, 1]} : vector<27x512xf32> to vector<1x512xf32>
    %35 = vector.broadcast %34 : vector<1x512xf32> to vector<2x512xf32>
    %36 = arith.mulf %33, %35 : vector<2x512xf32>
    %37 = arith.addf %29, %36 : vector<2x512xf32>
    %38 = vector.extract_strided_slice %4 {offsets = [8, 0], sizes = [2, 512], strides = [1, 1]} : vector<54x512xf32> to vector<2x512xf32>
    %39 = vector.extract_strided_slice %38 {offsets = [0, 448], sizes = [2, 64], strides = [1, 1]} : vector<2x512xf32> to vector<2x64xf32>
    %40 = vector.extract_strided_slice %38 {offsets = [0, 0], sizes = [2, 448], strides = [1, 1]} : vector<2x512xf32> to vector<2x448xf32>
    %41 = tpu.concatenate %39, %40 in 1 : vector<2x64xf32>, vector<2x448xf32> -> vector<2x512xf32>
    %42 = vector.extract_strided_slice %2 {offsets = [4, 0], sizes = [1, 512], strides = [1, 1]} : vector<27x512xf32> to vector<1x512xf32>
    %43 = vector.broadcast %42 : vector<1x512xf32> to vector<2x512xf32>
    %44 = arith.mulf %41, %43 : vector<2x512xf32>
    %45 = arith.addf %37, %44 : vector<2x512xf32>
    %46 = vector.extract_strided_slice %4 {offsets = [10, 0], sizes = [2, 512], strides = [1, 1]} : vector<54x512xf32> to vector<2x512xf32>
    %47 = vector.extract_strided_slice %46 {offsets = [0, 449], sizes = [2, 63], strides = [1, 1]} : vector<2x512xf32> to vector<2x63xf32>
    %48 = vector.extract_strided_slice %46 {offsets = [0, 0], sizes = [2, 449], strides = [1, 1]} : vector<2x512xf32> to vector<2x449xf32>
    %49 = tpu.concatenate %47, %48 in 1 : vector<2x63xf32>, vector<2x449xf32> -> vector<2x512xf32>
    %50 = vector.extract_strided_slice %2 {offsets = [5, 0], sizes = [1, 512], strides = [1, 1]} : vector<27x512xf32> to vector<1x512xf32>
    %51 = vector.broadcast %50 : vector<1x512xf32> to vector<2x512xf32>
    %52 = arith.mulf %49, %51 : vector<2x512xf32>
    %53 = arith.addf %45, %52 : vector<2x512xf32>
    %54 = vector.extract_strided_slice %4 {offsets = [12, 0], sizes = [2, 512], strides = [1, 1]} : vector<54x512xf32> to vector<2x512xf32>
    %55 = vector.extract_strided_slice %54 {offsets = [0, 455], sizes = [2, 57], strides = [1, 1]} : vector<2x512xf32> to vector<2x57xf32>
    %56 = vector.extract_strided_slice %54 {offsets = [0, 0], sizes = [2, 455], strides = [1, 1]} : vector<2x512xf32> to vector<2x455xf32>
    %57 = tpu.concatenate %55, %56 in 1 : vector<2x57xf32>, vector<2x455xf32> -> vector<2x512xf32>
    %58 = vector.extract_strided_slice %2 {offsets = [6, 0], sizes = [1, 512], strides = [1, 1]} : vector<27x512xf32> to vector<1x512xf32>
    %59 = vector.broadcast %58 : vector<1x512xf32> to vector<2x512xf32>
    %60 = arith.mulf %57, %59 : vector<2x512xf32>
    %61 = arith.addf %53, %60 : vector<2x512xf32>
    %62 = vector.extract_strided_slice %4 {offsets = [14, 0], sizes = [2, 512], strides = [1, 1]} : vector<54x512xf32> to vector<2x512xf32>
    %63 = vector.extract_strided_slice %62 {offsets = [0, 456], sizes = [2, 56], strides = [1, 1]} : vector<2x512xf32> to vector<2x56xf32>
    %64 = vector.extract_strided_slice %62 {offsets = [0, 0], sizes = [2, 456], strides = [1, 1]} : vector<2x512xf32> to vector<2x456xf32>
    %65 = tpu.concatenate %63, %64 in 1 : vector<2x56xf32>, vector<2x456xf32> -> vector<2x512xf32>
    %66 = vector.extract_strided_slice %2 {offsets = [7, 0], sizes = [1, 512], strides = [1, 1]} : vector<27x512xf32> to vector<1x512xf32>
    %67 = vector.broadcast %66 : vector<1x512xf32> to vector<2x512xf32>
    %68 = arith.mulf %65, %67 : vector<2x512xf32>
    %69 = arith.addf %61, %68 : vector<2x512xf32>
    %70 = vector.extract_strided_slice %4 {offsets = [16, 0], sizes = [2, 512], strides = [1, 1]} : vector<54x512xf32> to vector<2x512xf32>
    %71 = vector.extract_strided_slice %70 {offsets = [0, 457], sizes = [2, 55], strides = [1, 1]} : vector<2x512xf32> to vector<2x55xf32>
    %72 = vector.extract_strided_slice %70 {offsets = [0, 0], sizes = [2, 457], strides = [1, 1]} : vector<2x512xf32> to vector<2x457xf32>
    %73 = tpu.concatenate %71, %72 in 1 : vector<2x55xf32>, vector<2x457xf32> -> vector<2x512xf32>
    %74 = vector.extract_strided_slice %2 {offsets = [8, 0], sizes = [1, 512], strides = [1, 1]} : vector<27x512xf32> to vector<1x512xf32>
    %75 = vector.broadcast %74 : vector<1x512xf32> to vector<2x512xf32>
    %76 = arith.mulf %73, %75 : vector<2x512xf32>
    %77 = arith.addf %69, %76 : vector<2x512xf32>
    %78 = vector.extract_strided_slice %4 {offsets = [18, 0], sizes = [2, 512], strides = [1, 1]} : vector<54x512xf32> to vector<2x512xf32>
    %79 = vector.extract_strided_slice %78 {offsets = [0, 503], sizes = [2, 9], strides = [1, 1]} : vector<2x512xf32> to vector<2x9xf32>
    %80 = vector.extract_strided_slice %78 {offsets = [0, 0], sizes = [2, 503], strides = [1, 1]} : vector<2x512xf32> to vector<2x503xf32>
    %81 = tpu.concatenate %79, %80 in 1 : vector<2x9xf32>, vector<2x503xf32> -> vector<2x512xf32>
    %82 = vector.extract_strided_slice %2 {offsets = [9, 0], sizes = [1, 512], strides = [1, 1]} : vector<27x512xf32> to vector<1x512xf32>
    %83 = vector.broadcast %82 : vector<1x512xf32> to vector<2x512xf32>
    %84 = arith.mulf %81, %83 : vector<2x512xf32>
    %85 = arith.addf %77, %84 : vector<2x512xf32>
    %86 = vector.extract_strided_slice %4 {offsets = [20, 0], sizes = [2, 512], strides = [1, 1]} : vector<54x512xf32> to vector<2x512xf32>
    %87 = vector.extract_strided_slice %86 {offsets = [0, 504], sizes = [2, 8], strides = [1, 1]} : vector<2x512xf32> to vector<2x8xf32>
    %88 = vector.extract_strided_slice %86 {offsets = [0, 0], sizes = [2, 504], strides = [1, 1]} : vector<2x512xf32> to vector<2x504xf32>
    %89 = tpu.concatenate %87, %88 in 1 : vector<2x8xf32>, vector<2x504xf32> -> vector<2x512xf32>
    %90 = vector.extract_strided_slice %2 {offsets = [10, 0], sizes = [1, 512], strides = [1, 1]} : vector<27x512xf32> to vector<1x512xf32>
    %91 = vector.broadcast %90 : vector<1x512xf32> to vector<2x512xf32>
    %92 = arith.mulf %89, %91 : vector<2x512xf32>
    %93 = arith.addf %85, %92 : vector<2x512xf32>
    %94 = vector.extract_strided_slice %4 {offsets = [22, 0], sizes = [2, 512], strides = [1, 1]} : vector<54x512xf32> to vector<2x512xf32>
    %95 = vector.extract_strided_slice %94 {offsets = [0, 505], sizes = [2, 7], strides = [1, 1]} : vector<2x512xf32> to vector<2x7xf32>
    %96 = vector.extract_strided_slice %94 {offsets = [0, 0], sizes = [2, 505], strides = [1, 1]} : vector<2x512xf32> to vector<2x505xf32>
    %97 = tpu.concatenate %95, %96 in 1 : vector<2x7xf32>, vector<2x505xf32> -> vector<2x512xf32>
    %98 = vector.extract_strided_slice %2 {offsets = [11, 0], sizes = [1, 512], strides = [1, 1]} : vector<27x512xf32> to vector<1x512xf32>
    %99 = vector.broadcast %98 : vector<1x512xf32> to vector<2x512xf32>
    %100 = arith.mulf %97, %99 : vector<2x512xf32>
    %101 = arith.addf %93, %100 : vector<2x512xf32>
    %102 = vector.extract_strided_slice %4 {offsets = [24, 0], sizes = [2, 512], strides = [1, 1]} : vector<54x512xf32> to vector<2x512xf32>
    %103 = vector.extract_strided_slice %102 {offsets = [0, 511], sizes = [2, 1], strides = [1, 1]} : vector<2x512xf32> to vector<2x1xf32>
    %104 = vector.extract_strided_slice %102 {offsets = [0, 0], sizes = [2, 511], strides = [1, 1]} : vector<2x512xf32> to vector<2x511xf32>
    %105 = tpu.concatenate %103, %104 in 1 : vector<2x1xf32>, vector<2x511xf32> -> vector<2x512xf32>
    %106 = vector.extract_strided_slice %2 {offsets = [12, 0], sizes = [1, 512], strides = [1, 1]} : vector<27x512xf32> to vector<1x512xf32>
    %107 = vector.broadcast %106 : vector<1x512xf32> to vector<2x512xf32>
    %108 = arith.mulf %105, %107 : vector<2x512xf32>
    %109 = arith.addf %101, %108 : vector<2x512xf32>
    %110 = vector.extract_strided_slice %4 {offsets = [26, 0], sizes = [2, 512], strides = [1, 1]} : vector<54x512xf32> to vector<2x512xf32>
    %111 = arith.addf %109, %110 : vector<2x512xf32>
    %112 = vector.extract_strided_slice %4 {offsets = [28, 0], sizes = [2, 512], strides = [1, 1]} : vector<54x512xf32> to vector<2x512xf32>
    %113 = vector.extract_strided_slice %112 {offsets = [0, 1], sizes = [2, 511], strides = [1, 1]} : vector<2x512xf32> to vector<2x511xf32>
    %114 = vector.extract_strided_slice %112 {offsets = [0, 0], sizes = [2, 1], strides = [1, 1]} : vector<2x512xf32> to vector<2x1xf32>
    %115 = tpu.concatenate %113, %114 in 1 : vector<2x511xf32>, vector<2x1xf32> -> vector<2x512xf32>
    %116 = vector.extract_strided_slice %2 {offsets = [14, 0], sizes = [1, 512], strides = [1, 1]} : vector<27x512xf32> to vector<1x512xf32>
    %117 = vector.broadcast %116 : vector<1x512xf32> to vector<2x512xf32>
    %118 = arith.mulf %115, %117 : vector<2x512xf32>
    %119 = arith.addf %111, %118 : vector<2x512xf32>
    %120 = vector.extract_strided_slice %4 {offsets = [30, 0], sizes = [2, 512], strides = [1, 1]} : vector<54x512xf32> to vector<2x512xf32>
    %121 = vector.extract_strided_slice %120 {offsets = [0, 7], sizes = [2, 505], strides = [1, 1]} : vector<2x512xf32> to vector<2x505xf32>
    %122 = vector.extract_strided_slice %120 {offsets = [0, 0], sizes = [2, 7], strides = [1, 1]} : vector<2x512xf32> to vector<2x7xf32>
    %123 = tpu.concatenate %121, %122 in 1 : vector<2x505xf32>, vector<2x7xf32> -> vector<2x512xf32>
    %124 = vector.extract_strided_slice %2 {offsets = [15, 0], sizes = [1, 512], strides = [1, 1]} : vector<27x512xf32> to vector<1x512xf32>
    %125 = vector.broadcast %124 : vector<1x512xf32> to vector<2x512xf32>
    %126 = arith.mulf %123, %125 : vector<2x512xf32>
    %127 = arith.addf %119, %126 : vector<2x512xf32>
    %128 = vector.extract_strided_slice %4 {offsets = [32, 0], sizes = [2, 512], strides = [1, 1]} : vector<54x512xf32> to vector<2x512xf32>
    %129 = vector.extract_strided_slice %128 {offsets = [0, 8], sizes = [2, 504], strides = [1, 1]} : vector<2x512xf32> to vector<2x504xf32>
    %130 = vector.extract_strided_slice %128 {offsets = [0, 0], sizes = [2, 8], strides = [1, 1]} : vector<2x512xf32> to vector<2x8xf32>
    %131 = tpu.concatenate %129, %130 in 1 : vector<2x504xf32>, vector<2x8xf32> -> vector<2x512xf32>
    %132 = vector.extract_strided_slice %2 {offsets = [16, 0], sizes = [1, 512], strides = [1, 1]} : vector<27x512xf32> to vector<1x512xf32>
    %133 = vector.broadcast %132 : vector<1x512xf32> to vector<2x512xf32>
    %134 = arith.mulf %131, %133 : vector<2x512xf32>
    %135 = arith.addf %127, %134 : vector<2x512xf32>
    %136 = vector.extract_strided_slice %4 {offsets = [34, 0], sizes = [2, 512], strides = [1, 1]} : vector<54x512xf32> to vector<2x512xf32>
    %137 = vector.extract_strided_slice %136 {offsets = [0, 9], sizes = [2, 503], strides = [1, 1]} : vector<2x512xf32> to vector<2x503xf32>
    %138 = vector.extract_strided_slice %136 {offsets = [0, 0], sizes = [2, 9], strides = [1, 1]} : vector<2x512xf32> to vector<2x9xf32>
    %139 = tpu.concatenate %137, %138 in 1 : vector<2x503xf32>, vector<2x9xf32> -> vector<2x512xf32>
    %140 = vector.extract_strided_slice %2 {offsets = [17, 0], sizes = [1, 512], strides = [1, 1]} : vector<27x512xf32> to vector<1x512xf32>
    %141 = vector.broadcast %140 : vector<1x512xf32> to vector<2x512xf32>
    %142 = arith.mulf %139, %141 : vector<2x512xf32>
    %143 = arith.addf %135, %142 : vector<2x512xf32>
    %144 = vector.extract_strided_slice %4 {offsets = [36, 0], sizes = [2, 512], strides = [1, 1]} : vector<54x512xf32> to vector<2x512xf32>
    %145 = vector.extract_strided_slice %144 {offsets = [0, 55], sizes = [2, 457], strides = [1, 1]} : vector<2x512xf32> to vector<2x457xf32>
    %146 = vector.extract_strided_slice %144 {offsets = [0, 0], sizes = [2, 55], strides = [1, 1]} : vector<2x512xf32> to vector<2x55xf32>
    %147 = tpu.concatenate %145, %146 in 1 : vector<2x457xf32>, vector<2x55xf32> -> vector<2x512xf32>
    %148 = vector.extract_strided_slice %2 {offsets = [18, 0], sizes = [1, 512], strides = [1, 1]} : vector<27x512xf32> to vector<1x512xf32>
    %149 = vector.broadcast %148 : vector<1x512xf32> to vector<2x512xf32>
    %150 = arith.mulf %147, %149 : vector<2x512xf32>
    %151 = arith.addf %143, %150 : vector<2x512xf32>
    %152 = vector.extract_strided_slice %4 {offsets = [38, 0], sizes = [2, 512], strides = [1, 1]} : vector<54x512xf32> to vector<2x512xf32>
    %153 = vector.extract_strided_slice %152 {offsets = [0, 56], sizes = [2, 456], strides = [1, 1]} : vector<2x512xf32> to vector<2x456xf32>
    %154 = vector.extract_strided_slice %152 {offsets = [0, 0], sizes = [2, 56], strides = [1, 1]} : vector<2x512xf32> to vector<2x56xf32>
    %155 = tpu.concatenate %153, %154 in 1 : vector<2x456xf32>, vector<2x56xf32> -> vector<2x512xf32>
    %156 = vector.extract_strided_slice %2 {offsets = [19, 0], sizes = [1, 512], strides = [1, 1]} : vector<27x512xf32> to vector<1x512xf32>
    %157 = vector.broadcast %156 : vector<1x512xf32> to vector<2x512xf32>
    %158 = arith.mulf %155, %157 : vector<2x512xf32>
    %159 = arith.addf %151, %158 : vector<2x512xf32>
    %160 = vector.extract_strided_slice %4 {offsets = [40, 0], sizes = [2, 512], strides = [1, 1]} : vector<54x512xf32> to vector<2x512xf32>
    %161 = vector.extract_strided_slice %160 {offsets = [0, 57], sizes = [2, 455], strides = [1, 1]} : vector<2x512xf32> to vector<2x455xf32>
    %162 = vector.extract_strided_slice %160 {offsets = [0, 0], sizes = [2, 57], strides = [1, 1]} : vector<2x512xf32> to vector<2x57xf32>
    %163 = tpu.concatenate %161, %162 in 1 : vector<2x455xf32>, vector<2x57xf32> -> vector<2x512xf32>
    %164 = vector.extract_strided_slice %2 {offsets = [20, 0], sizes = [1, 512], strides = [1, 1]} : vector<27x512xf32> to vector<1x512xf32>
    %165 = vector.broadcast %164 : vector<1x512xf32> to vector<2x512xf32>
    %166 = arith.mulf %163, %165 : vector<2x512xf32>
    %167 = arith.addf %159, %166 : vector<2x512xf32>
    %168 = vector.extract_strided_slice %4 {offsets = [42, 0], sizes = [2, 512], strides = [1, 1]} : vector<54x512xf32> to vector<2x512xf32>
    %169 = vector.extract_strided_slice %168 {offsets = [0, 63], sizes = [2, 449], strides = [1, 1]} : vector<2x512xf32> to vector<2x449xf32>
    %170 = vector.extract_strided_slice %168 {offsets = [0, 0], sizes = [2, 63], strides = [1, 1]} : vector<2x512xf32> to vector<2x63xf32>
    %171 = tpu.concatenate %169, %170 in 1 : vector<2x449xf32>, vector<2x63xf32> -> vector<2x512xf32>
    %172 = vector.extract_strided_slice %2 {offsets = [21, 0], sizes = [1, 512], strides = [1, 1]} : vector<27x512xf32> to vector<1x512xf32>
    %173 = vector.broadcast %172 : vector<1x512xf32> to vector<2x512xf32>
    %174 = arith.mulf %171, %173 : vector<2x512xf32>
    %175 = arith.addf %167, %174 : vector<2x512xf32>
    %176 = vector.extract_strided_slice %4 {offsets = [44, 0], sizes = [2, 512], strides = [1, 1]} : vector<54x512xf32> to vector<2x512xf32>
    %177 = vector.extract_strided_slice %176 {offsets = [0, 64], sizes = [2, 448], strides = [1, 1]} : vector<2x512xf32> to vector<2x448xf32>
    %178 = vector.extract_strided_slice %176 {offsets = [0, 0], sizes = [2, 64], strides = [1, 1]} : vector<2x512xf32> to vector<2x64xf32>
    %179 = tpu.concatenate %177, %178 in 1 : vector<2x448xf32>, vector<2x64xf32> -> vector<2x512xf32>
    %180 = vector.extract_strided_slice %2 {offsets = [22, 0], sizes = [1, 512], strides = [1, 1]} : vector<27x512xf32> to vector<1x512xf32>
    %181 = vector.broadcast %180 : vector<1x512xf32> to vector<2x512xf32>
    %182 = arith.mulf %179, %181 : vector<2x512xf32>
    %183 = arith.addf %175, %182 : vector<2x512xf32>
    %184 = vector.extract_strided_slice %4 {offsets = [46, 0], sizes = [2, 512], strides = [1, 1]} : vector<54x512xf32> to vector<2x512xf32>
    %185 = vector.extract_strided_slice %184 {offsets = [0, 65], sizes = [2, 447], strides = [1, 1]} : vector<2x512xf32> to vector<2x447xf32>
    %186 = vector.extract_strided_slice %184 {offsets = [0, 0], sizes = [2, 65], strides = [1, 1]} : vector<2x512xf32> to vector<2x65xf32>
    %187 = tpu.concatenate %185, %186 in 1 : vector<2x447xf32>, vector<2x65xf32> -> vector<2x512xf32>
    %188 = vector.extract_strided_slice %2 {offsets = [23, 0], sizes = [1, 512], strides = [1, 1]} : vector<27x512xf32> to vector<1x512xf32>
    %189 = vector.broadcast %188 : vector<1x512xf32> to vector<2x512xf32>
    %190 = arith.mulf %187, %189 : vector<2x512xf32>
    %191 = arith.addf %183, %190 : vector<2x512xf32>
    %192 = vector.extract_strided_slice %4 {offsets = [48, 0], sizes = [2, 512], strides = [1, 1]} : vector<54x512xf32> to vector<2x512xf32>
    %193 = vector.extract_strided_slice %192 {offsets = [0, 71], sizes = [2, 441], strides = [1, 1]} : vector<2x512xf32> to vector<2x441xf32>
    %194 = vector.extract_strided_slice %192 {offsets = [0, 0], sizes = [2, 71], strides = [1, 1]} : vector<2x512xf32> to vector<2x71xf32>
    %195 = tpu.concatenate %193, %194 in 1 : vector<2x441xf32>, vector<2x71xf32> -> vector<2x512xf32>
    %196 = vector.extract_strided_slice %2 {offsets = [24, 0], sizes = [1, 512], strides = [1, 1]} : vector<27x512xf32> to vector<1x512xf32>
    %197 = vector.broadcast %196 : vector<1x512xf32> to vector<2x512xf32>
    %198 = arith.mulf %195, %197 : vector<2x512xf32>
    %199 = arith.addf %191, %198 : vector<2x512xf32>
    %200 = vector.extract_strided_slice %4 {offsets = [50, 0], sizes = [2, 512], strides = [1, 1]} : vector<54x512xf32> to vector<2x512xf32>
    %201 = vector.extract_strided_slice %200 {offsets = [0, 72], sizes = [2, 440], strides = [1, 1]} : vector<2x512xf32> to vector<2x440xf32>
    %202 = vector.extract_strided_slice %200 {offsets = [0, 0], sizes = [2, 72], strides = [1, 1]} : vector<2x512xf32> to vector<2x72xf32>
    %203 = tpu.concatenate %201, %202 in 1 : vector<2x440xf32>, vector<2x72xf32> -> vector<2x512xf32>
    %204 = vector.extract_strided_slice %2 {offsets = [25, 0], sizes = [1, 512], strides = [1, 1]} : vector<27x512xf32> to vector<1x512xf32>
    %205 = vector.broadcast %204 : vector<1x512xf32> to vector<2x512xf32>
    %206 = arith.mulf %203, %205 : vector<2x512xf32>
    %207 = arith.addf %199, %206 : vector<2x512xf32>
    %208 = vector.extract_strided_slice %4 {offsets = [52, 0], sizes = [2, 512], strides = [1, 1]} : vector<54x512xf32> to vector<2x512xf32>
    %209 = vector.extract_strided_slice %208 {offsets = [0, 73], sizes = [2, 439], strides = [1, 1]} : vector<2x512xf32> to vector<2x439xf32>
    %210 = vector.extract_strided_slice %208 {offsets = [0, 0], sizes = [2, 73], strides = [1, 1]} : vector<2x512xf32> to vector<2x73xf32>
    %211 = tpu.concatenate %209, %210 in 1 : vector<2x439xf32>, vector<2x73xf32> -> vector<2x512xf32>
    %212 = vector.extract_strided_slice %2 {offsets = [26, 0], sizes = [1, 512], strides = [1, 1]} : vector<27x512xf32> to vector<1x512xf32>
    %213 = vector.broadcast %212 : vector<1x512xf32> to vector<2x512xf32>
    %214 = arith.mulf %211, %213 : vector<2x512xf32>
    %215 = arith.addf %207, %214 : vector<2x512xf32>
    %c0_7 = arith.constant 0 : index
    %c0_8 = arith.constant 0 : index
    %216 = vector.load %arg4[%c0_7, %c0_8] : memref<2x1xf32, #tpu.memory_space<vmem>>, vector<2x1xf32>
    %217 = vector.broadcast %216 : vector<2x1xf32> to vector<2x512xf32>
    %218 = arith.addf %215, %217 : vector<2x512xf32>
    %cst_9 = arith.constant 0.000000e+00 : f32
    %219 = vector.broadcast %cst_9 : f32 to vector<2x512xf32>
    %220 = arith.maximumf %218, %219 : vector<2x512xf32>
    %c0_10 = arith.constant 0 : index
    %c0_11 = arith.constant 0 : index
    %221 = vector.load %arg5[%c0_10, %c0_11] : memref<108x2xf32, #tpu.memory_space<vmem>>, vector<108x2xf32>
    %cst_12 = arith.constant dense<0.000000e+00> : vector<108x512xf32>
    %222 = tpu.matmul %221, %220, %cst_12 {dimension_numbers = #tpu.dot_dimension_numbers<[1], [0], [0], [1], [0, 0, 1, 1], [], []>} : vector<108x2xf32>, vector<2x512xf32>, vector<108x512xf32> -> vector<108x512xf32>
    %cst_13 = arith.constant 0.000000e+00 : f32
    %223 = vector.broadcast %cst_13 : f32 to vector<4x512xf32>
    %224 = vector.extract_strided_slice %222 {offsets = [0, 0], sizes = [4, 512], strides = [1, 1]} : vector<108x512xf32> to vector<4x512xf32>
    %225 = vector.extract_strided_slice %224 {offsets = [0, 439], sizes = [4, 73], strides = [1, 1]} : vector<4x512xf32> to vector<4x73xf32>
    %226 = vector.extract_strided_slice %224 {offsets = [0, 0], sizes = [4, 439], strides = [1, 1]} : vector<4x512xf32> to vector<4x439xf32>
    %227 = tpu.concatenate %225, %226 in 1 : vector<4x73xf32>, vector<4x439xf32> -> vector<4x512xf32>
    %228 = vector.extract_strided_slice %2 {offsets = [0, 0], sizes = [1, 512], strides = [1, 1]} : vector<27x512xf32> to vector<1x512xf32>
    %229 = vector.broadcast %228 : vector<1x512xf32> to vector<4x512xf32>
    %230 = arith.mulf %227, %229 : vector<4x512xf32>
    %231 = arith.addf %223, %230 : vector<4x512xf32>
    %232 = vector.extract_strided_slice %222 {offsets = [4, 0], sizes = [4, 512], strides = [1, 1]} : vector<108x512xf32> to vector<4x512xf32>
    %233 = vector.extract_strided_slice %232 {offsets = [0, 440], sizes = [4, 72], strides = [1, 1]} : vector<4x512xf32> to vector<4x72xf32>
    %234 = vector.extract_strided_slice %232 {offsets = [0, 0], sizes = [4, 440], strides = [1, 1]} : vector<4x512xf32> to vector<4x440xf32>
    %235 = tpu.concatenate %233, %234 in 1 : vector<4x72xf32>, vector<4x440xf32> -> vector<4x512xf32>
    %236 = vector.extract_strided_slice %2 {offsets = [1, 0], sizes = [1, 512], strides = [1, 1]} : vector<27x512xf32> to vector<1x512xf32>
    %237 = vector.broadcast %236 : vector<1x512xf32> to vector<4x512xf32>
    %238 = arith.mulf %235, %237 : vector<4x512xf32>
    %239 = arith.addf %231, %238 : vector<4x512xf32>
    %240 = vector.extract_strided_slice %222 {offsets = [8, 0], sizes = [4, 512], strides = [1, 1]} : vector<108x512xf32> to vector<4x512xf32>
    %241 = vector.extract_strided_slice %240 {offsets = [0, 441], sizes = [4, 71], strides = [1, 1]} : vector<4x512xf32> to vector<4x71xf32>
    %242 = vector.extract_strided_slice %240 {offsets = [0, 0], sizes = [4, 441], strides = [1, 1]} : vector<4x512xf32> to vector<4x441xf32>
    %243 = tpu.concatenate %241, %242 in 1 : vector<4x71xf32>, vector<4x441xf32> -> vector<4x512xf32>
    %244 = vector.extract_strided_slice %2 {offsets = [2, 0], sizes = [1, 512], strides = [1, 1]} : vector<27x512xf32> to vector<1x512xf32>
    %245 = vector.broadcast %244 : vector<1x512xf32> to vector<4x512xf32>
    %246 = arith.mulf %243, %245 : vector<4x512xf32>
    %247 = arith.addf %239, %246 : vector<4x512xf32>
    %248 = vector.extract_strided_slice %222 {offsets = [12, 0], sizes = [4, 512], strides = [1, 1]} : vector<108x512xf32> to vector<4x512xf32>
    %249 = vector.extract_strided_slice %248 {offsets = [0, 447], sizes = [4, 65], strides = [1, 1]} : vector<4x512xf32> to vector<4x65xf32>
    %250 = vector.extract_strided_slice %248 {offsets = [0, 0], sizes = [4, 447], strides = [1, 1]} : vector<4x512xf32> to vector<4x447xf32>
    %251 = tpu.concatenate %249, %250 in 1 : vector<4x65xf32>, vector<4x447xf32> -> vector<4x512xf32>
    %252 = vector.extract_strided_slice %2 {offsets = [3, 0], sizes = [1, 512], strides = [1, 1]} : vector<27x512xf32> to vector<1x512xf32>
    %253 = vector.broadcast %252 : vector<1x512xf32> to vector<4x512xf32>
    %254 = arith.mulf %251, %253 : vector<4x512xf32>
    %255 = arith.addf %247, %254 : vector<4x512xf32>
    %256 = vector.extract_strided_slice %222 {offsets = [16, 0], sizes = [4, 512], strides = [1, 1]} : vector<108x512xf32> to vector<4x512xf32>
    %257 = vector.extract_strided_slice %256 {offsets = [0, 448], sizes = [4, 64], strides = [1, 1]} : vector<4x512xf32> to vector<4x64xf32>
    %258 = vector.extract_strided_slice %256 {offsets = [0, 0], sizes = [4, 448], strides = [1, 1]} : vector<4x512xf32> to vector<4x448xf32>
    %259 = tpu.concatenate %257, %258 in 1 : vector<4x64xf32>, vector<4x448xf32> -> vector<4x512xf32>
    %260 = vector.extract_strided_slice %2 {offsets = [4, 0], sizes = [1, 512], strides = [1, 1]} : vector<27x512xf32> to vector<1x512xf32>
    %261 = vector.broadcast %260 : vector<1x512xf32> to vector<4x512xf32>
    %262 = arith.mulf %259, %261 : vector<4x512xf32>
    %263 = arith.addf %255, %262 : vector<4x512xf32>
    %264 = vector.extract_strided_slice %222 {offsets = [20, 0], sizes = [4, 512], strides = [1, 1]} : vector<108x512xf32> to vector<4x512xf32>
    %265 = vector.extract_strided_slice %264 {offsets = [0, 449], sizes = [4, 63], strides = [1, 1]} : vector<4x512xf32> to vector<4x63xf32>
    %266 = vector.extract_strided_slice %264 {offsets = [0, 0], sizes = [4, 449], strides = [1, 1]} : vector<4x512xf32> to vector<4x449xf32>
    %267 = tpu.concatenate %265, %266 in 1 : vector<4x63xf32>, vector<4x449xf32> -> vector<4x512xf32>
    %268 = vector.extract_strided_slice %2 {offsets = [5, 0], sizes = [1, 512], strides = [1, 1]} : vector<27x512xf32> to vector<1x512xf32>
    %269 = vector.broadcast %268 : vector<1x512xf32> to vector<4x512xf32>
    %270 = arith.mulf %267, %269 : vector<4x512xf32>
    %271 = arith.addf %263, %270 : vector<4x512xf32>
    %272 = vector.extract_strided_slice %222 {offsets = [24, 0], sizes = [4, 512], strides = [1, 1]} : vector<108x512xf32> to vector<4x512xf32>
    %273 = vector.extract_strided_slice %272 {offsets = [0, 455], sizes = [4, 57], strides = [1, 1]} : vector<4x512xf32> to vector<4x57xf32>
    %274 = vector.extract_strided_slice %272 {offsets = [0, 0], sizes = [4, 455], strides = [1, 1]} : vector<4x512xf32> to vector<4x455xf32>
    %275 = tpu.concatenate %273, %274 in 1 : vector<4x57xf32>, vector<4x455xf32> -> vector<4x512xf32>
    %276 = vector.extract_strided_slice %2 {offsets = [6, 0], sizes = [1, 512], strides = [1, 1]} : vector<27x512xf32> to vector<1x512xf32>
    %277 = vector.broadcast %276 : vector<1x512xf32> to vector<4x512xf32>
    %278 = arith.mulf %275, %277 : vector<4x512xf32>
    %279 = arith.addf %271, %278 : vector<4x512xf32>
    %280 = vector.extract_strided_slice %222 {offsets = [28, 0], sizes = [4, 512], strides = [1, 1]} : vector<108x512xf32> to vector<4x512xf32>
    %281 = vector.extract_strided_slice %280 {offsets = [0, 456], sizes = [4, 56], strides = [1, 1]} : vector<4x512xf32> to vector<4x56xf32>
    %282 = vector.extract_strided_slice %280 {offsets = [0, 0], sizes = [4, 456], strides = [1, 1]} : vector<4x512xf32> to vector<4x456xf32>
    %283 = tpu.concatenate %281, %282 in 1 : vector<4x56xf32>, vector<4x456xf32> -> vector<4x512xf32>
    %284 = vector.extract_strided_slice %2 {offsets = [7, 0], sizes = [1, 512], strides = [1, 1]} : vector<27x512xf32> to vector<1x512xf32>
    %285 = vector.broadcast %284 : vector<1x512xf32> to vector<4x512xf32>
    %286 = arith.mulf %283, %285 : vector<4x512xf32>
    %287 = arith.addf %279, %286 : vector<4x512xf32>
    %288 = vector.extract_strided_slice %222 {offsets = [32, 0], sizes = [4, 512], strides = [1, 1]} : vector<108x512xf32> to vector<4x512xf32>
    %289 = vector.extract_strided_slice %288 {offsets = [0, 457], sizes = [4, 55], strides = [1, 1]} : vector<4x512xf32> to vector<4x55xf32>
    %290 = vector.extract_strided_slice %288 {offsets = [0, 0], sizes = [4, 457], strides = [1, 1]} : vector<4x512xf32> to vector<4x457xf32>
    %291 = tpu.concatenate %289, %290 in 1 : vector<4x55xf32>, vector<4x457xf32> -> vector<4x512xf32>
    %292 = vector.extract_strided_slice %2 {offsets = [8, 0], sizes = [1, 512], strides = [1, 1]} : vector<27x512xf32> to vector<1x512xf32>
    %293 = vector.broadcast %292 : vector<1x512xf32> to vector<4x512xf32>
    %294 = arith.mulf %291, %293 : vector<4x512xf32>
    %295 = arith.addf %287, %294 : vector<4x512xf32>
    %296 = vector.extract_strided_slice %222 {offsets = [36, 0], sizes = [4, 512], strides = [1, 1]} : vector<108x512xf32> to vector<4x512xf32>
    %297 = vector.extract_strided_slice %296 {offsets = [0, 503], sizes = [4, 9], strides = [1, 1]} : vector<4x512xf32> to vector<4x9xf32>
    %298 = vector.extract_strided_slice %296 {offsets = [0, 0], sizes = [4, 503], strides = [1, 1]} : vector<4x512xf32> to vector<4x503xf32>
    %299 = tpu.concatenate %297, %298 in 1 : vector<4x9xf32>, vector<4x503xf32> -> vector<4x512xf32>
    %300 = vector.extract_strided_slice %2 {offsets = [9, 0], sizes = [1, 512], strides = [1, 1]} : vector<27x512xf32> to vector<1x512xf32>
    %301 = vector.broadcast %300 : vector<1x512xf32> to vector<4x512xf32>
    %302 = arith.mulf %299, %301 : vector<4x512xf32>
    %303 = arith.addf %295, %302 : vector<4x512xf32>
    %304 = vector.extract_strided_slice %222 {offsets = [40, 0], sizes = [4, 512], strides = [1, 1]} : vector<108x512xf32> to vector<4x512xf32>
    %305 = vector.extract_strided_slice %304 {offsets = [0, 504], sizes = [4, 8], strides = [1, 1]} : vector<4x512xf32> to vector<4x8xf32>
    %306 = vector.extract_strided_slice %304 {offsets = [0, 0], sizes = [4, 504], strides = [1, 1]} : vector<4x512xf32> to vector<4x504xf32>
    %307 = tpu.concatenate %305, %306 in 1 : vector<4x8xf32>, vector<4x504xf32> -> vector<4x512xf32>
    %308 = vector.extract_strided_slice %2 {offsets = [10, 0], sizes = [1, 512], strides = [1, 1]} : vector<27x512xf32> to vector<1x512xf32>
    %309 = vector.broadcast %308 : vector<1x512xf32> to vector<4x512xf32>
    %310 = arith.mulf %307, %309 : vector<4x512xf32>
    %311 = arith.addf %303, %310 : vector<4x512xf32>
    %312 = vector.extract_strided_slice %222 {offsets = [44, 0], sizes = [4, 512], strides = [1, 1]} : vector<108x512xf32> to vector<4x512xf32>
    %313 = vector.extract_strided_slice %312 {offsets = [0, 505], sizes = [4, 7], strides = [1, 1]} : vector<4x512xf32> to vector<4x7xf32>
    %314 = vector.extract_strided_slice %312 {offsets = [0, 0], sizes = [4, 505], strides = [1, 1]} : vector<4x512xf32> to vector<4x505xf32>
    %315 = tpu.concatenate %313, %314 in 1 : vector<4x7xf32>, vector<4x505xf32> -> vector<4x512xf32>
    %316 = vector.extract_strided_slice %2 {offsets = [11, 0], sizes = [1, 512], strides = [1, 1]} : vector<27x512xf32> to vector<1x512xf32>
    %317 = vector.broadcast %316 : vector<1x512xf32> to vector<4x512xf32>
    %318 = arith.mulf %315, %317 : vector<4x512xf32>
    %319 = arith.addf %311, %318 : vector<4x512xf32>
    %320 = vector.extract_strided_slice %222 {offsets = [48, 0], sizes = [4, 512], strides = [1, 1]} : vector<108x512xf32> to vector<4x512xf32>
    %321 = vector.extract_strided_slice %320 {offsets = [0, 511], sizes = [4, 1], strides = [1, 1]} : vector<4x512xf32> to vector<4x1xf32>
    %322 = vector.extract_strided_slice %320 {offsets = [0, 0], sizes = [4, 511], strides = [1, 1]} : vector<4x512xf32> to vector<4x511xf32>
    %323 = tpu.concatenate %321, %322 in 1 : vector<4x1xf32>, vector<4x511xf32> -> vector<4x512xf32>
    %324 = vector.extract_strided_slice %2 {offsets = [12, 0], sizes = [1, 512], strides = [1, 1]} : vector<27x512xf32> to vector<1x512xf32>
    %325 = vector.broadcast %324 : vector<1x512xf32> to vector<4x512xf32>
    %326 = arith.mulf %323, %325 : vector<4x512xf32>
    %327 = arith.addf %319, %326 : vector<4x512xf32>
    %328 = vector.extract_strided_slice %222 {offsets = [52, 0], sizes = [4, 512], strides = [1, 1]} : vector<108x512xf32> to vector<4x512xf32>
    %329 = arith.addf %327, %328 : vector<4x512xf32>
    %330 = vector.extract_strided_slice %222 {offsets = [56, 0], sizes = [4, 512], strides = [1, 1]} : vector<108x512xf32> to vector<4x512xf32>
    %331 = vector.extract_strided_slice %330 {offsets = [0, 1], sizes = [4, 511], strides = [1, 1]} : vector<4x512xf32> to vector<4x511xf32>
    %332 = vector.extract_strided_slice %330 {offsets = [0, 0], sizes = [4, 1], strides = [1, 1]} : vector<4x512xf32> to vector<4x1xf32>
    %333 = tpu.concatenate %331, %332 in 1 : vector<4x511xf32>, vector<4x1xf32> -> vector<4x512xf32>
    %334 = vector.extract_strided_slice %2 {offsets = [14, 0], sizes = [1, 512], strides = [1, 1]} : vector<27x512xf32> to vector<1x512xf32>
    %335 = vector.broadcast %334 : vector<1x512xf32> to vector<4x512xf32>
    %336 = arith.mulf %333, %335 : vector<4x512xf32>
    %337 = arith.addf %329, %336 : vector<4x512xf32>
    %338 = vector.extract_strided_slice %222 {offsets = [60, 0], sizes = [4, 512], strides = [1, 1]} : vector<108x512xf32> to vector<4x512xf32>
    %339 = vector.extract_strided_slice %338 {offsets = [0, 7], sizes = [4, 505], strides = [1, 1]} : vector<4x512xf32> to vector<4x505xf32>
    %340 = vector.extract_strided_slice %338 {offsets = [0, 0], sizes = [4, 7], strides = [1, 1]} : vector<4x512xf32> to vector<4x7xf32>
    %341 = tpu.concatenate %339, %340 in 1 : vector<4x505xf32>, vector<4x7xf32> -> vector<4x512xf32>
    %342 = vector.extract_strided_slice %2 {offsets = [15, 0], sizes = [1, 512], strides = [1, 1]} : vector<27x512xf32> to vector<1x512xf32>
    %343 = vector.broadcast %342 : vector<1x512xf32> to vector<4x512xf32>
    %344 = arith.mulf %341, %343 : vector<4x512xf32>
    %345 = arith.addf %337, %344 : vector<4x512xf32>
    %346 = vector.extract_strided_slice %222 {offsets = [64, 0], sizes = [4, 512], strides = [1, 1]} : vector<108x512xf32> to vector<4x512xf32>
    %347 = vector.extract_strided_slice %346 {offsets = [0, 8], sizes = [4, 504], strides = [1, 1]} : vector<4x512xf32> to vector<4x504xf32>
    %348 = vector.extract_strided_slice %346 {offsets = [0, 0], sizes = [4, 8], strides = [1, 1]} : vector<4x512xf32> to vector<4x8xf32>
    %349 = tpu.concatenate %347, %348 in 1 : vector<4x504xf32>, vector<4x8xf32> -> vector<4x512xf32>
    %350 = vector.extract_strided_slice %2 {offsets = [16, 0], sizes = [1, 512], strides = [1, 1]} : vector<27x512xf32> to vector<1x512xf32>
    %351 = vector.broadcast %350 : vector<1x512xf32> to vector<4x512xf32>
    %352 = arith.mulf %349, %351 : vector<4x512xf32>
    %353 = arith.addf %345, %352 : vector<4x512xf32>
    %354 = vector.extract_strided_slice %222 {offsets = [68, 0], sizes = [4, 512], strides = [1, 1]} : vector<108x512xf32> to vector<4x512xf32>
    %355 = vector.extract_strided_slice %354 {offsets = [0, 9], sizes = [4, 503], strides = [1, 1]} : vector<4x512xf32> to vector<4x503xf32>
    %356 = vector.extract_strided_slice %354 {offsets = [0, 0], sizes = [4, 9], strides = [1, 1]} : vector<4x512xf32> to vector<4x9xf32>
    %357 = tpu.concatenate %355, %356 in 1 : vector<4x503xf32>, vector<4x9xf32> -> vector<4x512xf32>
    %358 = vector.extract_strided_slice %2 {offsets = [17, 0], sizes = [1, 512], strides = [1, 1]} : vector<27x512xf32> to vector<1x512xf32>
    %359 = vector.broadcast %358 : vector<1x512xf32> to vector<4x512xf32>
    %360 = arith.mulf %357, %359 : vector<4x512xf32>
    %361 = arith.addf %353, %360 : vector<4x512xf32>
    %362 = vector.extract_strided_slice %222 {offsets = [72, 0], sizes = [4, 512], strides = [1, 1]} : vector<108x512xf32> to vector<4x512xf32>
    %363 = vector.extract_strided_slice %362 {offsets = [0, 55], sizes = [4, 457], strides = [1, 1]} : vector<4x512xf32> to vector<4x457xf32>
    %364 = vector.extract_strided_slice %362 {offsets = [0, 0], sizes = [4, 55], strides = [1, 1]} : vector<4x512xf32> to vector<4x55xf32>
    %365 = tpu.concatenate %363, %364 in 1 : vector<4x457xf32>, vector<4x55xf32> -> vector<4x512xf32>
    %366 = vector.extract_strided_slice %2 {offsets = [18, 0], sizes = [1, 512], strides = [1, 1]} : vector<27x512xf32> to vector<1x512xf32>
    %367 = vector.broadcast %366 : vector<1x512xf32> to vector<4x512xf32>
    %368 = arith.mulf %365, %367 : vector<4x512xf32>
    %369 = arith.addf %361, %368 : vector<4x512xf32>
    %370 = vector.extract_strided_slice %222 {offsets = [76, 0], sizes = [4, 512], strides = [1, 1]} : vector<108x512xf32> to vector<4x512xf32>
    %371 = vector.extract_strided_slice %370 {offsets = [0, 56], sizes = [4, 456], strides = [1, 1]} : vector<4x512xf32> to vector<4x456xf32>
    %372 = vector.extract_strided_slice %370 {offsets = [0, 0], sizes = [4, 56], strides = [1, 1]} : vector<4x512xf32> to vector<4x56xf32>
    %373 = tpu.concatenate %371, %372 in 1 : vector<4x456xf32>, vector<4x56xf32> -> vector<4x512xf32>
    %374 = vector.extract_strided_slice %2 {offsets = [19, 0], sizes = [1, 512], strides = [1, 1]} : vector<27x512xf32> to vector<1x512xf32>
    %375 = vector.broadcast %374 : vector<1x512xf32> to vector<4x512xf32>
    %376 = arith.mulf %373, %375 : vector<4x512xf32>
    %377 = arith.addf %369, %376 : vector<4x512xf32>
    %378 = vector.extract_strided_slice %222 {offsets = [80, 0], sizes = [4, 512], strides = [1, 1]} : vector<108x512xf32> to vector<4x512xf32>
    %379 = vector.extract_strided_slice %378 {offsets = [0, 57], sizes = [4, 455], strides = [1, 1]} : vector<4x512xf32> to vector<4x455xf32>
    %380 = vector.extract_strided_slice %378 {offsets = [0, 0], sizes = [4, 57], strides = [1, 1]} : vector<4x512xf32> to vector<4x57xf32>
    %381 = tpu.concatenate %379, %380 in 1 : vector<4x455xf32>, vector<4x57xf32> -> vector<4x512xf32>
    %382 = vector.extract_strided_slice %2 {offsets = [20, 0], sizes = [1, 512], strides = [1, 1]} : vector<27x512xf32> to vector<1x512xf32>
    %383 = vector.broadcast %382 : vector<1x512xf32> to vector<4x512xf32>
    %384 = arith.mulf %381, %383 : vector<4x512xf32>
    %385 = arith.addf %377, %384 : vector<4x512xf32>
    %386 = vector.extract_strided_slice %222 {offsets = [84, 0], sizes = [4, 512], strides = [1, 1]} : vector<108x512xf32> to vector<4x512xf32>
    %387 = vector.extract_strided_slice %386 {offsets = [0, 63], sizes = [4, 449], strides = [1, 1]} : vector<4x512xf32> to vector<4x449xf32>
    %388 = vector.extract_strided_slice %386 {offsets = [0, 0], sizes = [4, 63], strides = [1, 1]} : vector<4x512xf32> to vector<4x63xf32>
    %389 = tpu.concatenate %387, %388 in 1 : vector<4x449xf32>, vector<4x63xf32> -> vector<4x512xf32>
    %390 = vector.extract_strided_slice %2 {offsets = [21, 0], sizes = [1, 512], strides = [1, 1]} : vector<27x512xf32> to vector<1x512xf32>
    %391 = vector.broadcast %390 : vector<1x512xf32> to vector<4x512xf32>
    %392 = arith.mulf %389, %391 : vector<4x512xf32>
    %393 = arith.addf %385, %392 : vector<4x512xf32>
    %394 = vector.extract_strided_slice %222 {offsets = [88, 0], sizes = [4, 512], strides = [1, 1]} : vector<108x512xf32> to vector<4x512xf32>
    %395 = vector.extract_strided_slice %394 {offsets = [0, 64], sizes = [4, 448], strides = [1, 1]} : vector<4x512xf32> to vector<4x448xf32>
    %396 = vector.extract_strided_slice %394 {offsets = [0, 0], sizes = [4, 64], strides = [1, 1]} : vector<4x512xf32> to vector<4x64xf32>
    %397 = tpu.concatenate %395, %396 in 1 : vector<4x448xf32>, vector<4x64xf32> -> vector<4x512xf32>
    %398 = vector.extract_strided_slice %2 {offsets = [22, 0], sizes = [1, 512], strides = [1, 1]} : vector<27x512xf32> to vector<1x512xf32>
    %399 = vector.broadcast %398 : vector<1x512xf32> to vector<4x512xf32>
    %400 = arith.mulf %397, %399 : vector<4x512xf32>
    %401 = arith.addf %393, %400 : vector<4x512xf32>
    %402 = vector.extract_strided_slice %222 {offsets = [92, 0], sizes = [4, 512], strides = [1, 1]} : vector<108x512xf32> to vector<4x512xf32>
    %403 = vector.extract_strided_slice %402 {offsets = [0, 65], sizes = [4, 447], strides = [1, 1]} : vector<4x512xf32> to vector<4x447xf32>
    %404 = vector.extract_strided_slice %402 {offsets = [0, 0], sizes = [4, 65], strides = [1, 1]} : vector<4x512xf32> to vector<4x65xf32>
    %405 = tpu.concatenate %403, %404 in 1 : vector<4x447xf32>, vector<4x65xf32> -> vector<4x512xf32>
    %406 = vector.extract_strided_slice %2 {offsets = [23, 0], sizes = [1, 512], strides = [1, 1]} : vector<27x512xf32> to vector<1x512xf32>
    %407 = vector.broadcast %406 : vector<1x512xf32> to vector<4x512xf32>
    %408 = arith.mulf %405, %407 : vector<4x512xf32>
    %409 = arith.addf %401, %408 : vector<4x512xf32>
    %410 = vector.extract_strided_slice %222 {offsets = [96, 0], sizes = [4, 512], strides = [1, 1]} : vector<108x512xf32> to vector<4x512xf32>
    %411 = vector.extract_strided_slice %410 {offsets = [0, 71], sizes = [4, 441], strides = [1, 1]} : vector<4x512xf32> to vector<4x441xf32>
    %412 = vector.extract_strided_slice %410 {offsets = [0, 0], sizes = [4, 71], strides = [1, 1]} : vector<4x512xf32> to vector<4x71xf32>
    %413 = tpu.concatenate %411, %412 in 1 : vector<4x441xf32>, vector<4x71xf32> -> vector<4x512xf32>
    %414 = vector.extract_strided_slice %2 {offsets = [24, 0], sizes = [1, 512], strides = [1, 1]} : vector<27x512xf32> to vector<1x512xf32>
    %415 = vector.broadcast %414 : vector<1x512xf32> to vector<4x512xf32>
    %416 = arith.mulf %413, %415 : vector<4x512xf32>
    %417 = arith.addf %409, %416 : vector<4x512xf32>
    %418 = vector.extract_strided_slice %222 {offsets = [100, 0], sizes = [4, 512], strides = [1, 1]} : vector<108x512xf32> to vector<4x512xf32>
    %419 = vector.extract_strided_slice %418 {offsets = [0, 72], sizes = [4, 440], strides = [1, 1]} : vector<4x512xf32> to vector<4x440xf32>
    %420 = vector.extract_strided_slice %418 {offsets = [0, 0], sizes = [4, 72], strides = [1, 1]} : vector<4x512xf32> to vector<4x72xf32>
    %421 = tpu.concatenate %419, %420 in 1 : vector<4x440xf32>, vector<4x72xf32> -> vector<4x512xf32>
    %422 = vector.extract_strided_slice %2 {offsets = [25, 0], sizes = [1, 512], strides = [1, 1]} : vector<27x512xf32> to vector<1x512xf32>
    %423 = vector.broadcast %422 : vector<1x512xf32> to vector<4x512xf32>
    %424 = arith.mulf %421, %423 : vector<4x512xf32>
    %425 = arith.addf %417, %424 : vector<4x512xf32>
    %426 = vector.extract_strided_slice %222 {offsets = [104, 0], sizes = [4, 512], strides = [1, 1]} : vector<108x512xf32> to vector<4x512xf32>
    %427 = vector.extract_strided_slice %426 {offsets = [0, 73], sizes = [4, 439], strides = [1, 1]} : vector<4x512xf32> to vector<4x439xf32>
    %428 = vector.extract_strided_slice %426 {offsets = [0, 0], sizes = [4, 73], strides = [1, 1]} : vector<4x512xf32> to vector<4x73xf32>
    %429 = tpu.concatenate %427, %428 in 1 : vector<4x439xf32>, vector<4x73xf32> -> vector<4x512xf32>
    %430 = vector.extract_strided_slice %2 {offsets = [26, 0], sizes = [1, 512], strides = [1, 1]} : vector<27x512xf32> to vector<1x512xf32>
    %431 = vector.broadcast %430 : vector<1x512xf32> to vector<4x512xf32>
    %432 = arith.mulf %429, %431 : vector<4x512xf32>
    %433 = arith.addf %425, %432 : vector<4x512xf32>
    %c0_14 = arith.constant 0 : index
    %c0_15 = arith.constant 0 : index
    %434 = vector.load %arg6[%c0_14, %c0_15] : memref<4x1xf32, #tpu.memory_space<vmem>>, vector<4x1xf32>
    %435 = vector.broadcast %434 : vector<4x1xf32> to vector<4x512xf32>
    %436 = arith.addf %433, %435 : vector<4x512xf32>
    %cst_16 = arith.constant 0.000000e+00 : f32
    %437 = vector.broadcast %cst_16 : f32 to vector<4x512xf32>
    %438 = arith.maximumf %436, %437 : vector<4x512xf32>
    %c0_17 = arith.constant 0 : index
    %c0_18 = arith.constant 0 : index
    %439 = vector.load %arg7[%c0_17, %c0_18] : memref<2x8xf32, #tpu.memory_space<vmem>>, vector<2x8xf32>
    %cst_19 = arith.constant dense<0.000000e+00> : vector<2x512xf32>
    %440 = tpu.matmul %439, %1, %cst_19 {dimension_numbers = #tpu.dot_dimension_numbers<[1], [0], [0], [1], [0, 0, 1, 1], [], []>} : vector<2x8xf32>, vector<8x512xf32>, vector<2x512xf32> -> vector<2x512xf32>
    %c0_20 = arith.constant 0 : index
    %c0_21 = arith.constant 0 : index
    %441 = vector.load %arg8[%c0_20, %c0_21] : memref<2x1xf32, #tpu.memory_space<vmem>>, vector<2x1xf32>
    %442 = vector.broadcast %441 : vector<2x1xf32> to vector<2x512xf32>
    %443 = arith.addf %440, %442 : vector<2x512xf32>
    %cst_22 = arith.constant 0.000000e+00 : f32
    %444 = vector.broadcast %cst_22 : f32 to vector<2x512xf32>
    %445 = arith.maximumf %443, %444 : vector<2x512xf32>
    %c0_23 = arith.constant 0 : index
    %c0_24 = arith.constant 0 : index
    %446 = vector.load %arg9[%c0_23, %c0_24] : memref<54x2xf32, #tpu.memory_space<vmem>>, vector<54x2xf32>
    %cst_25 = arith.constant dense<0.000000e+00> : vector<54x512xf32>
    %447 = tpu.matmul %446, %445, %cst_25 {dimension_numbers = #tpu.dot_dimension_numbers<[1], [0], [0], [1], [0, 0, 1, 1], [], []>} : vector<54x2xf32>, vector<2x512xf32>, vector<54x512xf32> -> vector<54x512xf32>
    %cst_26 = arith.constant 0.000000e+00 : f32
    %448 = vector.broadcast %cst_26 : f32 to vector<2x512xf32>
    %449 = vector.extract_strided_slice %447 {offsets = [0, 0], sizes = [2, 512], strides = [1, 1]} : vector<54x512xf32> to vector<2x512xf32>
    %450 = vector.extract_strided_slice %449 {offsets = [0, 439], sizes = [2, 73], strides = [1, 1]} : vector<2x512xf32> to vector<2x73xf32>
    %451 = vector.extract_strided_slice %449 {offsets = [0, 0], sizes = [2, 439], strides = [1, 1]} : vector<2x512xf32> to vector<2x439xf32>
    %452 = tpu.concatenate %450, %451 in 1 : vector<2x73xf32>, vector<2x439xf32> -> vector<2x512xf32>
    %453 = vector.extract_strided_slice %2 {offsets = [0, 0], sizes = [1, 512], strides = [1, 1]} : vector<27x512xf32> to vector<1x512xf32>
    %454 = vector.broadcast %453 : vector<1x512xf32> to vector<2x512xf32>
    %455 = arith.mulf %452, %454 : vector<2x512xf32>
    %456 = arith.addf %448, %455 : vector<2x512xf32>
    %457 = vector.extract_strided_slice %447 {offsets = [2, 0], sizes = [2, 512], strides = [1, 1]} : vector<54x512xf32> to vector<2x512xf32>
    %458 = vector.extract_strided_slice %457 {offsets = [0, 440], sizes = [2, 72], strides = [1, 1]} : vector<2x512xf32> to vector<2x72xf32>
    %459 = vector.extract_strided_slice %457 {offsets = [0, 0], sizes = [2, 440], strides = [1, 1]} : vector<2x512xf32> to vector<2x440xf32>
    %460 = tpu.concatenate %458, %459 in 1 : vector<2x72xf32>, vector<2x440xf32> -> vector<2x512xf32>
    %461 = vector.extract_strided_slice %2 {offsets = [1, 0], sizes = [1, 512], strides = [1, 1]} : vector<27x512xf32> to vector<1x512xf32>
    %462 = vector.broadcast %461 : vector<1x512xf32> to vector<2x512xf32>
    %463 = arith.mulf %460, %462 : vector<2x512xf32>
    %464 = arith.addf %456, %463 : vector<2x512xf32>
    %465 = vector.extract_strided_slice %447 {offsets = [4, 0], sizes = [2, 512], strides = [1, 1]} : vector<54x512xf32> to vector<2x512xf32>
    %466 = vector.extract_strided_slice %465 {offsets = [0, 441], sizes = [2, 71], strides = [1, 1]} : vector<2x512xf32> to vector<2x71xf32>
    %467 = vector.extract_strided_slice %465 {offsets = [0, 0], sizes = [2, 441], strides = [1, 1]} : vector<2x512xf32> to vector<2x441xf32>
    %468 = tpu.concatenate %466, %467 in 1 : vector<2x71xf32>, vector<2x441xf32> -> vector<2x512xf32>
    %469 = vector.extract_strided_slice %2 {offsets = [2, 0], sizes = [1, 512], strides = [1, 1]} : vector<27x512xf32> to vector<1x512xf32>
    %470 = vector.broadcast %469 : vector<1x512xf32> to vector<2x512xf32>
    %471 = arith.mulf %468, %470 : vector<2x512xf32>
    %472 = arith.addf %464, %471 : vector<2x512xf32>
    %473 = vector.extract_strided_slice %447 {offsets = [6, 0], sizes = [2, 512], strides = [1, 1]} : vector<54x512xf32> to vector<2x512xf32>
    %474 = vector.extract_strided_slice %473 {offsets = [0, 447], sizes = [2, 65], strides = [1, 1]} : vector<2x512xf32> to vector<2x65xf32>
    %475 = vector.extract_strided_slice %473 {offsets = [0, 0], sizes = [2, 447], strides = [1, 1]} : vector<2x512xf32> to vector<2x447xf32>
    %476 = tpu.concatenate %474, %475 in 1 : vector<2x65xf32>, vector<2x447xf32> -> vector<2x512xf32>
    %477 = vector.extract_strided_slice %2 {offsets = [3, 0], sizes = [1, 512], strides = [1, 1]} : vector<27x512xf32> to vector<1x512xf32>
    %478 = vector.broadcast %477 : vector<1x512xf32> to vector<2x512xf32>
    %479 = arith.mulf %476, %478 : vector<2x512xf32>
    %480 = arith.addf %472, %479 : vector<2x512xf32>
    %481 = vector.extract_strided_slice %447 {offsets = [8, 0], sizes = [2, 512], strides = [1, 1]} : vector<54x512xf32> to vector<2x512xf32>
    %482 = vector.extract_strided_slice %481 {offsets = [0, 448], sizes = [2, 64], strides = [1, 1]} : vector<2x512xf32> to vector<2x64xf32>
    %483 = vector.extract_strided_slice %481 {offsets = [0, 0], sizes = [2, 448], strides = [1, 1]} : vector<2x512xf32> to vector<2x448xf32>
    %484 = tpu.concatenate %482, %483 in 1 : vector<2x64xf32>, vector<2x448xf32> -> vector<2x512xf32>
    %485 = vector.extract_strided_slice %2 {offsets = [4, 0], sizes = [1, 512], strides = [1, 1]} : vector<27x512xf32> to vector<1x512xf32>
    %486 = vector.broadcast %485 : vector<1x512xf32> to vector<2x512xf32>
    %487 = arith.mulf %484, %486 : vector<2x512xf32>
    %488 = arith.addf %480, %487 : vector<2x512xf32>
    %489 = vector.extract_strided_slice %447 {offsets = [10, 0], sizes = [2, 512], strides = [1, 1]} : vector<54x512xf32> to vector<2x512xf32>
    %490 = vector.extract_strided_slice %489 {offsets = [0, 449], sizes = [2, 63], strides = [1, 1]} : vector<2x512xf32> to vector<2x63xf32>
    %491 = vector.extract_strided_slice %489 {offsets = [0, 0], sizes = [2, 449], strides = [1, 1]} : vector<2x512xf32> to vector<2x449xf32>
    %492 = tpu.concatenate %490, %491 in 1 : vector<2x63xf32>, vector<2x449xf32> -> vector<2x512xf32>
    %493 = vector.extract_strided_slice %2 {offsets = [5, 0], sizes = [1, 512], strides = [1, 1]} : vector<27x512xf32> to vector<1x512xf32>
    %494 = vector.broadcast %493 : vector<1x512xf32> to vector<2x512xf32>
    %495 = arith.mulf %492, %494 : vector<2x512xf32>
    %496 = arith.addf %488, %495 : vector<2x512xf32>
    %497 = vector.extract_strided_slice %447 {offsets = [12, 0], sizes = [2, 512], strides = [1, 1]} : vector<54x512xf32> to vector<2x512xf32>
    %498 = vector.extract_strided_slice %497 {offsets = [0, 455], sizes = [2, 57], strides = [1, 1]} : vector<2x512xf32> to vector<2x57xf32>
    %499 = vector.extract_strided_slice %497 {offsets = [0, 0], sizes = [2, 455], strides = [1, 1]} : vector<2x512xf32> to vector<2x455xf32>
    %500 = tpu.concatenate %498, %499 in 1 : vector<2x57xf32>, vector<2x455xf32> -> vector<2x512xf32>
    %501 = vector.extract_strided_slice %2 {offsets = [6, 0], sizes = [1, 512], strides = [1, 1]} : vector<27x512xf32> to vector<1x512xf32>
    %502 = vector.broadcast %501 : vector<1x512xf32> to vector<2x512xf32>
    %503 = arith.mulf %500, %502 : vector<2x512xf32>
    %504 = arith.addf %496, %503 : vector<2x512xf32>
    %505 = vector.extract_strided_slice %447 {offsets = [14, 0], sizes = [2, 512], strides = [1, 1]} : vector<54x512xf32> to vector<2x512xf32>
    %506 = vector.extract_strided_slice %505 {offsets = [0, 456], sizes = [2, 56], strides = [1, 1]} : vector<2x512xf32> to vector<2x56xf32>
    %507 = vector.extract_strided_slice %505 {offsets = [0, 0], sizes = [2, 456], strides = [1, 1]} : vector<2x512xf32> to vector<2x456xf32>
    %508 = tpu.concatenate %506, %507 in 1 : vector<2x56xf32>, vector<2x456xf32> -> vector<2x512xf32>
    %509 = vector.extract_strided_slice %2 {offsets = [7, 0], sizes = [1, 512], strides = [1, 1]} : vector<27x512xf32> to vector<1x512xf32>
    %510 = vector.broadcast %509 : vector<1x512xf32> to vector<2x512xf32>
    %511 = arith.mulf %508, %510 : vector<2x512xf32>
    %512 = arith.addf %504, %511 : vector<2x512xf32>
    %513 = vector.extract_strided_slice %447 {offsets = [16, 0], sizes = [2, 512], strides = [1, 1]} : vector<54x512xf32> to vector<2x512xf32>
    %514 = vector.extract_strided_slice %513 {offsets = [0, 457], sizes = [2, 55], strides = [1, 1]} : vector<2x512xf32> to vector<2x55xf32>
    %515 = vector.extract_strided_slice %513 {offsets = [0, 0], sizes = [2, 457], strides = [1, 1]} : vector<2x512xf32> to vector<2x457xf32>
    %516 = tpu.concatenate %514, %515 in 1 : vector<2x55xf32>, vector<2x457xf32> -> vector<2x512xf32>
    %517 = vector.extract_strided_slice %2 {offsets = [8, 0], sizes = [1, 512], strides = [1, 1]} : vector<27x512xf32> to vector<1x512xf32>
    %518 = vector.broadcast %517 : vector<1x512xf32> to vector<2x512xf32>
    %519 = arith.mulf %516, %518 : vector<2x512xf32>
    %520 = arith.addf %512, %519 : vector<2x512xf32>
    %521 = vector.extract_strided_slice %447 {offsets = [18, 0], sizes = [2, 512], strides = [1, 1]} : vector<54x512xf32> to vector<2x512xf32>
    %522 = vector.extract_strided_slice %521 {offsets = [0, 503], sizes = [2, 9], strides = [1, 1]} : vector<2x512xf32> to vector<2x9xf32>
    %523 = vector.extract_strided_slice %521 {offsets = [0, 0], sizes = [2, 503], strides = [1, 1]} : vector<2x512xf32> to vector<2x503xf32>
    %524 = tpu.concatenate %522, %523 in 1 : vector<2x9xf32>, vector<2x503xf32> -> vector<2x512xf32>
    %525 = vector.extract_strided_slice %2 {offsets = [9, 0], sizes = [1, 512], strides = [1, 1]} : vector<27x512xf32> to vector<1x512xf32>
    %526 = vector.broadcast %525 : vector<1x512xf32> to vector<2x512xf32>
    %527 = arith.mulf %524, %526 : vector<2x512xf32>
    %528 = arith.addf %520, %527 : vector<2x512xf32>
    %529 = vector.extract_strided_slice %447 {offsets = [20, 0], sizes = [2, 512], strides = [1, 1]} : vector<54x512xf32> to vector<2x512xf32>
    %530 = vector.extract_strided_slice %529 {offsets = [0, 504], sizes = [2, 8], strides = [1, 1]} : vector<2x512xf32> to vector<2x8xf32>
    %531 = vector.extract_strided_slice %529 {offsets = [0, 0], sizes = [2, 504], strides = [1, 1]} : vector<2x512xf32> to vector<2x504xf32>
    %532 = tpu.concatenate %530, %531 in 1 : vector<2x8xf32>, vector<2x504xf32> -> vector<2x512xf32>
    %533 = vector.extract_strided_slice %2 {offsets = [10, 0], sizes = [1, 512], strides = [1, 1]} : vector<27x512xf32> to vector<1x512xf32>
    %534 = vector.broadcast %533 : vector<1x512xf32> to vector<2x512xf32>
    %535 = arith.mulf %532, %534 : vector<2x512xf32>
    %536 = arith.addf %528, %535 : vector<2x512xf32>
    %537 = vector.extract_strided_slice %447 {offsets = [22, 0], sizes = [2, 512], strides = [1, 1]} : vector<54x512xf32> to vector<2x512xf32>
    %538 = vector.extract_strided_slice %537 {offsets = [0, 505], sizes = [2, 7], strides = [1, 1]} : vector<2x512xf32> to vector<2x7xf32>
    %539 = vector.extract_strided_slice %537 {offsets = [0, 0], sizes = [2, 505], strides = [1, 1]} : vector<2x512xf32> to vector<2x505xf32>
    %540 = tpu.concatenate %538, %539 in 1 : vector<2x7xf32>, vector<2x505xf32> -> vector<2x512xf32>
    %541 = vector.extract_strided_slice %2 {offsets = [11, 0], sizes = [1, 512], strides = [1, 1]} : vector<27x512xf32> to vector<1x512xf32>
    %542 = vector.broadcast %541 : vector<1x512xf32> to vector<2x512xf32>
    %543 = arith.mulf %540, %542 : vector<2x512xf32>
    %544 = arith.addf %536, %543 : vector<2x512xf32>
    %545 = vector.extract_strided_slice %447 {offsets = [24, 0], sizes = [2, 512], strides = [1, 1]} : vector<54x512xf32> to vector<2x512xf32>
    %546 = vector.extract_strided_slice %545 {offsets = [0, 511], sizes = [2, 1], strides = [1, 1]} : vector<2x512xf32> to vector<2x1xf32>
    %547 = vector.extract_strided_slice %545 {offsets = [0, 0], sizes = [2, 511], strides = [1, 1]} : vector<2x512xf32> to vector<2x511xf32>
    %548 = tpu.concatenate %546, %547 in 1 : vector<2x1xf32>, vector<2x511xf32> -> vector<2x512xf32>
    %549 = vector.extract_strided_slice %2 {offsets = [12, 0], sizes = [1, 512], strides = [1, 1]} : vector<27x512xf32> to vector<1x512xf32>
    %550 = vector.broadcast %549 : vector<1x512xf32> to vector<2x512xf32>
    %551 = arith.mulf %548, %550 : vector<2x512xf32>
    %552 = arith.addf %544, %551 : vector<2x512xf32>
    %553 = vector.extract_strided_slice %447 {offsets = [26, 0], sizes = [2, 512], strides = [1, 1]} : vector<54x512xf32> to vector<2x512xf32>
    %554 = arith.addf %552, %553 : vector<2x512xf32>
    %555 = vector.extract_strided_slice %447 {offsets = [28, 0], sizes = [2, 512], strides = [1, 1]} : vector<54x512xf32> to vector<2x512xf32>
    %556 = vector.extract_strided_slice %555 {offsets = [0, 1], sizes = [2, 511], strides = [1, 1]} : vector<2x512xf32> to vector<2x511xf32>
    %557 = vector.extract_strided_slice %555 {offsets = [0, 0], sizes = [2, 1], strides = [1, 1]} : vector<2x512xf32> to vector<2x1xf32>
    %558 = tpu.concatenate %556, %557 in 1 : vector<2x511xf32>, vector<2x1xf32> -> vector<2x512xf32>
    %559 = vector.extract_strided_slice %2 {offsets = [14, 0], sizes = [1, 512], strides = [1, 1]} : vector<27x512xf32> to vector<1x512xf32>
    %560 = vector.broadcast %559 : vector<1x512xf32> to vector<2x512xf32>
    %561 = arith.mulf %558, %560 : vector<2x512xf32>
    %562 = arith.addf %554, %561 : vector<2x512xf32>
    %563 = vector.extract_strided_slice %447 {offsets = [30, 0], sizes = [2, 512], strides = [1, 1]} : vector<54x512xf32> to vector<2x512xf32>
    %564 = vector.extract_strided_slice %563 {offsets = [0, 7], sizes = [2, 505], strides = [1, 1]} : vector<2x512xf32> to vector<2x505xf32>
    %565 = vector.extract_strided_slice %563 {offsets = [0, 0], sizes = [2, 7], strides = [1, 1]} : vector<2x512xf32> to vector<2x7xf32>
    %566 = tpu.concatenate %564, %565 in 1 : vector<2x505xf32>, vector<2x7xf32> -> vector<2x512xf32>
    %567 = vector.extract_strided_slice %2 {offsets = [15, 0], sizes = [1, 512], strides = [1, 1]} : vector<27x512xf32> to vector<1x512xf32>
    %568 = vector.broadcast %567 : vector<1x512xf32> to vector<2x512xf32>
    %569 = arith.mulf %566, %568 : vector<2x512xf32>
    %570 = arith.addf %562, %569 : vector<2x512xf32>
    %571 = vector.extract_strided_slice %447 {offsets = [32, 0], sizes = [2, 512], strides = [1, 1]} : vector<54x512xf32> to vector<2x512xf32>
    %572 = vector.extract_strided_slice %571 {offsets = [0, 8], sizes = [2, 504], strides = [1, 1]} : vector<2x512xf32> to vector<2x504xf32>
    %573 = vector.extract_strided_slice %571 {offsets = [0, 0], sizes = [2, 8], strides = [1, 1]} : vector<2x512xf32> to vector<2x8xf32>
    %574 = tpu.concatenate %572, %573 in 1 : vector<2x504xf32>, vector<2x8xf32> -> vector<2x512xf32>
    %575 = vector.extract_strided_slice %2 {offsets = [16, 0], sizes = [1, 512], strides = [1, 1]} : vector<27x512xf32> to vector<1x512xf32>
    %576 = vector.broadcast %575 : vector<1x512xf32> to vector<2x512xf32>
    %577 = arith.mulf %574, %576 : vector<2x512xf32>
    %578 = arith.addf %570, %577 : vector<2x512xf32>
    %579 = vector.extract_strided_slice %447 {offsets = [34, 0], sizes = [2, 512], strides = [1, 1]} : vector<54x512xf32> to vector<2x512xf32>
    %580 = vector.extract_strided_slice %579 {offsets = [0, 9], sizes = [2, 503], strides = [1, 1]} : vector<2x512xf32> to vector<2x503xf32>
    %581 = vector.extract_strided_slice %579 {offsets = [0, 0], sizes = [2, 9], strides = [1, 1]} : vector<2x512xf32> to vector<2x9xf32>
    %582 = tpu.concatenate %580, %581 in 1 : vector<2x503xf32>, vector<2x9xf32> -> vector<2x512xf32>
    %583 = vector.extract_strided_slice %2 {offsets = [17, 0], sizes = [1, 512], strides = [1, 1]} : vector<27x512xf32> to vector<1x512xf32>
    %584 = vector.broadcast %583 : vector<1x512xf32> to vector<2x512xf32>
    %585 = arith.mulf %582, %584 : vector<2x512xf32>
    %586 = arith.addf %578, %585 : vector<2x512xf32>
    %587 = vector.extract_strided_slice %447 {offsets = [36, 0], sizes = [2, 512], strides = [1, 1]} : vector<54x512xf32> to vector<2x512xf32>
    %588 = vector.extract_strided_slice %587 {offsets = [0, 55], sizes = [2, 457], strides = [1, 1]} : vector<2x512xf32> to vector<2x457xf32>
    %589 = vector.extract_strided_slice %587 {offsets = [0, 0], sizes = [2, 55], strides = [1, 1]} : vector<2x512xf32> to vector<2x55xf32>
    %590 = tpu.concatenate %588, %589 in 1 : vector<2x457xf32>, vector<2x55xf32> -> vector<2x512xf32>
    %591 = vector.extract_strided_slice %2 {offsets = [18, 0], sizes = [1, 512], strides = [1, 1]} : vector<27x512xf32> to vector<1x512xf32>
    %592 = vector.broadcast %591 : vector<1x512xf32> to vector<2x512xf32>
    %593 = arith.mulf %590, %592 : vector<2x512xf32>
    %594 = arith.addf %586, %593 : vector<2x512xf32>
    %595 = vector.extract_strided_slice %447 {offsets = [38, 0], sizes = [2, 512], strides = [1, 1]} : vector<54x512xf32> to vector<2x512xf32>
    %596 = vector.extract_strided_slice %595 {offsets = [0, 56], sizes = [2, 456], strides = [1, 1]} : vector<2x512xf32> to vector<2x456xf32>
    %597 = vector.extract_strided_slice %595 {offsets = [0, 0], sizes = [2, 56], strides = [1, 1]} : vector<2x512xf32> to vector<2x56xf32>
    %598 = tpu.concatenate %596, %597 in 1 : vector<2x456xf32>, vector<2x56xf32> -> vector<2x512xf32>
    %599 = vector.extract_strided_slice %2 {offsets = [19, 0], sizes = [1, 512], strides = [1, 1]} : vector<27x512xf32> to vector<1x512xf32>
    %600 = vector.broadcast %599 : vector<1x512xf32> to vector<2x512xf32>
    %601 = arith.mulf %598, %600 : vector<2x512xf32>
    %602 = arith.addf %594, %601 : vector<2x512xf32>
    %603 = vector.extract_strided_slice %447 {offsets = [40, 0], sizes = [2, 512], strides = [1, 1]} : vector<54x512xf32> to vector<2x512xf32>
    %604 = vector.extract_strided_slice %603 {offsets = [0, 57], sizes = [2, 455], strides = [1, 1]} : vector<2x512xf32> to vector<2x455xf32>
    %605 = vector.extract_strided_slice %603 {offsets = [0, 0], sizes = [2, 57], strides = [1, 1]} : vector<2x512xf32> to vector<2x57xf32>
    %606 = tpu.concatenate %604, %605 in 1 : vector<2x455xf32>, vector<2x57xf32> -> vector<2x512xf32>
    %607 = vector.extract_strided_slice %2 {offsets = [20, 0], sizes = [1, 512], strides = [1, 1]} : vector<27x512xf32> to vector<1x512xf32>
    %608 = vector.broadcast %607 : vector<1x512xf32> to vector<2x512xf32>
    %609 = arith.mulf %606, %608 : vector<2x512xf32>
    %610 = arith.addf %602, %609 : vector<2x512xf32>
    %611 = vector.extract_strided_slice %447 {offsets = [42, 0], sizes = [2, 512], strides = [1, 1]} : vector<54x512xf32> to vector<2x512xf32>
    %612 = vector.extract_strided_slice %611 {offsets = [0, 63], sizes = [2, 449], strides = [1, 1]} : vector<2x512xf32> to vector<2x449xf32>
    %613 = vector.extract_strided_slice %611 {offsets = [0, 0], sizes = [2, 63], strides = [1, 1]} : vector<2x512xf32> to vector<2x63xf32>
    %614 = tpu.concatenate %612, %613 in 1 : vector<2x449xf32>, vector<2x63xf32> -> vector<2x512xf32>
    %615 = vector.extract_strided_slice %2 {offsets = [21, 0], sizes = [1, 512], strides = [1, 1]} : vector<27x512xf32> to vector<1x512xf32>
    %616 = vector.broadcast %615 : vector<1x512xf32> to vector<2x512xf32>
    %617 = arith.mulf %614, %616 : vector<2x512xf32>
    %618 = arith.addf %610, %617 : vector<2x512xf32>
    %619 = vector.extract_strided_slice %447 {offsets = [44, 0], sizes = [2, 512], strides = [1, 1]} : vector<54x512xf32> to vector<2x512xf32>
    %620 = vector.extract_strided_slice %619 {offsets = [0, 64], sizes = [2, 448], strides = [1, 1]} : vector<2x512xf32> to vector<2x448xf32>
    %621 = vector.extract_strided_slice %619 {offsets = [0, 0], sizes = [2, 64], strides = [1, 1]} : vector<2x512xf32> to vector<2x64xf32>
    %622 = tpu.concatenate %620, %621 in 1 : vector<2x448xf32>, vector<2x64xf32> -> vector<2x512xf32>
    %623 = vector.extract_strided_slice %2 {offsets = [22, 0], sizes = [1, 512], strides = [1, 1]} : vector<27x512xf32> to vector<1x512xf32>
    %624 = vector.broadcast %623 : vector<1x512xf32> to vector<2x512xf32>
    %625 = arith.mulf %622, %624 : vector<2x512xf32>
    %626 = arith.addf %618, %625 : vector<2x512xf32>
    %627 = vector.extract_strided_slice %447 {offsets = [46, 0], sizes = [2, 512], strides = [1, 1]} : vector<54x512xf32> to vector<2x512xf32>
    %628 = vector.extract_strided_slice %627 {offsets = [0, 65], sizes = [2, 447], strides = [1, 1]} : vector<2x512xf32> to vector<2x447xf32>
    %629 = vector.extract_strided_slice %627 {offsets = [0, 0], sizes = [2, 65], strides = [1, 1]} : vector<2x512xf32> to vector<2x65xf32>
    %630 = tpu.concatenate %628, %629 in 1 : vector<2x447xf32>, vector<2x65xf32> -> vector<2x512xf32>
    %631 = vector.extract_strided_slice %2 {offsets = [23, 0], sizes = [1, 512], strides = [1, 1]} : vector<27x512xf32> to vector<1x512xf32>
    %632 = vector.broadcast %631 : vector<1x512xf32> to vector<2x512xf32>
    %633 = arith.mulf %630, %632 : vector<2x512xf32>
    %634 = arith.addf %626, %633 : vector<2x512xf32>
    %635 = vector.extract_strided_slice %447 {offsets = [48, 0], sizes = [2, 512], strides = [1, 1]} : vector<54x512xf32> to vector<2x512xf32>
    %636 = vector.extract_strided_slice %635 {offsets = [0, 71], sizes = [2, 441], strides = [1, 1]} : vector<2x512xf32> to vector<2x441xf32>
    %637 = vector.extract_strided_slice %635 {offsets = [0, 0], sizes = [2, 71], strides = [1, 1]} : vector<2x512xf32> to vector<2x71xf32>
    %638 = tpu.concatenate %636, %637 in 1 : vector<2x441xf32>, vector<2x71xf32> -> vector<2x512xf32>
    %639 = vector.extract_strided_slice %2 {offsets = [24, 0], sizes = [1, 512], strides = [1, 1]} : vector<27x512xf32> to vector<1x512xf32>
    %640 = vector.broadcast %639 : vector<1x512xf32> to vector<2x512xf32>
    %641 = arith.mulf %638, %640 : vector<2x512xf32>
    %642 = arith.addf %634, %641 : vector<2x512xf32>
    %643 = vector.extract_strided_slice %447 {offsets = [50, 0], sizes = [2, 512], strides = [1, 1]} : vector<54x512xf32> to vector<2x512xf32>
    %644 = vector.extract_strided_slice %643 {offsets = [0, 72], sizes = [2, 440], strides = [1, 1]} : vector<2x512xf32> to vector<2x440xf32>
    %645 = vector.extract_strided_slice %643 {offsets = [0, 0], sizes = [2, 72], strides = [1, 1]} : vector<2x512xf32> to vector<2x72xf32>
    %646 = tpu.concatenate %644, %645 in 1 : vector<2x440xf32>, vector<2x72xf32> -> vector<2x512xf32>
    %647 = vector.extract_strided_slice %2 {offsets = [25, 0], sizes = [1, 512], strides = [1, 1]} : vector<27x512xf32> to vector<1x512xf32>
    %648 = vector.broadcast %647 : vector<1x512xf32> to vector<2x512xf32>
    %649 = arith.mulf %646, %648 : vector<2x512xf32>
    %650 = arith.addf %642, %649 : vector<2x512xf32>
    %651 = vector.extract_strided_slice %447 {offsets = [52, 0], sizes = [2, 512], strides = [1, 1]} : vector<54x512xf32> to vector<2x512xf32>
    %652 = vector.extract_strided_slice %651 {offsets = [0, 73], sizes = [2, 439], strides = [1, 1]} : vector<2x512xf32> to vector<2x439xf32>
    %653 = vector.extract_strided_slice %651 {offsets = [0, 0], sizes = [2, 73], strides = [1, 1]} : vector<2x512xf32> to vector<2x73xf32>
    %654 = tpu.concatenate %652, %653 in 1 : vector<2x439xf32>, vector<2x73xf32> -> vector<2x512xf32>
    %655 = vector.extract_strided_slice %2 {offsets = [26, 0], sizes = [1, 512], strides = [1, 1]} : vector<27x512xf32> to vector<1x512xf32>
    %656 = vector.broadcast %655 : vector<1x512xf32> to vector<2x512xf32>
    %657 = arith.mulf %654, %656 : vector<2x512xf32>
    %658 = arith.addf %650, %657 : vector<2x512xf32>
    %c0_27 = arith.constant 0 : index
    %c0_28 = arith.constant 0 : index
    %659 = vector.load %arg10[%c0_27, %c0_28] : memref<2x1xf32, #tpu.memory_space<vmem>>, vector<2x1xf32>
    %660 = vector.broadcast %659 : vector<2x1xf32> to vector<2x512xf32>
    %661 = arith.addf %658, %660 : vector<2x512xf32>
    %cst_29 = arith.constant 0.000000e+00 : f32
    %662 = vector.broadcast %cst_29 : f32 to vector<2x512xf32>
    %663 = arith.maximumf %661, %662 : vector<2x512xf32>
    %c0_30 = arith.constant 0 : index
    %c0_31 = arith.constant 0 : index
    %664 = vector.load %arg11[%c0_30, %c0_31] : memref<4x2xf32, #tpu.memory_space<vmem>>, vector<4x2xf32>
    %cst_32 = arith.constant dense<0.000000e+00> : vector<4x512xf32>
    %665 = tpu.matmul %664, %663, %cst_32 {dimension_numbers = #tpu.dot_dimension_numbers<[1], [0], [0], [1], [0, 0, 1, 1], [], []>} : vector<4x2xf32>, vector<2x512xf32>, vector<4x512xf32> -> vector<4x512xf32>
    %c0_33 = arith.constant 0 : index
    %c0_34 = arith.constant 0 : index
    %666 = vector.load %arg12[%c0_33, %c0_34] : memref<4x1xf32, #tpu.memory_space<vmem>>, vector<4x1xf32>
    %667 = vector.broadcast %666 : vector<4x1xf32> to vector<4x512xf32>
    %668 = arith.addf %665, %667 : vector<4x512xf32>
    %cst_35 = arith.constant 0.000000e+00 : f32
    %669 = vector.broadcast %cst_35 : f32 to vector<4x512xf32>
    %670 = arith.maximumf %668, %669 : vector<4x512xf32>
    %671 = vector.extract_strided_slice %1 {offsets = [0, 0], sizes = [4, 512], strides = [1, 1]} : vector<8x512xf32> to vector<4x512xf32>
    %672 = arith.addf %671, %438 : vector<4x512xf32>
    %673 = vector.extract_strided_slice %1 {offsets = [4, 0], sizes = [4, 512], strides = [1, 1]} : vector<8x512xf32> to vector<4x512xf32>
    %674 = arith.addf %673, %670 : vector<4x512xf32>
    %675 = tpu.concatenate %672, %674 in 0 : vector<4x512xf32>, vector<4x512xf32> -> vector<8x512xf32>
    %676 = vector.shape_cast %675 : vector<8x512xf32> to vector<1x8x512xf32>
    %c0_36 = arith.constant 0 : index
    %c0_37 = arith.constant 0 : index
    %c0_38 = arith.constant 0 : index
    %677 = vector.load %arg13[%c0_36, %c0_37, %c0_38] : memref<1x8x512xf32, #tpu.memory_space<vmem>>, vector<1x8x512xf32>
    tpu.vector_store %arg13[%c0_36, %c0_37, %c0_38], %676 {strides = array<i32>} : memref<1x8x512xf32, #tpu.memory_space<vmem>>, vector<1x8x512xf32>,
    return
  }
  func.func @transform_0(%arg0: i32) -> (i32, i32, i32) {
    %c0_i32 = arith.constant 0 : i32
    %c0_i32_0 = arith.constant 0 : i32
    %c0_i32_1 = arith.constant 0 : i32
    return %arg0, %c0_i32, %c0_i32_0 : i32, i32, i32
  }
  func.func @transform_1(%arg0: i32) -> (i32, i32) {
    %c0_i32 = arith.constant 0 : i32
    %c0_i32_0 = arith.constant 0 : i32
    %c0_i32_1 = arith.constant 0 : i32
    return %c0_i32, %c0_i32_0 : i32, i32
  }
  func.func @transform_2(%arg0: i32) -> (i32, i32) {
    %c0_i32 = arith.constant 0 : i32
    %c0_i32_0 = arith.constant 0 : i32
    %c0_i32_1 = arith.constant 0 : i32
    return %c0_i32, %c0_i32_0 : i32, i32
  }
  func.func @transform_3(%arg0: i32) -> (i32, i32) {
    %c0_i32 = arith.constant 0 : i32
    %c0_i32_0 = arith.constant 0 : i32
    %c0_i32_1 = arith.constant 0 : i32
    return %c0_i32, %c0_i32_0 : i32, i32
  }
  func.func @transform_4(%arg0: i32) -> (i32, i32) {
    %c0_i32 = arith.constant 0 : i32
    %c0_i32_0 = arith.constant 0 : i32
    %c0_i32_1 = arith.constant 0 : i32
    return %c0_i32, %c0_i32_0 : i32, i32
  }
  func.func @transform_5(%arg0: i32) -> (i32, i32) {
    %c0_i32 = arith.constant 0 : i32
    %c0_i32_0 = arith.constant 0 : i32
    %c0_i32_1 = arith.constant 0 : i32
    return %c0_i32, %c0_i32_0 : i32, i32
  }
  func.func @transform_6(%arg0: i32) -> (i32, i32) {
    %c0_i32 = arith.constant 0 : i32
    %c0_i32_0 = arith.constant 0 : i32
    %c0_i32_1 = arith.constant 0 : i32
    return %c0_i32, %c0_i32_0 : i32, i32
  }
  func.func @transform_7(%arg0: i32) -> (i32, i32) {
    %c0_i32 = arith.constant 0 : i32
    %c0_i32_0 = arith.constant 0 : i32
    %c0_i32_1 = arith.constant 0 : i32
    return %c0_i32, %c0_i32_0 : i32, i32
  }
  func.func @transform_8(%arg0: i32) -> (i32, i32) {
    %c0_i32 = arith.constant 0 : i32
    %c0_i32_0 = arith.constant 0 : i32
    %c0_i32_1 = arith.constant 0 : i32
    return %c0_i32, %c0_i32_0 : i32, i32
  }
  func.func @transform_9(%arg0: i32) -> (i32, i32) {
    %c0_i32 = arith.constant 0 : i32
    %c0_i32_0 = arith.constant 0 : i32
    %c0_i32_1 = arith.constant 0 : i32
    return %c0_i32, %c0_i32_0 : i32, i32
  }
  func.func @transform_10(%arg0: i32) -> (i32, i32) {
    %c0_i32 = arith.constant 0 : i32
    %c0_i32_0 = arith.constant 0 : i32
    %c0_i32_1 = arith.constant 0 : i32
    return %c0_i32, %c0_i32_0 : i32, i32
  }
  func.func @transform_11(%arg0: i32) -> (i32, i32) {
    %c0_i32 = arith.constant 0 : i32
    %c0_i32_0 = arith.constant 0 : i32
    %c0_i32_1 = arith.constant 0 : i32
    return %c0_i32, %c0_i32_0 : i32, i32
  }
  func.func @transform_12(%arg0: i32) -> (i32, i32, i32) {
    %c0_i32 = arith.constant 0 : i32
    %c0_i32_0 = arith.constant 0 : i32
    %c0_i32_1 = arith.constant 0 : i32
    return %arg0, %c0_i32, %c0_i32_0 : i32, i32, i32
  }
}

</mosaic_0001>

<bundles_post_ra>
// kernel: irn_forward.3
= control target key start
LH: loop header
LB: loop body
LE: loop exit
PB: predicated region body
PF: predicated region fallthrough
CT: control target
= control target key end

     0   :  { %s5093_s21 = smov 0   ;;  %s8292_s0 = inlined_call_operand.vmem [shape: f32[2,8,512], index: 0, kind: input, shape index: {}]   ;;  %s8293_s1 = inlined_call_operand.vmem [shape: f32[27,512], index: 1, kind: input, shape index: {}]   ;;  %s8294_s2 = inlined_call_operand.vmem [shape: f32[54,8], index: 2, kind: input, shape index: {}]   ;;  %s8295_s3 = inlined_call_operand.vmem [shape: f32[2,1], index: 3, kind: input, shape index: {}]   ;;  %s8296_s4 = inlined_call_operand.vmem [shape: f32[108,2], index: 4, kind: input, shape index: {}]   ;;  %s8297_s5 = inlined_call_operand.vmem [shape: f32[4,1], index: 5, kind: input, shape index: {}]   ;;  %s8298_s6 = inlined_call_operand.vmem [shape: f32[2,8], index: 6, kind: input, shape index: {}]   ;;  %s8299_s7 = inlined_call_operand.vmem [shape: f32[2,1], index: 7, kind: input, shape index: {}]   ;;  %s8300_s8 = inlined_call_operand.vmem [shape: f32[54,2], index: 8, kind: input, shape index: {}]   ;;  %s8301_s9 = inlined_call_operand.vmem [shape: f32[2,1], index: 9, kind: input, shape index: {}]   ;;  %s8302_s10 = inlined_call_operand.vmem [shape: f32[4,2], index: 10, kind: input, shape index: {}]   ;;  %s8303_s11 = inlined_call_operand.vmem [shape: f32[4,1], index: 11, kind: input, shape index: {}]   ;;  %s8304_s12 = inlined_call_operand.vmem [shape: f32[2,8,512], index: 12, kind: output, shape index: {}]  }
   0x1 LB: > { %s4879_s22 = sadd.s32 4294967295, %s5007_s21   ;;  %p4883_p0 = scmp.ge.s32.totalorder %s5007_s21, 1  ;;  %s5007_s21 = sphi %s5093_s21, %s22_s21  }
   0x2   : > { %p362_p1 = scmp.lt.s32.totalorder %s5007_s21, 3 }
   0x4   : > { %p363_p2 = pnand %p4883_p0, %p362_p1 }
   0x6   : > { %366 = sbr.rel (%p363_p2) target bundleno = 1638 (0x666), region = 68 }
   0xd   : > { %p404_p3 = scmp.lt.s32.totalorder %s4879_s22, 1  ;;  %v8328_v0 = vmov 0.0   ;;  %v434_v1 = vld [vmem:[%s8294_s2] sm:$0xff]  ;;  %vm8637_vm0 = vcmask 64512   ;;  %v435_v6 = vld [vmem:[%s8294_s2 + $0x8] sm:$0xff]  ;;  %v436_v7 = vld [vmem:[%s8294_s2 + $0x10] sm:$0xff] }
   0xe   : > { %527 = vmatprep.mubr.f32.mxu0 %v8328_v0  ;;  %634 = vmatprep.mubr.f32.mxu1 %v8328_v0  ;;  %v437_v8 = vld [vmem:[%s8294_s2 + $0x18] sm:$0xff]  ;;  %v438_v9 = vld [vmem:[%s8294_s2 + $0x20] sm:$0xff]  ;;  %v439_v10 = vld [vmem:[%s8294_s2 + $0x28] sm:$0xff]  ;;  %s5010_s27 = smov 72   ;;  %s5011_s28 = smov 73   ;;  %v5021_v40 = vmov 0  }
   0xf   : > { %s9350_s22 = smov (!%p404_p3, %s4879_s22), 1  ;;  %v440_v11 = vld [vmem:[%s8294_s2 + $0x30] sm:$0x3f]  ;;  %s8601_s29 = smov 71   ;;  %4991 = vset.pattern.permute.xlu0 %v5021_v40  ;;  %4992 = vset.pattern.permute.xlu1 %v5021_v40  ;;  %vm732_vm1 = vcmask 588800   ;;  %vm690_vm2 = vcmask 596992  }
  0x10   : > { %s8305_s23 = sshll.u32 %s9350_s22, 5  ;;  %s8599_s30 = smov 65   ;;  %vm786_vm3 = vcmask 580608   ;;  %vm840_vm4 = vcmask 531456   ;;  %vm898_vm5 = vcmask 523264   ;;  %vm940_vm6 = vcmask 515072  }
  0x11   : > { %s5111_s26 = scalar_lea.vmem %s8292_s0, %s8305_s23  ;;  %s8590_s13 = smov 64   ;;  %vm994_vm7 = vcmask 465920   ;;  %vm1048_vm8 = vcmask 457728   ;;  %vm1106_vm9 = vcmask 449536   ;;  %vm1148_vm10 = vcmask 72704  }
  0x12   : > { %v415_v2 = vld [vmem:[%s5111_s26 + $0x8] sm:$0xff]  ;;  %v417_v3 = vld [vmem:[%s5111_s26 + $0x18] sm:$0xff]  ;;  %v414_v4 = vld [vmem:[%s5111_s26] sm:$0xff]  ;;  %s8326_s14 = smov 63   ;;  %s8324_s15 = smov 57   ;;  %vm8631_vm11 = vcmask 56320  }
  0x13   : > { %463 = vmatprep.subr.mxu0 %v415_v2  ;;  %570 = vmatprep.subr.mxu1 %v417_v3  ;;  %v416_v5 = vld [vmem:[%s5111_s26 + $0x10] sm:$0xff]  ;;  %s8322_s16 = smov 56   ;;  %s8560_s17 = smov 55   ;;  %vm8480_vm12 = vcmask 7168   ;;  %vm8636_vm13 = vcmask 1039360   ;;  %vm8635_vm14 = vcmask 990208  }
  0x14   : > { %464 = vmatpush1.msra.mxu0 %v414_v4  ;;  %571 = vmatpush1.msra.mxu1 %v416_v5  ;;  %s8320_s18 = smov 9   ;;  %s8318_s19 = smov 8   ;;  %vm8496_vm15 = vcmask 982016  }
  0x15   : > { %4888 = vmatmul.mubr.msk.f32.vlgmr.msra.gmra.mrb[0].mxu0 %vm8637_vm0, %v434_v1  ;;  %4895 = vmatmul.mubr.msk.f32.vlgmr.msra.gmra.mrb[0].mxu1 %vm8637_vm0, %v434_v1  ;;  %s8316_s20 = smov 7   ;;  %s8306_s24 = smov 127  }
  0x16   : > { %640 = vmatprep.mubr.f32.mxu1 %v8328_v0  ;;  %533 = vmatprep.mubr.f32.mxu0 %v8328_v0  ;;  %s8314_s25 = smov 1   ;;  %s8308_s23 = smov 121  }
  0x19   : > { %4896 = vmatmul.mubr.msk.f32.gmra.mrb[2].mxu1 %vm8637_vm0, %v435_v6  ;;  %4889 = vmatmul.mubr.msk.f32.gmra.mrb[2].mxu0 %vm8637_vm0, %v435_v6 }
  0x1a   : > { %646 = vmatprep.mubr.f32.mxu1 %v8328_v0  ;;  %539 = vmatprep.mubr.f32.mxu0 %v8328_v0 }
  0x1d   : > { %4897 = vmatmul.mubr.msk.f32.gmra.mrb[4].mxu1 %vm8637_vm0, %v436_v7  ;;  %4890 = vmatmul.mubr.msk.f32.gmra.mrb[4].mxu0 %vm8637_vm0, %v436_v7 }
  0x1e   : > { %545 = vmatprep.mubr.f32.mxu0 %v8328_v0  ;;  %652 = vmatprep.mubr.f32.mxu1 %v8328_v0 }
  0x21   : > { %4891 = vmatmul.mubr.msk.f32.gmra.mrb[6].mxu0 %vm8637_vm0, %v437_v8  ;;  %4898 = vmatmul.mubr.msk.f32.gmra.mrb[6].mxu1 %vm8637_vm0, %v437_v8 }
  0x22   : > { %551 = vmatprep.mubr.f32.mxu0 %v8328_v0  ;;  %658 = vmatprep.mubr.f32.mxu1 %v8328_v0 }
  0x25   : > { %4892 = vmatmul.mubr.msk.f32.gmra.mrb[8].mxu0 %vm8637_vm0, %v438_v9  ;;  %4899 = vmatmul.mubr.msk.f32.gmra.mrb[8].mxu1 %vm8637_vm0, %v438_v9 }
  0x26   : > { %557 = vmatprep.mubr.f32.mxu0 %v8328_v0  ;;  %664 = vmatprep.mubr.f32.mxu1 %v8328_v0 }
  0x29   : > { %4893 = vmatmul.mubr.msk.f32.gmra.mrb[10].mxu0 %vm8637_vm0, %v439_v10  ;;  %4900 = vmatmul.mubr.msk.f32.gmra.mrb[10].mxu1 %vm8637_vm0, %v439_v10 }
  0x2a   : > { %563 = vmatprep.mubr.f32.mxu0 %v8328_v0  ;;  %670 = vmatprep.mubr.f32.mxu1 %v8328_v0 }
  0x2d   : > { %4894 = vmatmul.mubr.msk.f32.gmra.mrb[12].mxu0 %vm8637_vm0, %v440_v11  ;;  %4901 = vmatmul.mubr.msk.f32.gmra.mrb[12].mxu1 %vm8637_vm0, %v440_v11 }
  0x2e   : > { %2175 = vmatprep.mubr.f32.mxu0 %v8328_v0  ;;  %2324 = vmatprep.mubr.f32.mxu1 %v8328_v0 }
  0xe8   : > { %v529_v12 = vpop.f32.mrb[0].mxu0  ;;  %v636_v13 = vpop.f32.mrb[0].mxu1 }
  0xe9   : > { %730 = vrot.lane.b32.xlu1 %v636_v13, %s5010_s27  ;;  %726 = vrot.lane.b32.xlu0 %v529_v12, %s5010_s27  ;;  %v531_v14 = vpop.f32.mrb[1].mxu0  ;;  %v638_v15 = vpop.f32.mrb[1].mxu1 }
  0xec   : > { %v642_v16 = vpop.f32.mrb[2].mxu1  ;;  %v535_v17 = vpop.f32.mrb[2].mxu0 }
  0xed   : > { %684 = vrot.lane.b32.xlu1 %v529_v12, %s5011_s28  ;;  %723 = vrot.lane.b32.xlu0 %v638_v15, %s5010_s27  ;;  %v644_v18 = vpop.f32.mrb[3].mxu1  ;;  %v537_v19 = vpop.f32.mrb[3].mxu0 }
  0xf0   : > { %v5170_v20 = vpop.f32.mrb[4].mxu1  ;;  %v5172_v21 = vpop.f32.mrb[4].mxu0 }
  0xf1   : > { %688 = vrot.lane.b32.xlu1 %v636_v13, %s5011_s28  ;;  %678 = vrot.lane.b32.xlu0 %v638_v15, %s5011_s28  ;;  %v5176_v22 = vpop.f32.mrb[5].mxu1  ;;  %v5178_v23 = vpop.f32.mrb[5].mxu0 }
  0xf4   : > { %v5180_v24 = vpop.f32.mrb[6].mxu0  ;;  %v5182_v25 = vpop.f32.mrb[6].mxu1 }
  0xf5   : > { %8638 = vst [vmem:[#allocation2_spill] sm:$0xff] %v5180_v24  ;;  %8639 = vst [vmem:[#allocation3_spill] sm:$0xff] %v5182_v25  ;;  %780 = vrot.lane.b32.xlu1 %v529_v12, %s8601_s29  ;;  %686 = vrot.lane.b32.xlu0 %v531_v14, %s5011_s28  ;;  %v5186_v26 = vpop.f32.mrb[7].mxu0  ;;  %v5188_v27 = vpop.f32.mrb[7].mxu1 }
  0xf6   : > { %8640 = vst [vmem:[#allocation4_spill] sm:$0xff] %v5186_v26  ;;  %8641 = vst [vmem:[#allocation5_spill] sm:$0xff] %v5188_v27 }
  0xf8   : > { %v5190_v28 = vpop.f32.mrb[8].mxu0  ;;  %v5192_v29 = vpop.f32.mrb[8].mxu1 }
  0xf9   : > { %784 = vrot.lane.b32.xlu1 %v636_v13, %s8601_s29  ;;  %777 = vrot.lane.b32.xlu0 %v638_v15, %s8601_s29  ;;  %v5196_v30 = vpop.f32.mrb[9].mxu0  ;;  %v5198_v31 = vpop.f32.mrb[9].mxu1 }
  0xfc   : > { %v5202_v32 = vpop.f32.mrb[10].mxu0  ;;  %v5208_v34 = vpop.f32.mrb[10].mxu1 }
  0xfd   : > { %834 = vrot.lane.b32.xlu1 %v529_v12, %s8599_s30  ;;  %782 = vrot.lane.b32.xlu0 %v531_v14, %s8601_s29  ;;  %v5206_v33 = vpop.f32.mrb[11].mxu0  ;;  %v5212_v35 = vpop.f32.mrb[11].mxu1 }
 0x100   : > { %v5226_v36 = vpop.f32.mrb[12].mxu0  ;;  %v5232_v38 = vpop.f32.mrb[12].mxu1 }
 0x101   : > { %838 = vrot.lane.b32.xlu1 %v636_v13, %s8599_s30  ;;  %831 = vrot.lane.b32.xlu0 %v638_v15, %s8599_s30  ;;  %v5230_v37 = vpop.f32.mrb[13].mxu0  ;;  %v5236_v39 = vpop.f32.mrb[13].mxu1 }
 0x105   : > { %836 = vrot.lane.b32.xlu0 %v531_v14, %s8599_s30  ;;  %728 = vrot.lane.b32.xlu1 %v531_v14, %s5010_s27 }
 0x109   : > { %886 = vrot.lane.b32.xlu0 %v644_v18, %s8590_s13  ;;  %892 = vrot.lane.b32.xlu1 %v535_v17, %s8590_s13 }
 0x10d   : > { %896 = vrot.lane.b32.xlu1 %v642_v16, %s8590_s13  ;;  %894 = vrot.lane.b32.xlu0 %v537_v19, %s8590_s13 }
 0x111   : > { %934 = vrot.lane.b32.xlu1 %v535_v17, %s8326_s14  ;;  %931 = vrot.lane.b32.xlu0 %v644_v18, %s8326_s14 }
 0x115   : > { %938 = vrot.lane.b32.xlu1 %v642_v16, %s8326_s14  ;;  %936 = vrot.lane.b32.xlu0 %v537_v19, %s8326_s14 }
 0x119   : > { %988 = vrot.lane.b32.xlu1 %v535_v17, %s8324_s15  ;;  %985 = vrot.lane.b32.xlu0 %v644_v18, %s8324_s15 }
 0x11d   : > { %992 = vrot.lane.b32.xlu1 %v642_v16, %s8324_s15  ;;  %990 = vrot.lane.b32.xlu0 %v537_v19, %s8324_s15 }
 0x121   : > { %1042 = vrot.lane.b32.xlu1 %v535_v17, %s8322_s16  ;;  %1039 = vrot.lane.b32.xlu0 %v644_v18, %s8322_s16 }
 0x125   : > { %1046 = vrot.lane.b32.xlu1 %v642_v16, %s8322_s16  ;;  %1044 = vrot.lane.b32.xlu0 %v537_v19, %s8322_s16 }
 0x129   : > { %1094 = vrot.lane.b32.xlu0 %v5176_v22, %s8560_s17  ;;  %1100 = vrot.lane.b32.xlu1 %v5172_v21, %s8560_s17 }
 0x12d   : > { %1104 = vrot.lane.b32.xlu1 %v5170_v20, %s8560_s17  ;;  %1102 = vrot.lane.b32.xlu0 %v5178_v23, %s8560_s17 }
 0x131   : > { %1142 = vrot.lane.b32.xlu1 %v5172_v21, %s8320_s18  ;;  %1139 = vrot.lane.b32.xlu0 %v5176_v22, %s8320_s18 }
 0x135   : > { %1146 = vrot.lane.b32.xlu1 %v5170_v20, %s8320_s18  ;;  %1144 = vrot.lane.b32.xlu0 %v5178_v23, %s8320_s18  ;;  %s8930_s18 = smov 57  }
 0x139   : > { %1196 = vrot.lane.b32.xlu1 %v5172_v21, %s8318_s19  ;;  %1193 = vrot.lane.b32.xlu0 %v5176_v22, %s8318_s19 }
 0x13d   : > { %1200 = vrot.lane.b32.xlu1 %v5170_v20, %s8318_s19  ;;  %1198 = vrot.lane.b32.xlu0 %v5178_v23, %s8318_s19  ;;  %s8937_s19 = smov 56  }
 0x141   : > { %1249 = vrot.lane.b32.xlu1 %v5172_v21, %s8316_s20  ;;  %1246 = vrot.lane.b32.xlu0 %v5176_v22, %s8316_s20 }
 0x145   : > { %1253 = vrot.lane.b32.xlu1 %v5170_v20, %s8316_s20  ;;  %1251 = vrot.lane.b32.xlu0 %v5178_v23, %s8316_s20  ;;  %v699_v20 = vlaneseq  ;;  %s8938_s20 = smov 9  }
 0x147   : > { %v700_v23 = vshrl.u32 %v699_v20, 7 }
 0x149   : > { %1358 = vrot.lane.b32.xlu0 %v5180_v24, %s8306_s24  ;;  %1307 = vrot.lane.b32.xlu1 %v5180_v24, %s8314_s25 }
 0x14d   : > { %1362 = vrot.lane.b32.xlu0 %v5182_v25, %s8306_s24  ;;  %1311 = vrot.lane.b32.xlu1 %v5182_v25, %s8314_s25 }
 0x151   : > { %1412 = vrot.lane.b32.xlu0 %v5180_v24, %s8308_s23  ;;  %1360 = vrot.lane.b32.xlu1 %v5186_v26, %s8306_s24  ;;  %v422_v24 = vld [vmem:[%s8293_s1 + $0x20] sm:$0xff] }
 0x155   : > { %1416 = vrot.lane.b32.xlu0 %v5182_v25, %s8308_s23  ;;  %1364 = vrot.lane.b32.xlu1 %v5188_v27, %s8306_s24  ;;  %s8312_s24 = smov 120   ;;  %v5563_v25 = vsub.s32 7, %v700_v23 }
 0x157   : > { %8688 = vst [vmem:[#allocation52_spill] sm:$0xff] %v5563_v25 }
 0x159   : > { %1301 = vrot.lane.b32.xlu0 %v5188_v27, %s8314_s25  ;;  %1414 = vrot.lane.b32.xlu1 %v5186_v26, %s8308_s23 }
 0x15b   : > { %v5290_v41 = vpop.permute.xlu1 %730  ;;  %v5292_v42 = vpop.permute.xlu0 %726 }
 0x15d   : > { %1418 = vrot.lane.b32.xlu1 %v5188_v27, %s8308_s23  ;;  %1309 = vrot.lane.b32.xlu0 %v5186_v26, %s8314_s25  ;;  %s8310_s23 = smov 119   ;;  %s8954_s25 = smov 127  }
 0x15f   : > { %v5298_v43 = vpop.permute.xlu1 %684  ;;  %v5300_v44 = vpop.permute.xlu0 %723 }
 0x161   : > { %1470 = vrot.lane.b32.xlu0 %v5190_v28, %s8312_s24  ;;  %1472 = vrot.lane.b32.xlu1 %v5196_v30, %s8312_s24 }
 0x163   : > { %v5306_v45 = vpop.permute.xlu1 %688  ;;  %v5308_v46 = vpop.permute.xlu0 %678 }
 0x165   : > { %1474 = vrot.lane.b32.xlu0 %v5192_v29, %s8312_s24  ;;  %1476 = vrot.lane.b32.xlu1 %v5198_v31, %s8312_s24  ;;  %s8952_s24 = smov 1  }
 0x167   : > { %v5314_v47 = vpop.permute.xlu1 %780  ;;  %v5316_v48 = vpop.permute.xlu0 %686 }
 0x169   : > { %1512 = vrot.lane.b32.xlu0 %v5190_v28, %s8310_s23  ;;  %1514 = vrot.lane.b32.xlu1 %v5196_v30, %s8310_s23 }
 0x16b   : > { %v5322_v49 = vpop.permute.xlu1 %784  ;;  %v5324_v50 = vpop.permute.xlu0 %777 }
 0x16d   : > { %1516 = vrot.lane.b32.xlu0 %v5192_v29, %s8310_s23  ;;  %1518 = vrot.lane.b32.xlu1 %v5198_v31, %s8310_s23  ;;  %s8958_s23 = smov 121  }
 0x16f   : > { %v5330_v51 = vpop.permute.xlu1 %834  ;;  %v5332_v52 = vpop.permute.xlu0 %782 }
 0x171   : > { %1566 = vrot.lane.b32.xlu0 %v5190_v28, %s5011_s28  ;;  %1568 = vrot.lane.b32.xlu1 %v5196_v30, %s5011_s28 }
 0x173   : > { %v5338_v53 = vpop.permute.xlu1 %838  ;;  %v5340_v54 = vpop.permute.xlu0 %831 }
 0x175   : > { %1570 = vrot.lane.b32.xlu0 %v5192_v29, %s5011_s28  ;;  %1572 = vrot.lane.b32.xlu1 %v5198_v31, %s5011_s28 }
 0x177   : > { %v5346_v55 = vpop.permute.xlu0 %836  ;;  %v5348_v56 = vpop.permute.xlu1 %728 }
 0x179   : > { %1619 = vrot.lane.b32.xlu0 %v5190_v28, %s5010_s27  ;;  %1621 = vrot.lane.b32.xlu1 %v5196_v30, %s5010_s27  ;;  %v5470_v30 = vsub.s32 1, %v700_v23 }
 0x17b   : > { %v5354_v57 = vpop.permute.xlu0 %886  ;;  %v5356_v58 = vpop.permute.xlu1 %892  ;;  %8665 = vst [vmem:[#allocation29_spill] sm:$0xff] %v5470_v30 }
 0x17d   : > { %1623 = vrot.lane.b32.xlu0 %v5192_v29, %s5010_s27  ;;  %1625 = vrot.lane.b32.xlu1 %v5198_v31, %s5010_s27  ;;  %v5472_v31 = vsub.s32 0, %v700_v23 }
 0x17f   : > { %v5362_v59 = vpop.permute.xlu1 %896  ;;  %v5364_v60 = vpop.permute.xlu0 %894 }
 0x180   : > { %8642 = vst [vmem:[#allocation6_spill] sm:$0xff] %v5364_v60 }
 0x181   : > { %1676 = vrot.lane.b32.xlu0 %v5202_v32, %s8601_s29  ;;  %1678 = vrot.lane.b32.xlu1 %v5206_v33, %s8601_s29 }
 0x183   : > { %v5370_v61 = vpop.permute.xlu1 %934  ;;  %v5372_v62 = vpop.permute.xlu0 %931 }
 0x185   : > { %1680 = vrot.lane.b32.xlu0 %v5208_v34, %s8601_s29  ;;  %1682 = vrot.lane.b32.xlu1 %v5212_v35, %s8601_s29 }
 0x187   : > { %v5378_v63 = vpop.permute.xlu1 %938  ;;  %v5380_v1 = vpop.permute.xlu0 %936 }
 0x189   : > { %1717 = vrot.lane.b32.xlu0 %v5202_v32, %s8599_s30  ;;  %1719 = vrot.lane.b32.xlu1 %v5206_v33, %s8599_s30 }
 0x18b   : > { %v5386_v2 = vpop.permute.xlu1 %988  ;;  %v5388_v3 = vpop.permute.xlu0 %985 }
 0x18c   : > { %8643 = vst [vmem:[#allocation7_spill] sm:$0xff] %v5386_v2  ;;  %8644 = vst [vmem:[#allocation8_spill] sm:$0xff] %v5388_v3 }
 0x18d   : > { %1721 = vrot.lane.b32.xlu0 %v5208_v34, %s8599_s30  ;;  %1723 = vrot.lane.b32.xlu1 %v5212_v35, %s8599_s30 }
 0x18f   : > { %v5394_v4 = vpop.permute.xlu1 %992  ;;  %v5396_v5 = vpop.permute.xlu0 %990 }
 0x190   : > { %8645 = vst [vmem:[#allocation9_spill] sm:$0xff] %v5394_v4  ;;  %8646 = vst [vmem:[#allocation10_spill] sm:$0xff] %v5396_v5 }
 0x191   : > { %1770 = vrot.lane.b32.xlu0 %v5202_v32, %s8590_s13  ;;  %1772 = vrot.lane.b32.xlu1 %v5206_v33, %s8590_s13 }
 0x193   : > { %v5402_v6 = vpop.permute.xlu1 %1042  ;;  %v5404_v7 = vpop.permute.xlu0 %1039 }
 0x194   : > { %8647 = vst [vmem:[#allocation11_spill] sm:$0xff] %v5402_v6  ;;  %8648 = vst [vmem:[#allocation12_spill] sm:$0xff] %v5404_v7 }
 0x195   : > { %1774 = vrot.lane.b32.xlu0 %v5208_v34, %s8590_s13  ;;  %1776 = vrot.lane.b32.xlu1 %v5212_v35, %s8590_s13 }
 0x197   : > { %v5410_v8 = vpop.permute.xlu1 %1046  ;;  %v5412_v9 = vpop.permute.xlu0 %1044 }
 0x198   : > { %8649 = vst [vmem:[#allocation13_spill] sm:$0xff] %v5410_v8  ;;  %8650 = vst [vmem:[#allocation14_spill] sm:$0xff] %v5412_v9 }
 0x199   : > { %1823 = vrot.lane.b32.xlu0 %v5202_v32, %s8326_s14  ;;  %1825 = vrot.lane.b32.xlu1 %v5206_v33, %s8326_s14  ;;  %v418_v32 = vld [vmem:[%s8293_s1] sm:$0xff]  ;;  %v421_v33 = vld [vmem:[%s8293_s1 + $0x18] sm:$0xff] }
 0x19a   : > { %v5505_v0 = vrot.slane %v421_v33, %v5470_v30 }
 0x19b   : > { %v5418_v10 = vpop.permute.xlu0 %1094  ;;  %v5420_v11 = vpop.permute.xlu1 %1100 }
 0x19c   : > { %8651 = vst [vmem:[#allocation15_spill] sm:$0xff] %v5418_v10  ;;  %8652 = vst [vmem:[#allocation16_spill] sm:$0xff] %v5420_v11  ;;  %v5545_v10 = vsub.s32 5, %v700_v23 }
 0x19d   : > { %1827 = vrot.lane.b32.xlu0 %v5208_v34, %s8326_s14  ;;  %1829 = vrot.lane.b32.xlu1 %v5212_v35, %s8326_s14  ;;  %v5482_v34 = vsub.s32 2, %v700_v23  ;;  %v2027_v35 = vld [vmem:[%s8295_s3] sm:$0x3]  ;;  %8670 = vst [vmem:[#allocation34_spill] sm:$0xff] %v5505_v0  ;;  %s8961_s14 = smov 120  }
 0x19e   : > { %v5585_v6 = vrot.slane %v418_v32, %v5545_v10  ;;  %v5588_v5 = vrot.slane %v421_v33, %v5545_v10 }
 0x19f   : > { %v5426_v12 = vpop.permute.xlu1 %1104  ;;  %v5428_v13 = vpop.permute.xlu0 %1102  ;;  %8666 = vst [vmem:[#allocation30_spill] sm:$0xff] %v5482_v34 }
 0x1a0   : > { %8653 = vst [vmem:[#allocation17_spill] sm:$0xff] %v5426_v12  ;;  %8654 = vst [vmem:[#allocation18_spill] sm:$0xff] %v5428_v13  ;;  %v5534_v13 = vsub.s32 4, %v700_v23 }
 0x1a1   : > { %1880 = vrot.lane.b32.xlu0 %v5226_v36, %s8324_s15  ;;  %1882 = vrot.lane.b32.xlu1 %v5230_v37, %s8324_s15  ;;  %8695 = vst [vmem:[#allocation59_spill] sm:$0xff] %v5585_v6  ;;  %8696 = vst [vmem:[#allocation60_spill] sm:$0xff] %v5588_v5  ;;  %v5618_v5 = vrot.slane %v418_v32, %v5563_v25  ;;  %v5621_v6 = vrot.slane %v421_v33, %v5563_v25 }
 0x1a2   : > { %v5566_v11 = vrot.slane %v418_v32, %v5534_v13  ;;  %v5569_v9 = vrot.slane %v421_v33, %v5534_v13 }
 0x1a3   : > { %v5434_v14 = vpop.permute.xlu1 %1142  ;;  %v5436_v15 = vpop.permute.xlu0 %1139  ;;  %8703 = vst [vmem:[#allocation67_spill] sm:$0xff] %v5618_v5  ;;  %8704 = vst [vmem:[#allocation68_spill] sm:$0xff] %v5621_v6 }
 0x1a4   : > { %8655 = vst [vmem:[#allocation19_spill] sm:$0xff] %v5434_v14  ;;  %8656 = vst [vmem:[#allocation20_spill] sm:$0xff] %v5436_v15 }
 0x1a5   : > { %1884 = vrot.lane.b32.xlu0 %v5232_v38, %s8324_s15  ;;  %1886 = vrot.lane.b32.xlu1 %v5236_v39, %s8324_s15  ;;  %8689 = vst [vmem:[#allocation53_spill] sm:$0xff] %v5566_v11  ;;  %8690 = vst [vmem:[#allocation54_spill] sm:$0xff] %v5569_v9  ;;  %s8939_s15 = smov 8  }
 0x1a7   : > { %v5442_v16 = vpop.permute.xlu1 %1146  ;;  %v5444_v17 = vpop.permute.xlu0 %1144 }
 0x1a8   : > { %8657 = vst [vmem:[#allocation21_spill] sm:$0xff] %v5442_v16  ;;  %8658 = vst [vmem:[#allocation22_spill] sm:$0xff] %v5444_v17 }
 0x1a9   : > { %1921 = vrot.lane.b32.xlu0 %v5226_v36, %s8322_s16  ;;  %1923 = vrot.lane.b32.xlu1 %v5230_v37, %s8322_s16 }
 0x1ab   : > { %v5450_v18 = vpop.permute.xlu1 %1196  ;;  %v5452_v19 = vpop.permute.xlu0 %1193 }
 0x1ac   : > { %8659 = vst [vmem:[#allocation23_spill] sm:$0xff] %v5450_v18  ;;  %8660 = vst [vmem:[#allocation24_spill] sm:$0xff] %v5452_v19 }
 0x1ad   : > { %1925 = vrot.lane.b32.xlu0 %v5232_v38, %s8322_s16  ;;  %1927 = vrot.lane.b32.xlu1 %v5236_v39, %s8322_s16  ;;  %s8921_s16 = smov 63  }
 0x1af   : > { %v5458_v21 = vpop.permute.xlu1 %1200  ;;  %v5460_v22 = vpop.permute.xlu0 %1198 }
 0x1b0   : > { %8661 = vst [vmem:[#allocation25_spill] sm:$0xff] %v5458_v21  ;;  %8662 = vst [vmem:[#allocation26_spill] sm:$0xff] %v5460_v22  ;;  %v5508_v22 = vrot.slane %v418_v32, %v5472_v31  ;;  %v5523_v21 = vrot.slane %v421_v33, %v5482_v34 }
 0x1b1   : > { %1974 = vrot.lane.b32.xlu0 %v5226_v36, %s8560_s17  ;;  %1976 = vrot.lane.b32.xlu1 %v5230_v37, %s8560_s17  ;;  %v419_v36 = vld [vmem:[%s8293_s1 + $0x8] sm:$0xff]  ;;  %v420_v37 = vld [vmem:[%s8293_s1 + $0x10] sm:$0xff] }
 0x1b2   : > { %8671 = vst [vmem:[#allocation35_spill] sm:$0xff] %v5508_v22  ;;  %8676 = vst [vmem:[#allocation40_spill] sm:$0xff] %v5523_v21  ;;  %v5526_v19 = vrot.slane %v419_v36, %v5482_v34  ;;  %v5529_v18 = vrot.slane %v420_v37, %v5482_v34  ;;  %v5558_v15 = vrot.slane %v419_v36, %v5470_v30 }
 0x1b3   : > { %v5466_v28 = vpop.permute.xlu1 %1249  ;;  %v5468_v29 = vpop.permute.xlu0 %1246  ;;  %v5561_v16 = vrot.slane %v420_v37, %v5470_v30  ;;  %v5572_v26 = vrot.slane %v419_v36, %v5534_v13  ;;  %v5575_v27 = vrot.slane %v420_v37, %v5534_v13  ;;  %v5591_v4 = vrot.slane %v419_v36, %v5545_v10 }
 0x1b4   : > { %8663 = vst [vmem:[#allocation27_spill] sm:$0xff] %v5466_v28  ;;  %8664 = vst [vmem:[#allocation28_spill] sm:$0xff] %v5468_v29  ;;  %v5511_v29 = vrot.slane %v421_v33, %v5472_v31  ;;  %v5514_v28 = vrot.slane %v419_v36, %v5472_v31  ;;  %v5624_v60 = vrot.slane %v419_v36, %v5563_v25 }
 0x1b5   : > { %1978 = vrot.lane.b32.xlu0 %v5232_v38, %s8560_s17  ;;  %1980 = vrot.lane.b32.xlu1 %v5236_v39, %s8560_s17  ;;  %v5495_v38 = vsub.s32 3, %v700_v23  ;;  %v5502_v39 = vrot.slane %v418_v32, %v5470_v30  ;;  %8677 = vst [vmem:[#allocation41_spill] sm:$0xff] %v5526_v19  ;;  %8678 = vst [vmem:[#allocation42_spill] sm:$0xff] %v5529_v18 }
 0x1b6   : > { %8672 = vst [vmem:[#allocation36_spill] sm:$0xff] %v5511_v29  ;;  %8673 = vst [vmem:[#allocation37_spill] sm:$0xff] %v5514_v28 }
 0x1b7   : > { %v5497_v40 = vpop.permute.xlu1 %1253  ;;  %v5499_v20 = vpop.permute.xlu0 %1251  ;;  %8669 = vst [vmem:[#allocation33_spill] sm:$0xff] %v5502_v39  ;;  %v5543_v14 = vrot.slane %v421_v33, %v5495_v38  ;;  %v5550_v8 = vrot.slane %v419_v36, %v5495_v38  ;;  %8686 = vst [vmem:[#allocation50_spill] sm:$0xff] %v5558_v15 }
 0x1b8   : > { %8667 = vst [vmem:[#allocation31_spill] sm:$0xff] %v5497_v40  ;;  %8668 = vst [vmem:[#allocation32_spill] sm:$0xff] %v5499_v20  ;;  %v5517_v40 = vrot.slane %v420_v37, %v5472_v31  ;;  %v5520_v20 = vrot.slane %v418_v32, %v5482_v34 }
 0x1b9   : > { %2030 = vperm.xlu0 %4991, %v2027_v35   ;;  %v5532_v35 = vrot.slane %v418_v32, %v5495_v38  ;;  %8682 = vst [vmem:[#allocation46_spill] sm:$0xff] %v5543_v14  ;;  %8683 = vst [vmem:[#allocation47_spill] sm:$0xff] %v5550_v8 }
 0x1ba   : > { %8674 = vst [vmem:[#allocation38_spill] sm:$0xff] %v5517_v40  ;;  %8675 = vst [vmem:[#allocation39_spill] sm:$0xff] %v5520_v20 }
 0x1bb   : > { %8679 = vst [vmem:[#allocation43_spill] sm:$0xff] %v5532_v35  ;;  %v5536_v17 = vpop.permute.xlu0 %1358  ;;  %v5538_v12 = vpop.permute.xlu1 %1307  ;;  %8687 = vst [vmem:[#allocation51_spill] sm:$0xff] %v5561_v16 }
 0x1bc   : > { %8680 = vst [vmem:[#allocation44_spill] sm:$0xff] %v5536_v17  ;;  %8681 = vst [vmem:[#allocation45_spill] sm:$0xff] %v5538_v12  ;;  %v5552_v17 = vsub.s32 6, %v700_v23  ;;  %v5555_v12 = vrot.slane %v420_v37, %v5495_v38 }
 0x1bd   : > { %8691 = vst [vmem:[#allocation55_spill] sm:$0xff] %v5572_v26  ;;  %8692 = vst [vmem:[#allocation56_spill] sm:$0xff] %v5575_v27  ;;  %v5594_v26 = vrot.slane %v420_v37, %v5545_v10  ;;  %v425_v27 = vld [vmem:[%s8293_s1 + $0x38] sm:$0xff] }
 0x1be   : > { %8684 = vst [vmem:[#allocation48_spill] sm:$0xff] %v5552_v17  ;;  %8685 = vst [vmem:[#allocation49_spill] sm:$0xff] %v5555_v12  ;;  %v5606_v3 = vrot.slane %v418_v32, %v5552_v17  ;;  %v5615_v2 = vrot.slane %v420_v37, %v5552_v17 }
 0x1bf   : > { %v5580_v7 = vpop.permute.xlu0 %1362  ;;  %v5582_v23 = vpop.permute.xlu1 %1311  ;;  %8697 = vst [vmem:[#allocation61_spill] sm:$0xff] %v5591_v4  ;;  %8698 = vst [vmem:[#allocation62_spill] sm:$0xff] %v5594_v26  ;;  %v5609_v4 = vrot.slane %v421_v33, %v5552_v17  ;;  %v5612_v26 = vrot.slane %v419_v36, %v5552_v17  ;;  %v5646_v36 = vrot.slane %v422_v24, %v5470_v30 }
 0x1c0   : > { %8693 = vst [vmem:[#allocation57_spill] sm:$0xff] %v5580_v7  ;;  %8694 = vst [vmem:[#allocation58_spill] sm:$0xff] %v5582_v23  ;;  %v423_v7 = vld [vmem:[%s8293_s1 + $0x28] sm:$0xff]  ;;  %v424_v23 = vld [vmem:[%s8293_s1 + $0x30] sm:$0xff] }
 0x1c1   : > { %8699 = vst [vmem:[#allocation63_spill] sm:$0xff] %v5606_v3  ;;  %8700 = vst [vmem:[#allocation64_spill] sm:$0xff] %v5609_v4  ;;  %v5627_v3 = vrot.slane %v420_v37, %v5563_v25  ;;  %v5630_v4 = vrot.slane %v422_v24, %v5472_v31  ;;  %v5639_v32 = vrot.slane %v424_v23, %v5472_v31 }
 0x1c2   : > { %8701 = vst [vmem:[#allocation65_spill] sm:$0xff] %v5612_v26  ;;  %8702 = vst [vmem:[#allocation66_spill] sm:$0xff] %v5615_v2  ;;  %v5633_v26 = vrot.slane %v425_v27, %v5472_v31  ;;  %v5636_v2 = vrot.slane %v423_v7, %v5472_v31  ;;  %v5649_v37 = vrot.slane %v425_v27, %v5470_v30 }
 0x1c3   : > { %8705 = vst [vmem:[#allocation69_spill] sm:$0xff] %v5624_v60  ;;  %8706 = vst [vmem:[#allocation70_spill] sm:$0xff] %v5627_v3  ;;  %v5641_v33 = vpop.permute.xlu0 %1412  ;;  %v5643_v6 = vpop.permute.xlu1 %1360 }
 0x1c4   : > { %8707 = vst [vmem:[#allocation71_spill] sm:$0xff] %v5630_v4  ;;  %8708 = vst [vmem:[#allocation72_spill] sm:$0xff] %v5633_v26  ;;  %v5652_v4 = vrot.slane %v423_v7, %v5470_v30  ;;  %v5655_v26 = vrot.slane %v424_v23, %v5470_v30 }
 0x1c5   : > { %8709 = vst [vmem:[#allocation73_spill] sm:$0xff] %v5636_v2  ;;  %8710 = vst [vmem:[#allocation74_spill] sm:$0xff] %v5639_v32  ;;  %v5658_v2 = vrot.slane %v422_v24, %v5482_v34  ;;  %v5667_v32 = vrot.slane %v424_v23, %v5482_v34 }
 0x1c6   : > { %8711 = vst [vmem:[#allocation75_spill] sm:$0xff] %v5641_v33  ;;  %8712 = vst [vmem:[#allocation76_spill] sm:$0xff] %v5643_v6  ;;  %v5661_v33 = vrot.slane %v425_v27, %v5482_v34  ;;  %v5664_v6 = vrot.slane %v423_v7, %v5482_v34 }
 0x1c7   : > { %8713 = vst [vmem:[#allocation77_spill] sm:$0xff] %v5646_v36  ;;  %8714 = vst [vmem:[#allocation78_spill] sm:$0xff] %v5649_v37  ;;  %v5670_v37 = vrot.slane %v422_v24, %v5495_v38  ;;  %v5687_v36 = vpop.permute.xlu0 %1416 }
 0x1c8   : > { %8715 = vst [vmem:[#allocation79_spill] sm:$0xff] %v5652_v4  ;;  %8716 = vst [vmem:[#allocation80_spill] sm:$0xff] %v5655_v26  ;;  %v5673_v4 = vrot.slane %v425_v27, %v5495_v38  ;;  %v5676_v26 = vrot.slane %v423_v7, %v5495_v38 }
 0x1c9   : > { %8717 = vst [vmem:[#allocation81_spill] sm:$0xff] %v5658_v2  ;;  %8718 = vst [vmem:[#allocation82_spill] sm:$0xff] %v5661_v33  ;;  %v5679_v2 = vrot.slane %v424_v23, %v5495_v38  ;;  %v5682_v33 = vrot.slane %v422_v24, %v5552_v17 }
 0x1ca   : > { %8719 = vst [vmem:[#allocation83_spill] sm:$0xff] %v5664_v6  ;;  %8720 = vst [vmem:[#allocation84_spill] sm:$0xff] %v5667_v32  ;;  %v5685_v6 = vrot.slane %v423_v7, %v5552_v17  ;;  %v5690_v32 = vrot.slane %v424_v23, %v5552_v17 }
 0x1cb   : > { %8721 = vst [vmem:[#allocation85_spill] sm:$0xff] %v5670_v37  ;;  %8722 = vst [vmem:[#allocation86_spill] sm:$0xff] %v5673_v4  ;;  %v5693_v37 = vrot.slane %v425_v27, %v5552_v17  ;;  %v5695_v4 = vpop.permute.xlu1 %1364  ;;  %v5726_v17 = vrot.slane %v424_v23, %v5563_v25  ;;  %v5759_v3 = vpop.permute.xlu0 %1301 }
 0x1cc   : > { %8723 = vst [vmem:[#allocation87_spill] sm:$0xff] %v5676_v26  ;;  %8724 = vst [vmem:[#allocation88_spill] sm:$0xff] %v5679_v2  ;;  %v5700_v2 = vld [vmem:[%s8293_s1 + $0x40] sm:$0xff]  ;;  %v5723_v26 = vrot.slane %v423_v7, %v5563_v25 }
 0x1cd   : > { %8725 = vst [vmem:[#allocation89_spill] sm:$0xff] %v5682_v33  ;;  %8726 = vst [vmem:[#allocation90_spill] sm:$0xff] %v5685_v6  ;;  %v735_v33 = vsel %vm732_vm1, %v5290_v41, %v5300_v44  ;;  %v740_v6 = vsel %vm732_vm1, %v5300_v44, %v5292_v42  ;;  %v5729_v44 = vrot.slane %v425_v27, %v5563_v25 }
 0x1ce   : > { %8727 = vst [vmem:[#allocation91_spill] sm:$0xff] %v5687_v36  ;;  %8728 = vst [vmem:[#allocation92_spill] sm:$0xff] %v5690_v32  ;;  %v5709_v32 = vrot.slane %v422_v24, %v5534_v13  ;;  %v5717_v36 = vld [vmem:[%s8293_s1 + $0x48] sm:$0xff] }
 0x1cf   : > { %8729 = vst [vmem:[#allocation93_spill] sm:$0xff] %v5693_v37  ;;  %8730 = vst [vmem:[#allocation94_spill] sm:$0xff] %v5695_v4  ;;  %v5712_v37 = vrot.slane %v425_v27, %v5534_v13  ;;  %v5720_v4 = vrot.slane %v422_v24, %v5563_v25  ;;  %v698_v24 = vsel %vm690_vm2, %v5308_v46, %v5298_v43  ;;  %v5761_v60 = vpop.permute.xlu1 %1414 }
 0x1d0   : > { %8731 = vst [vmem:[#allocation95_spill] sm:$0xff] %v5709_v32  ;;  %8734 = vst [vmem:[#allocation98_spill] sm:$0xff] %v5723_v26  ;;  %v5739_v32 = vld [vmem:[%s8293_s1 + $0x58] sm:$0xff]  ;;  %v5745_v26 = vrot.slane %v423_v7, %v5534_v13  ;;  %v5748_v27 = vrot.slane %v424_v23, %v5534_v13  ;;  %v693_v25 = vsel %vm690_vm2, %v5306_v45, %v5308_v46 }
 0x1d1   : > { %8732 = vst [vmem:[#allocation96_spill] sm:$0xff] %v5712_v37  ;;  %8733 = vst [vmem:[#allocation97_spill] sm:$0xff] %v5720_v4  ;;  %v5734_v37 = vld [vmem:[%s8293_s1 + $0x50] sm:$0xff]  ;;  %v760_v4 = vmul.f32 %v5505_v0, %v735_v33  ;;  %v5765_v7 = vrot.slane %v5717_v36, %v5472_v31  ;;  %v5777_v33 = vrot.slane %v5700_v2, %v5470_v30 }
 0x1d2   : > { %8735 = vst [vmem:[#allocation99_spill] sm:$0xff] %v5726_v17  ;;  %8736 = vst [vmem:[#allocation100_spill] sm:$0xff] %v5729_v44  ;;  %v5752_v44 = vrot.slane %v5700_v2, %v5472_v31  ;;  %v757_v17 = vmul.f32 %v5502_v39, %v740_v6  ;;  %v5769_v23 = vrot.slane %v5734_v37, %v5472_v31 }
 0x1d3   : > { %8737 = vst [vmem:[#allocation101_spill] sm:$0xff] %v5745_v26  ;;  %8738 = vst [vmem:[#allocation102_spill] sm:$0xff] %v5748_v27  ;;  %v5773_v6 = vrot.slane %v5739_v32, %v5472_v31  ;;  %v5781_v46 = vrot.slane %v5717_v36, %v5470_v30  ;;  %v715_v0 = vmul.f32 %v5508_v22, %v698_v24 }
 0x1d4   : > { %8739 = vst [vmem:[#allocation103_spill] sm:$0xff] %v5752_v44  ;;  %8740 = vst [vmem:[#allocation104_spill] sm:$0xff] %v5765_v7  ;;  %v789_v39 = vsel %vm786_vm3, %v5322_v49, %v5324_v50  ;;  %v734_v24 = vsel %vm732_vm1, %v5348_v56, %v5290_v41  ;;  %v5803_v22 = vrot.slane %v5739_v32, %v5470_v30  ;;  %v765_v7 = vrot.slane %v757_v17, 2 }
 0x1d5   : > { %8741 = vst [vmem:[#allocation105_spill] sm:$0xff] %v5769_v23  ;;  %8742 = vst [vmem:[#allocation106_spill] sm:$0xff] %v5773_v6  ;;  %v794_v23 = vsel %vm786_vm3, %v5324_v50, %v5314_v47  ;;  %v5792_v6 = vrot.slane %v5734_v37, %v5470_v30  ;;  %v768_v50 = vrot.slane %v760_v4, 2  ;;  %v691_v41 = vsel %vm690_vm2, %v5298_v43, %v5316_v48 }
 0x1d6   : > { %8743 = vst [vmem:[#allocation107_spill] sm:$0xff] %v5777_v33  ;;  %8744 = vst [vmem:[#allocation108_spill] sm:$0xff] %v5781_v46  ;;  %v718_v33 = vmul.f32 %v5511_v29, %v693_v25  ;;  %v733_v46 = vsel %vm732_vm1, %v5292_v42, %v5348_v56  ;;  %v848_v25 = vsel %vm840_vm4, %v5340_v54, %v5330_v51  ;;  %v5811_v29 = vpop.permute.xlu1 %1418  ;;  %v5813_v42 = vpop.permute.xlu0 %1309 }
 0x1d7   : > { %8745 = vst [vmem:[#allocation109_spill] sm:$0xff] %v5792_v6  ;;  %8746 = vst [vmem:[#allocation110_spill] sm:$0xff] %v5803_v22  ;;  %v843_v6 = vsel %vm840_vm4, %v5338_v53, %v5340_v54  ;;  %v811_v56 = vmul.f32 %v5520_v20, %v794_v23  ;;  %v814_v4 = vmul.f32 %v5523_v21, %v789_v39 }
 0x1d8   : > { %v5822_v17 = vrot.slane %v5700_v2, %v5482_v34  ;;  %v773_v30 = vadd.f32 %v765_v7, %v715_v0  ;;  %v787_v54 = vsel %vm786_vm3, %v5314_v47, %v5332_v52  ;;  %v758_v22 = vmul.f32 %v5558_v15, %v733_v46  ;;  %v8769_v15 = vld [vmem:[#allocation62_spill] sm:$0xff] }
 0x1d9   : > { %v759_v44 = vmul.f32 %v5561_v16, %v734_v24  ;;  %v776_v43 = vadd.f32 %v768_v50, %v718_v33  ;;  %v788_v39 = vsel %vm786_vm3, %v5332_v52, %v5322_v49  ;;  %v865_v23 = vmul.f32 %v5532_v35, %v848_v25  ;;  %v8767_v16 = vld [vmem:[#allocation10_spill] sm:$0xff] }
 0x1da   : > { %8747 = vst [vmem:[#allocation111_spill] sm:$0xff] %v5822_v17  ;;  %v868_v21 = vmul.f32 %v5543_v14, %v843_v6  ;;  %v692_v0 = vsel %vm690_vm2, %v5316_v48, %v5306_v45  ;;  %v716_v47 = vmul.f32 %v5514_v28, %v691_v41  ;;  %v5838_v7 = vpop.permute.xlu0 %1470  ;;  %v5840_v46 = vpop.permute.xlu1 %1472  ;;  %v5844_v33 = vrot.slane %v5717_v36, %v5482_v34 }
 0x1db   : > { %v5848_v49 = vrot.slane %v5734_v37, %v5482_v34  ;;  %v819_v52 = vrot.slane %v811_v56, 4  ;;  %v822_v6 = vrot.slane %v814_v4, 4  ;;  %v812_v24 = vmul.f32 %v5526_v19, %v787_v54 }
 0x1dc   : > { %8748 = vst [vmem:[#allocation112_spill] sm:$0xff] %v5844_v33  ;;  %v841_v45 = vsel %vm840_vm4, %v5330_v51, %v5346_v55  ;;  %v813_v48 = vmul.f32 %v5529_v18, %v788_v39  ;;  %v842_v50 = vsel %vm840_vm4, %v5346_v55, %v5338_v53  ;;  %v766_v25 = vrot.slane %v758_v22, 2 }
 0x1dd   : > { %8749 = vst [vmem:[#allocation113_spill] sm:$0xff] %v5848_v49  ;;  %v767_v41 = vrot.slane %v759_v44, 2  ;;  %v717_v14 = vmul.f32 %v5517_v40, %v692_v0  ;;  %v873_v35 = vrot.slane %v865_v23, 6  ;;  %v876_v56 = vrot.slane %v868_v21, 6 }
 0x1de   : > { %v5861_v4 = vrot.slane %v5739_v32, %v5482_v34  ;;  %v866_v54 = vmul.f32 %v5550_v8, %v841_v45  ;;  %v5864_v51 = vpop.permute.xlu0 %1474  ;;  %v5866_v39 = vpop.permute.xlu1 %1476  ;;  %v5870_v53 = vrot.slane %v5700_v2, %v5495_v38  ;;  %v5874_v55 = vrot.slane %v5717_v36, %v5495_v38 }
 0x1df   : > { %v5878_v21 = vrot.slane %v5734_v37, %v5495_v38  ;;  %v827_v22 = vadd.f32 %v819_v52, %v773_v30  ;;  %v830_v44 = vadd.f32 %v822_v6, %v776_v43  ;;  %v867_v23 = vmul.f32 %v5555_v12, %v842_v50 }
 0x1e0   : > { %8750 = vst [vmem:[#allocation114_spill] sm:$0xff] %v5861_v4  ;;  %8751 = vst [vmem:[#allocation115_spill] sm:$0xff] %v5870_v53  ;;  %v5883_v0 = vrot.slane %v5739_v32, %v5495_v38  ;;  %v820_v45 = vrot.slane %v812_v24, 4  ;;  %v821_v8 = vrot.slane %v813_v48, 4  ;;  %v774_v18 = vadd.f32 %v766_v25, %v716_v47  ;;  %v8811_v53 = vld [vmem:[#allocation28_spill] sm:$0xff] }
 0x1e1   : > { %8752 = vst [vmem:[#allocation116_spill] sm:$0xff] %v5874_v55  ;;  %8753 = vst [vmem:[#allocation117_spill] sm:$0xff] %v5878_v21  ;;  %v775_v19 = vadd.f32 %v767_v41, %v717_v14  ;;  %v881_v40 = vadd.f32 %v873_v35, %v827_v22  ;;  %v884_v20 = vadd.f32 %v876_v56, %v830_v44  ;;  %v874_v43 = vrot.slane %v866_v54, 6  ;;  %v8760_v44 = vld [vmem:[#allocation6_spill] sm:$0xff]  ;;  %v8823_v4 = vld [vmem:[#allocation88_spill] sm:$0xff] }
 0x1e2   : > { %8754 = vst [vmem:[#allocation118_spill] sm:$0xff] %v5883_v0  ;;  %v5887_v28 = vrot.slane %v5700_v2, %v5534_v13  ;;  %v5891_v30 = vrot.slane %v5717_v36, %v5534_v13  ;;  %v906_v38 = vsel %vm898_vm5, %v5354_v57, %v5356_v58  ;;  %v901_v47 = vsel %vm898_vm5, %v5362_v59, %v5354_v57  ;;  %v5899_v14 = vpop.permute.xlu0 %1512  ;;  %v5901_v35 = vpop.permute.xlu1 %1514 }
 0x1e3   : > { %v5905_v52 = vrot.slane %v5734_v37, %v5534_v13  ;;  %v875_v6 = vrot.slane %v867_v23, 6  ;;  %v948_v24 = vsel %vm940_vm6, %v5372_v62, %v5370_v61  ;;  %v943_v48 = vsel %vm940_vm6, %v5378_v63, %v5372_v62 }
 0x1e4   : > { %8755 = vst [vmem:[#allocation119_spill] sm:$0xff] %v5887_v28  ;;  %8756 = vst [vmem:[#allocation120_spill] sm:$0xff] %v5891_v30  ;;  %v5915_v57 = vrot.slane %v5739_v32, %v5534_v13  ;;  %v828_v50 = vadd.f32 %v820_v45, %v774_v18  ;;  %v829_v25 = vadd.f32 %v821_v8, %v775_v19  ;;  %v8761_v13 = vld [vmem:[#allocation59_spill] sm:$0xff]  ;;  %v8762_v19 = vld [vmem:[#allocation60_spill] sm:$0xff] }
 0x1e5   : > { %8757 = vst [vmem:[#allocation121_spill] sm:$0xff] %v5905_v52  ;;  %v941_v41 = vsel %vm940_vm6, %v5370_v61, %v5380_v1  ;;  %v5922_v56 = vrot.slane %v5700_v2, %v5545_v10  ;;  %v923_v54 = vmul.f32 %v5566_v11, %v906_v38  ;;  %v926_v22 = vmul.f32 %v5569_v9, %v901_v47  ;;  %v8763_v45 = vld [vmem:[#allocation7_spill] sm:$0xff]  ;;  %v8764_v38 = vld [vmem:[#allocation8_spill] sm:$0xff]  ;;  %v8774_v28 = vld [vmem:[#allocation13_spill] sm:$0xff] }
 0x1e6   : > { %8758 = vst [vmem:[#allocation122_spill] sm:$0xff] %v5915_v57  ;;  %v899_v62 = vsel %vm898_vm5, %v5356_v58, %v8760_v44  ;;  %v942_v8 = vsel %vm940_vm6, %v5380_v1, %v5378_v63  ;;  %v900_v61 = vsel %vm898_vm5, %v8760_v44, %v5362_v59  ;;  %v965_v18 = vmul.f32 %v8761_v13, %v948_v24  ;;  %v5940_v9 = vpop.permute.xlu0 %1516  ;;  %v5942_v11 = vpop.permute.xlu1 %1518  ;;  %v8765_v58 = vld [vmem:[#allocation61_spill] sm:$0xff]  ;;  %v8771_v57 = vld [vmem:[#allocation63_spill] sm:$0xff]  ;;  %v8773_v30 = vld [vmem:[#allocation12_spill] sm:$0xff] }
 0x1e7   : > { %8759 = vst [vmem:[#allocation123_spill] sm:$0xff] %v5922_v56  ;;  %v968_v23 = vmul.f32 %v8762_v19, %v943_v48  ;;  %v1002_v47 = vsel %vm994_vm7, %v8764_v38, %v8763_v45  ;;  %v966_v12 = vmul.f32 %v8765_v58, %v941_v41  ;;  %v8766_v63 = vld [vmem:[#allocation9_spill] sm:$0xff]  ;;  %v995_v59 = vsel %vm994_vm7, %v8763_v45, %v8767_v16  ;;  %v8768_v19 = vld [vmem:[#allocation55_spill] sm:$0xff]  ;;  %v8770_v41 = vld [vmem:[#allocation56_spill] sm:$0xff] }
 0x1e8   : > { %v997_v1 = vsel %vm994_vm7, %v8766_v63, %v8764_v38  ;;  %v996_v24 = vsel %vm994_vm7, %v8767_v16, %v8766_v63  ;;  %v882_v48 = vadd.f32 %v874_v43, %v828_v50  ;;  %v883_v44 = vadd.f32 %v875_v6, %v829_v25  ;;  %v8772_v52 = vld [vmem:[#allocation11_spill] sm:$0xff]  ;;  %v8775_v43 = vld [vmem:[#allocation64_spill] sm:$0xff]  ;;  %v8776_v50 = vld [vmem:[#allocation65_spill] sm:$0xff] }
 0x1e9   : > { %v924_v13 = vmul.f32 %v8768_v19, %v899_v62  ;;  %v967_v34 = vmul.f32 %v8769_v15, %v942_v8  ;;  %v925_v58 = vmul.f32 %v8770_v41, %v900_v61  ;;  %v1019_v38 = vmul.f32 %v8771_v57, %v1002_v47  ;;  %v8777_v62 = vld [vmem:[#allocation66_spill] sm:$0xff] }
 0x1ea   : > { %v1056_v45 = vsel %vm1048_vm8, %v8773_v30, %v8772_v52  ;;  %v1051_v16 = vsel %vm1048_vm8, %v8774_v28, %v8773_v30  ;;  %v1022_v6 = vmul.f32 %v8775_v43, %v997_v1  ;;  %v1020_v25 = vmul.f32 %v8776_v50, %v995_v59  ;;  %v8778_v63 = vld [vmem:[#allocation14_spill] sm:$0xff]  ;;  %v5970_v41 = vpop.permute.xlu0 %1566  ;;  %v5972_v56 = vpop.permute.xlu1 %1568  ;;  %v8779_v1 = vld [vmem:[#allocation68_spill] sm:$0xff]  ;;  %v8780_v50 = vld [vmem:[#allocation69_spill] sm:$0xff] }
 0x1eb   : > { %v1021_v8 = vmul.f32 %v8777_v62, %v996_v24  ;;  %v1049_v61 = vsel %vm1048_vm8, %v8772_v52, %v8778_v63  ;;  %v927_v47 = vadd.f32 %v923_v54, %v881_v40  ;;  %v973_v57 = vrot.slane %v965_v18, 2 }
 0x1ec   : > { %v976_v19 = vrot.slane %v968_v23, 2  ;;  %v974_v15 = vrot.slane %v966_v12, 2  ;;  %v975_v0 = vrot.slane %v967_v34, 2  ;;  %v1073_v30 = vmul.f32 %v5618_v5, %v1056_v45  ;;  %v8781_v5 = vld [vmem:[#allocation70_spill] sm:$0xff] }
 0x1ed   : > { %v1076_v43 = vmul.f32 %v8779_v1, %v1051_v16  ;;  %v1050_v59 = vsel %vm1048_vm8, %v8778_v63, %v8774_v28  ;;  %v930_v24 = vadd.f32 %v926_v22, %v884_v20  ;;  %v928_v62 = vadd.f32 %v924_v13, %v882_v48 }
 0x1ee   : > { %v929_v52 = vadd.f32 %v925_v58, %v883_v44  ;;  %v1074_v21 = vmul.f32 %v8780_v50, %v1049_v61  ;;  %v1027_v40 = vrot.slane %v1019_v38, 4  ;;  %v1030_v54 = vrot.slane %v1022_v6, 4  ;;  %v5980_v23 = vpop.permute.xlu0 %1570  ;;  %v5983_v1 = vpop.permute.xlu1 %1572  ;;  %v8790_v61 = vld [vmem:[#allocation19_spill] sm:$0xff]  ;;  %v8801_v50 = vld [vmem:[#allocation78_spill] sm:$0xff] }
 0x1ef   : > { %v1028_v12 = vrot.slane %v1020_v25, 4  ;;  %v1029_v18 = vrot.slane %v1021_v8, 4  ;;  %v981_v34 = vadd.f32 %v973_v57, %v927_v47  ;;  %v984_v45 = vadd.f32 %v976_v19, %v930_v24  ;;  %v8785_v19 = vld [vmem:[#allocation48_spill] sm:$0xff] }
 0x1f0   : > { %v1075_v16 = vmul.f32 %v8781_v5, %v1050_v59  ;;  %v5987_v28 = vrot.slane %v5717_v36, %v5545_v10  ;;  %v982_v20 = vadd.f32 %v974_v15, %v928_v62  ;;  %v983_v22 = vadd.f32 %v975_v0, %v929_v52  ;;  %v8789_v62 = vld [vmem:[#allocation15_spill] sm:$0xff]  ;;  %v8791_v47 = vld [vmem:[#allocation20_spill] sm:$0xff] }
 0x1f1   : > { %v1081_v13 = vrot.slane %v1073_v30, 6  ;;  %v1084_v58 = vrot.slane %v1076_v43, 6  ;;  %v1082_v48 = vrot.slane %v1074_v21, 6  ;;  %v5991_v44 = vrot.slane %v5734_v37, %v5545_v10  ;;  %v8788_v21 = vld [vmem:[#allocation16_spill] sm:$0xff]  ;;  %v8792_v30 = vld [vmem:[#allocation21_spill] sm:$0xff] }
 0x1f2   : > { %8782 = vst [vmem:[#allocation6_spill] sm:$0xff] %v5987_v28  ;;  %v5995_v57 = vrot.slane %v5739_v32, %v5545_v10  ;;  %v5999_v38 = vrot.slane %v5700_v2, %v8785_v19  ;;  %v1035_v6 = vadd.f32 %v1027_v40, %v981_v34  ;;  %v1038_v25 = vadd.f32 %v1030_v54, %v984_v45  ;;  %v6001_v0 = vpop.permute.xlu0 %1619  ;;  %v6012_v24 = vpop.permute.xlu1 %1621  ;;  %v8794_v54 = vld [vmem:[#allocation17_spill] sm:$0xff] }
 0x1f3   : > { %8783 = vst [vmem:[#allocation7_spill] sm:$0xff] %v5991_v44  ;;  %v1036_v8 = vadd.f32 %v1028_v12, %v982_v20  ;;  %v1037_v15 = vadd.f32 %v1029_v18, %v983_v22  ;;  %8787 = vst [vmem:[#allocation10_spill] sm:$0xff] %v6001_v0  ;;  %v1083_v43 = vrot.slane %v1075_v16, 6  ;;  %v1114_v63 = vsel %vm1106_vm9, %v8789_v62, %v8788_v21  ;;  %v8795_v18 = vld [vmem:[#allocation22_spill] sm:$0xff] }
 0x1f4   : > { %8784 = vst [vmem:[#allocation8_spill] sm:$0xff] %v5995_v57  ;;  %8786 = vst [vmem:[#allocation9_spill] sm:$0xff] %v5999_v38  ;;  %v1156_v10 = vsel %vm1148_vm10, %v8791_v47, %v8790_v61  ;;  %v1151_v59 = vsel %vm1148_vm10, %v8792_v30, %v8791_v47  ;;  %v1089_v52 = vadd.f32 %v1081_v13, %v1035_v6  ;;  %v8796_v16 = vld [vmem:[#allocation18_spill] sm:$0xff]  ;;  %v8797_v47 = vld [vmem:[#allocation23_spill] sm:$0xff] }
 0x1f5   : > { %8793 = vst [vmem:[#allocation11_spill] sm:$0xff] %v6012_v24  ;;  %v1092_v40 = vadd.f32 %v1084_v58, %v1038_v25  ;;  %v1109_v12 = vsel %vm1106_vm9, %v8794_v54, %v8789_v62  ;;  %v1149_v34 = vsel %vm1148_vm10, %v8790_v61, %v8795_v18  ;;  %v1090_v45 = vadd.f32 %v1082_v48, %v1036_v8  ;;  %v8798_v13 = vld [vmem:[#allocation24_spill] sm:$0xff]  ;;  %v8799_v6 = vld [vmem:[#allocation71_spill] sm:$0xff]  ;;  %v8800_v62 = vld [vmem:[#allocation77_spill] sm:$0xff] }
 0x1f6   : > { %v1107_v20 = vsel %vm1106_vm9, %v8788_v21, %v8796_v16  ;;  %v1150_v22 = vsel %vm1148_vm10, %v8795_v18, %v8792_v30  ;;  %v1209_v58 = vsel %vm8637_vm0, %v8798_v13, %v8797_v47  ;;  %v1131_v25 = vmul.f32 %v8799_v6, %v1114_v63  ;;  %v8802_v48 = vld [vmem:[#allocation25_spill] sm:$0xff]  ;;  %v6035_v61 = vpop.permute.xlu0 %1623  ;;  %v8804_v57 = vld [vmem:[#allocation72_spill] sm:$0xff]  ;;  %v8805_v18 = vld [vmem:[#allocation79_spill] sm:$0xff]  ;;  %v6042_v63 = vpop.permute.xlu1 %1625 }
 0x1f7   : > { %v1173_v5 = vmul.f32 %v8800_v62, %v1156_v10  ;;  %v1176_v38 = vmul.f32 %v8801_v50, %v1151_v59  ;;  %v1204_v8 = vsel %vm8637_vm0, %v8802_v48, %v8798_v13  ;;  %8803 = vst [vmem:[#allocation12_spill] sm:$0xff] %v6035_v61  ;;  %v1091_v21 = vadd.f32 %v1083_v43, %v1037_v15  ;;  %v8807_v10 = vld [vmem:[#allocation73_spill] sm:$0xff]  ;;  %v8808_v59 = vld [vmem:[#allocation80_spill] sm:$0xff]  ;;  %v8810_v13 = vld [vmem:[#allocation27_spill] sm:$0xff] }
 0x1f8   : > { %v1134_v44 = vmul.f32 %v8804_v57, %v1109_v12  ;;  %v1108_v30 = vsel %vm1106_vm9, %v8796_v16, %v8794_v54  ;;  %v1174_v28 = vmul.f32 %v8805_v18, %v1149_v34  ;;  %8806 = vst [vmem:[#allocation13_spill] sm:$0xff] %v6042_v63  ;;  %v1132_v62 = vmul.f32 %v8807_v10, %v1107_v20  ;;  %v8809_v6 = vld [vmem:[#allocation81_spill] sm:$0xff]  ;;  %v8812_v43 = vld [vmem:[#allocation82_spill] sm:$0xff]  ;;  %v8814_v16 = vld [vmem:[#allocation31_spill] sm:$0xff] }
 0x1f9   : > { %v1175_v50 = vmul.f32 %v8808_v59, %v1150_v22  ;;  %v1226_v55 = vmul.f32 %v8809_v6, %v1209_v58  ;;  %v1263_v15 = vsel %vm8631_vm11, %v8811_v53, %v8810_v13  ;;  %v1229_v12 = vmul.f32 %v8812_v43, %v1204_v8  ;;  %v8813_v57 = vld [vmem:[#allocation26_spill] sm:$0xff]  ;;  %v8817_v43 = vld [vmem:[#allocation85_spill] sm:$0xff]  ;;  %v8818_v61 = vld [vmem:[#allocation32_spill] sm:$0xff] }
 0x1fa   : > { %v1202_v54 = vsel %vm8637_vm0, %v8797_v47, %v8813_v57  ;;  %v1203_v34 = vsel %vm8637_vm0, %v8813_v57, %v8802_v48  ;;  %v1258_v20 = vsel %vm8631_vm11, %v8814_v16, %v8811_v53  ;;  %v1135_v22 = vadd.f32 %v1131_v25, %v1089_v52  ;;  %v8815_v58 = vld [vmem:[#allocation74_spill] sm:$0xff]  ;;  %v6061_v18 = vpop.permute.xlu0 %1676  ;;  %v6070_v48 = vpop.permute.xlu1 %1678  ;;  %v8819_v52 = vld [vmem:[#allocation83_spill] sm:$0xff] }
 0x1fb   : > { %v1133_v6 = vmul.f32 %v8815_v58, %v1108_v30  ;;  %v1181_v59 = vrot.slane %v1173_v5, 2  ;;  %v1184_v10 = vrot.slane %v1176_v38, 2  ;;  %8816 = vst [vmem:[#allocation14_spill] sm:$0xff] %v6061_v18  ;;  %v1182_v8 = vrot.slane %v1174_v28, 2  ;;  %v8820_v5 = vld [vmem:[#allocation84_spill] sm:$0xff]  ;;  %v8821_v30 = vld [vmem:[#allocation86_spill] sm:$0xff] }
 0x1fc   : > { %v1280_v63 = vmul.f32 %v8817_v43, %v1263_v15  ;;  %v1256_v47 = vsel %vm8631_vm11, %v8810_v13, %v8818_v61  ;;  %v1257_v57 = vsel %vm8631_vm11, %v8818_v61, %v8814_v16  ;;  %v1138_v53 = vadd.f32 %v1134_v44, %v1092_v40  ;;  %v8822_v13 = vld [vmem:[#allocation87_spill] sm:$0xff]  ;;  %v8824_v61 = vld [vmem:[#allocation45_spill] sm:$0xff]  ;;  %v8825_v16 = vld [vmem:[#allocation58_spill] sm:$0xff] }
 0x1fd   : > { %v1227_v25 = vmul.f32 %v8819_v52, %v1202_v54  ;;  %v1228_v38 = vmul.f32 %v8820_v5, %v1203_v34  ;;  %v1283_v58 = vmul.f32 %v8821_v30, %v1258_v20  ;;  %v1136_v28 = vadd.f32 %v1132_v62, %v1090_v45  ;;  %v3286_v54 = vld [vmem:[%s8299_s7] sm:$0x3] }
 0x1fe   : > { %v1183_v15 = vrot.slane %v1175_v50, 2  ;;  %v1234_v43 = vrot.slane %v1226_v55, 4  ;;  %v1237_v18 = vrot.slane %v1229_v12, 4  ;;  %v1137_v0 = vadd.f32 %v1133_v6, %v1091_v21  ;;  %v6080_v40 = vpop.permute.xlu0 %1680  ;;  %v6085_v62 = vpop.permute.xlu1 %1682  ;;  %3289 = vperm.xlu1 %4992, %v3286_v54   ;;  %v8873_v52 = vld [vmem:[#allocation10_spill] sm:$0xff] }
 0x1ff   : > { %v1281_v24 = vmul.f32 %v8822_v13, %v1256_v47  ;;  %v1282_v49 = vmul.f32 %v8823_v4, %v1257_v57  ;;  %v1321_v44 = vsel %vm8480_vm12, %v5759_v3, %v8824_v61  ;;  %v1189_v34 = vadd.f32 %v1181_v59, %v1135_v22  ;;  %v8826_v13 = vld [vmem:[#allocation95_spill] sm:$0xff] }
 0x200   : > { %v1192_v45 = vadd.f32 %v1184_v10, %v1138_v53  ;;  %v1190_v50 = vadd.f32 %v1182_v8, %v1136_v28  ;;  %v1288_v55 = vrot.slane %v1280_v63, 6  ;;  %v1235_v6 = vrot.slane %v1227_v25, 4  ;;  %v8827_v8 = vld [vmem:[#allocation76_spill] sm:$0xff]  ;;  %v8832_v28 = vld [vmem:[#allocation94_spill] sm:$0xff] }
 0x201   : > { %v1236_v21 = vrot.slane %v1228_v38, 4  ;;  %v1291_v12 = vrot.slane %v1283_v58, 6  ;;  %v1316_v20 = vsel %vm8480_vm12, %v8825_v16, %v5759_v3  ;;  %v1191_v47 = vadd.f32 %v1183_v15, %v1137_v0  ;;  %v8828_v3 = vld [vmem:[#allocation44_spill] sm:$0xff] }
 0x202   : > { %v1242_v57 = vadd.f32 %v1234_v43, %v1189_v34  ;;  %v1245_v4 = vadd.f32 %v1237_v18, %v1192_v45  ;;  %v1338_v30 = vmul.f32 %v8826_v13, %v1321_v44  ;;  %v1289_v5 = vrot.slane %v1281_v24, 6  ;;  %v6097_v22 = vpop.permute.xlu0 %1717  ;;  %v8829_v18 = vld [vmem:[#allocation96_spill] sm:$0xff]  ;;  %v6103_v53 = vpop.permute.xlu1 %1719 }
 0x203   : > { %v1290_v59 = vrot.slane %v1282_v49, 6  ;;  %v1314_v63 = vsel %vm8480_vm12, %v8824_v61, %v5813_v42  ;;  %v1315_v10 = vsel %vm8480_vm12, %v5813_v42, %v8825_v16  ;;  %v1367_v0 = vsel %vm8636_vm13, %v8828_v3, %v8827_v8  ;;  %v8835_v16 = vld [vmem:[#allocation75_spill] sm:$0xff] }
 0x204   : > { %v1296_v58 = vadd.f32 %v1288_v55, %v1242_v57  ;;  %v1341_v43 = vmul.f32 %v8829_v18, %v1316_v20  ;;  %v6107_v49 = vrot.slane %v5717_v36, %v8785_v19  ;;  %v1243_v24 = vadd.f32 %v1235_v6, %v1190_v50  ;;  %v8833_v50 = vld [vmem:[#allocation57_spill] sm:$0xff] }
 0x205   : > { %v1244_v25 = vadd.f32 %v1236_v21, %v1191_v47  ;;  %v1299_v38 = vadd.f32 %v1291_v12, %v1245_v4  ;;  %v6111_v42 = vrot.slane %v5734_v37, %v8785_v19  ;;  %v1375_v15 = vsel %vm8636_vm13, %v8832_v28, %v8828_v3  ;;  %v8834_v55 = vld [vmem:[#allocation89_spill] sm:$0xff]  ;;  %v8836_v47 = vld [vmem:[#allocation91_spill] sm:$0xff] }
 0x206   : > { %8830 = vst [vmem:[#allocation48_spill] sm:$0xff] %v6107_v49  ;;  %v1342_v61 = vadd.f32 %v1338_v30, %v1296_v58  ;;  %v1339_v44 = vmul.f32 %v5745_v26, %v1314_v63  ;;  %v1340_v54 = vmul.f32 %v5748_v27, %v1315_v10  ;;  %vm8495_vm12 = vcmask 973824   ;;  %v6122_v21 = vpop.permute.xlu0 %1721  ;;  %v6133_v57 = vpop.permute.xlu1 %1723 }
 0x207   : > { %8831 = vst [vmem:[#allocation16_spill] sm:$0xff] %v6111_v42  ;;  %v1297_v34 = vadd.f32 %v1289_v5, %v1243_v24  ;;  %v1298_v45 = vadd.f32 %v1290_v59, %v1244_v25  ;;  %v1368_v4 = vsel %vm8636_vm13, %v8827_v8, %v8833_v50  ;;  %v1392_v6 = vmul.f32 %v8834_v55, %v1367_v0  ;;  %v8837_v59 = vld [vmem:[#allocation93_spill] sm:$0xff]  ;;  %v8839_v8 = vld [vmem:[#allocation52_spill] sm:$0xff]  ;;  %v8841_v0 = vld [vmem:[#allocation90_spill] sm:$0xff] }
 0x208   : > { %v1369_v12 = vsel %vm8636_vm13, %v8833_v50, %v8832_v28  ;;  %v1345_v30 = vadd.f32 %v1341_v43, %v1299_v38  ;;  %v1421_v20 = vsel %vm8635_vm14, %v8835_v16, %v5761_v60  ;;  %v1422_v5 = vsel %vm8635_vm14, %v5761_v60, %v8836_v47  ;;  %v8842_v24 = vld [vmem:[#allocation2_spill] sm:$0xff]  ;;  %v8844_v50 = vld [vmem:[#allocation92_spill] sm:$0xff] }
 0x209   : > { %v1395_v63 = vmul.f32 %v8837_v59, %v1375_v15  ;;  %v1423_v10 = vsel %vm8635_vm14, %v8836_v47, %v5811_v29  ;;  %v6141_v58 = vrot.slane %v5739_v32, %v8785_v19  ;;  %v6145_v3 = vrot.slane %v5700_v2, %v8839_v8  ;;  %v6153_v15 = vld [vmem:[%s8293_s1 + $0x60] sm:$0x7]  ;;  %v8845_v19 = vld [vmem:[#allocation97_spill] sm:$0xff] }
 0x20a   : > { %v1393_v43 = vmul.f32 %v8841_v0, %v1368_v4  ;;  %v8843_v60 = vrot.slane %v8842_v24, 2  ;;  %v1343_v38 = vadd.f32 %v1339_v44, %v1297_v34  ;;  %v1344_v28 = vadd.f32 %v1340_v54, %v1298_v45  ;;  %v8846_v55 = vld [vmem:[#allocation98_spill] sm:$0xff]  ;;  %v6161_v4 = vpop.permute.xlu0 %1770  ;;  %v8847_v44 = vld [vmem:[#allocation5_spill] sm:$0xff]  ;;  %v8849_v45 = vld [vmem:[#allocation99_spill] sm:$0xff] }
 0x20b   : > { %8838 = vst [vmem:[#allocation15_spill] sm:$0xff] %v6141_v58  ;;  %8840 = vst [vmem:[#allocation19_spill] sm:$0xff] %v6145_v3  ;;  %v1394_v47 = vmul.f32 %v8844_v50, %v1369_v12  ;;  %v1446_v59 = vmul.f32 %v8845_v19, %v1421_v20  ;;  %v1447_v27 = vmul.f32 %v8846_v55, %v1422_v5  ;;  %v8848_v54 = vrot.slane %v8847_v44, 2  ;;  %v8855_v44 = vld [vmem:[#allocation4_spill] sm:$0xff] }
 0x20c   : > { %v1354_v25 = vadd.f32 %v8843_v60, %v1342_v61  ;;  %v1429_v2 = vsel %vm8635_vm14, %v5811_v29, %v8835_v16  ;;  %v1400_v61 = vrot.slane %v1392_v6, 4  ;;  %v1448_v24 = vmul.f32 %v8849_v45, %v1423_v10  ;;  %v6166_v60 = vpop.permute.xlu1 %1772  ;;  %v8854_v16 = vld [vmem:[#allocation100_spill] sm:$0xff]  ;;  %v8857_v45 = vld [vmem:[#allocation3_spill] sm:$0xff] }
 0x20d   : > { %v1357_v34 = vadd.f32 %v8848_v54, %v1345_v30  ;;  %v6170_v12 = vrot.slane %v5717_v36, %v8839_v8  ;;  %v1403_v20 = vrot.slane %v1395_v63, 4  ;;  %v6174_v5 = vrot.slane %v5734_v37, %v8839_v8 }
 0x20e   : > { %v6178_v29 = vrot.slane %v5739_v32, %v8839_v8  ;;  %v6182_v6 = vrot.slane %v6153_v15, %v5472_v31  ;;  %v1408_v30 = vadd.f32 %v1400_v61, %v1354_v25  ;;  %v1449_v10 = vmul.f32 %v8854_v16, %v1429_v2  ;;  %v6189_v26 = vpop.permute.xlu0 %1774 }
 0x20f   : > { %8850 = vst [vmem:[#allocation20_spill] sm:$0xff] %v6170_v12  ;;  %8851 = vst [vmem:[#allocation21_spill] sm:$0xff] %v6174_v5  ;;  %v8856_v54 = vrot.slane %v8855_v44, 2  ;;  %v8858_v63 = vrot.slane %v8857_v45, 2  ;;  %v1401_v19 = vrot.slane %v1393_v43, 4  ;;  %v1402_v37 = vrot.slane %v1394_v47, 4 }
 0x210   : > { %8852 = vst [vmem:[#allocation17_spill] sm:$0xff] %v6178_v29  ;;  %8853 = vst [vmem:[#allocation22_spill] sm:$0xff] %v6182_v6  ;;  %v1454_v50 = vrot.slane %v1446_v59, 6  ;;  %v1455_v0 = vrot.slane %v1447_v27, 6  ;;  %v1411_v32 = vadd.f32 %v1403_v20, %v1357_v34  ;;  %v1456_v8 = vrot.slane %v1448_v24, 6  ;;  %v8859_v45 = vld [vmem:[#allocation103_spill] sm:$0xff] }
 0x211   : > { %v1355_v36 = vadd.f32 %v8856_v54, %v1343_v38  ;;  %v1356_v55 = vadd.f32 %v8858_v63, %v1344_v28  ;;  %v1479_v25 = vsel %vm8496_vm15, %v5838_v7, %v5840_v46  ;;  %v1480_v2 = vsel %vm8496_vm15, %v5840_v46, %v5864_v51  ;;  %v6197_v38 = vpop.permute.xlu1 %1776  ;;  %v8860_v20 = vld [vmem:[#allocation104_spill] sm:$0xff]  ;;  %v8861_v63 = vld [vmem:[#allocation107_spill] sm:$0xff] }
 0x212   : > { %v1521_v43 = vsel %vm8495_vm12, %v5899_v14, %v5901_v35  ;;  %v1522_v27 = vsel %vm8495_vm12, %v5901_v35, %v5940_v9  ;;  %v1523_v59 = vsel %vm8495_vm12, %v5940_v9, %v5942_v11  ;;  %v1529_v28 = vsel %vm8495_vm12, %v5942_v11, %v5899_v14  ;;  %v6219_v54 = vpop.permute.xlu0 %1823  ;;  %v8862_v14 = vld [vmem:[#allocation108_spill] sm:$0xff] }
 0x213   : > { %v1462_v47 = vadd.f32 %v1454_v50, %v1408_v30  ;;  %v1457_v46 = vrot.slane %v1449_v10, 6  ;;  %v1409_v61 = vadd.f32 %v1401_v19, %v1355_v36  ;;  %v1410_v34 = vadd.f32 %v1402_v37, %v1356_v55  ;;  %v8863_v19 = vld [vmem:[#allocation109_spill] sm:$0xff]  ;;  %v8864_v30 = vld [vmem:[#allocation110_spill] sm:$0xff] }
 0x214   : > { %v1504_v24 = vmul.f32 %v8859_v45, %v1479_v25  ;;  %v1505_v44 = vmul.f32 %v8860_v20, %v1480_v2  ;;  %v1481_v35 = vsel %vm8496_vm15, %v5864_v51, %v5866_v39  ;;  %v1487_v9 = vsel %vm8496_vm15, %v5866_v39, %v5838_v7  ;;  %v6230_v51 = vld [vmem:[%s8293_s1 + $0x68] sm:$0x7]  ;;  %v6235_v7 = vld [vmem:[%s8293_s1 + $0x70] sm:$0x7]  ;;  %v6240_v39 = vld [vmem:[%s8293_s1 + $0x78] sm:$0x7] }
 0x215   : > { %v1546_v11 = vmul.f32 %v8861_v63, %v1521_v43  ;;  %v1547_v50 = vmul.f32 %v8862_v14, %v1522_v27  ;;  %v1548_v55 = vmul.f32 %v8863_v19, %v1523_v59  ;;  %v1549_v10 = vmul.f32 %v8864_v30, %v1529_v28  ;;  %v6225_v36 = vpop.permute.xlu1 %1825  ;;  %v8865_v28 = vld [vmem:[#allocation105_spill] sm:$0xff]  ;;  %v8866_v19 = vld [vmem:[#allocation106_spill] sm:$0xff] }
 0x216   : > { %v1574_v37 = vsel %vm690_vm2, %v5970_v41, %v5972_v56  ;;  %v1575_v25 = vsel %vm690_vm2, %v5972_v56, %v5980_v23  ;;  %v1576_v2 = vsel %vm690_vm2, %v5980_v23, %v5983_v1  ;;  %v1582_v43 = vsel %vm690_vm2, %v5983_v1, %v5970_v41  ;;  %v6256_v63 = vpop.permute.xlu0 %1827 }
 0x217   : > { %v1463_v27 = vadd.f32 %v1455_v0, %v1409_v61  ;;  %v1464_v59 = vadd.f32 %v1456_v8, %v1410_v34  ;;  %v1506_v20 = vmul.f32 %v8865_v28, %v1481_v35  ;;  %v1507_v14 = vmul.f32 %v8866_v19, %v1487_v9  ;;  %v8870_v8 = vld [vmem:[#allocation113_spill] sm:$0xff] }
 0x218   : > { %v1465_v30 = vadd.f32 %v1457_v46, %v1411_v32  ;;  %v6260_v56 = vrot.slane %v6230_v51, %v5472_v31  ;;  %v6264_v23 = vrot.slane %v6235_v7, %v5472_v31  ;;  %v6268_v41 = vrot.slane %v6240_v39, %v5472_v31  ;;  %v8871_v46 = vld [vmem:[#allocation114_spill] sm:$0xff]  ;;  %v8872_v31 = vld [vmem:[#allocation11_spill] sm:$0xff] }
 0x219   : > { %v1599_v1 = vmul.f32 %v5822_v17, %v1574_v37  ;;  %v1600_v0 = vmul.f32 %v5844_v33, %v1575_v25  ;;  %v1601_v32 = vmul.f32 %v8870_v8, %v1576_v2  ;;  %v1602_v61 = vmul.f32 %v8871_v46, %v1582_v43  ;;  %v6274_v34 = vpop.permute.xlu1 %1829  ;;  %v8874_v17 = vld [vmem:[#allocation12_spill] sm:$0xff]  ;;  %v8875_v2 = vld [vmem:[#allocation13_spill] sm:$0xff] }
 0x21a   : > { %8867 = vst [vmem:[#allocation18_spill] sm:$0xff] %v6260_v56  ;;  %8868 = vst [vmem:[#allocation23_spill] sm:$0xff] %v6264_v23  ;;  %v1554_v35 = vrot.slane %v1546_v11, 2  ;;  %v1555_v9 = vrot.slane %v1547_v50, 2  ;;  %v1556_v28 = vrot.slane %v1548_v55, 2  ;;  %v1557_v19 = vrot.slane %v1549_v10, 2 }
 0x21b   : > { %8869 = vst [vmem:[#allocation24_spill] sm:$0xff] %v6268_v41  ;;  %v1508_v45 = vadd.f32 %v1504_v24, %v1462_v47  ;;  %v1509_v16 = vadd.f32 %v1505_v44, %v1463_v27  ;;  %v1510_v18 = vadd.f32 %v1506_v20, %v1464_v59  ;;  %v1511_v13 = vadd.f32 %v1507_v14, %v1465_v30  ;;  %v6288_v47 = vpop.permute.xlu0 %1880  ;;  %v8876_v59 = vld [vmem:[#allocation115_spill] sm:$0xff]  ;;  %v8877_v8 = vld [vmem:[#allocation116_spill] sm:$0xff]  ;;  %v8878_v33 = vld [vmem:[#allocation117_spill] sm:$0xff] }
 0x21c   : > { %v1627_v37 = vsel %vm732_vm1, %v8873_v52, %v8872_v31  ;;  %v1628_v25 = vsel %vm732_vm1, %v8872_v31, %v8874_v17  ;;  %v1629_v43 = vsel %vm732_vm1, %v8874_v17, %v8875_v2  ;;  %v1635_v11 = vsel %vm732_vm1, %v8875_v2, %v8873_v52  ;;  %v8879_v41 = vld [vmem:[#allocation118_spill] sm:$0xff]  ;;  %v8894_v23 = vld [vmem:[#allocation9_spill] sm:$0xff] }
 0x21d   : > { %v1607_v24 = vrot.slane %v1599_v1, 4  ;;  %v1608_v20 = vrot.slane %v1600_v0, 4  ;;  %v1609_v44 = vrot.slane %v1601_v32, 4  ;;  %v1610_v14 = vrot.slane %v1602_v61, 4  ;;  %v6290_v50 = vpop.permute.xlu1 %1882  ;;  %v8880_v1 = vld [vmem:[#allocation29_spill] sm:$0xff] }
 0x21e   : > { %v1562_v55 = vadd.f32 %v1554_v35, %v1508_v45  ;;  %v1563_v30 = vadd.f32 %v1555_v9, %v1509_v16  ;;  %v1564_v10 = vadd.f32 %v1556_v28, %v1510_v18  ;;  %v1565_v27 = vadd.f32 %v1557_v19, %v1511_v13 }
 0x21f   : > { %v1652_v31 = vmul.f32 %v8876_v59, %v1627_v37  ;;  %v1653_v17 = vmul.f32 %v8877_v8, %v1628_v25  ;;  %v1654_v46 = vmul.f32 %v8878_v33, %v1629_v43  ;;  %v1655_v52 = vmul.f32 %v8879_v41, %v1635_v11  ;;  %v6296_v2 = vpop.permute.xlu0 %1884  ;;  %v8892_v33 = vld [vmem:[#allocation121_spill] sm:$0xff]  ;;  %v8893_v41 = vld [vmem:[#allocation122_spill] sm:$0xff] }
 0x220   : > { %v6300_v0 = vrot.slane %v6153_v15, %v8880_v1  ;;  %v6304_v45 = vrot.slane %v6230_v51, %v8880_v1  ;;  %v6308_v13 = vrot.slane %v6235_v7, %v8880_v1  ;;  %v6312_v18 = vrot.slane %v6240_v39, %v8880_v1 }
 0x221   : > { %v1615_v16 = vadd.f32 %v1607_v24, %v1562_v55  ;;  %v1616_v19 = vadd.f32 %v1608_v20, %v1563_v30  ;;  %v1617_v28 = vadd.f32 %v1609_v44, %v1564_v10  ;;  %v1618_v32 = vadd.f32 %v1610_v14, %v1565_v27  ;;  %v6314_v61 = vpop.permute.xlu1 %1886  ;;  %v8885_v44 = vld [vmem:[#allocation14_spill] sm:$0xff]  ;;  %v8888_v27 = vld [vmem:[#allocation7_spill] sm:$0xff] }
 0x222   : > { %8881 = vst [vmem:[#allocation25_spill] sm:$0xff] %v6300_v0  ;;  %8882 = vst [vmem:[#allocation27_spill] sm:$0xff] %v6304_v45  ;;  %v1725_v35 = vsel %vm840_vm4, %v6097_v22, %v6103_v53  ;;  %v1726_v9 = vsel %vm840_vm4, %v6103_v53, %v6122_v21  ;;  %v1727_v37 = vsel %vm840_vm4, %v6122_v21, %v6133_v57  ;;  %v1660_v43 = vrot.slane %v1652_v31, 6  ;;  %v8887_v30 = vld [vmem:[#allocation6_spill] sm:$0xff] }
 0x223   : > { %8883 = vst [vmem:[#allocation28_spill] sm:$0xff] %v6308_v13  ;;  %8884 = vst [vmem:[#allocation26_spill] sm:$0xff] %v6312_v18  ;;  %v1733_v25 = vsel %vm840_vm4, %v6133_v57, %v6097_v22  ;;  %v1661_v11 = vrot.slane %v1653_v17, 6  ;;  %v1662_v24 = vrot.slane %v1654_v46, 6  ;;  %v1663_v20 = vrot.slane %v1655_v52, 6  ;;  %v6340_v57 = vpop.permute.xlu0 %1921  ;;  %v8886_v46 = vld [vmem:[#allocation123_spill] sm:$0xff] }
 0x224   : > { %v1684_v14 = vsel %vm786_vm3, %v8885_v44, %v6070_v48  ;;  %v1685_v53 = vsel %vm786_vm3, %v6070_v48, %v6080_v40  ;;  %v1686_v21 = vsel %vm786_vm3, %v6080_v40, %v6085_v62  ;;  %v1692_v22 = vsel %vm786_vm3, %v6085_v62, %v8885_v44  ;;  %v8889_v17 = vld [vmem:[#allocation8_spill] sm:$0xff] }
 0x225   : > { %v1750_v55 = vmul.f32 %v8886_v46, %v1725_v35  ;;  %v1751_v10 = vmul.f32 %v8887_v30, %v1726_v9  ;;  %v1752_v31 = vmul.f32 %v8888_v27, %v1727_v37  ;;  %v1753_v52 = vmul.f32 %v8889_v17, %v1733_v25  ;;  %v1924_v1 = vpop.permute.xlu1 %1923  ;;  %v8890_v27 = vld [vmem:[#allocation119_spill] sm:$0xff]  ;;  %v8891_v17 = vld [vmem:[#allocation120_spill] sm:$0xff] }
 0x226   : > { %v1778_v48 = vsel %vm898_vm5, %v6161_v4, %v6166_v60  ;;  %v1779_v40 = vsel %vm898_vm5, %v6166_v60, %v6189_v26  ;;  %v1780_v62 = vsel %vm898_vm5, %v6189_v26, %v6197_v38  ;;  %v1786_v35 = vsel %vm898_vm5, %v6197_v38, %v6161_v4 }
 0x227   : > { %v1668_v9 = vadd.f32 %v1660_v43, %v1615_v16  ;;  %v1669_v37 = vadd.f32 %v1661_v11, %v1616_v19  ;;  %v1670_v25 = vadd.f32 %v1662_v24, %v1617_v28  ;;  %v1671_v44 = vadd.f32 %v1663_v20, %v1618_v32  ;;  %v1926_v59 = vpop.permute.xlu0 %1925 }
 0x228   : > { %v1709_v30 = vmul.f32 %v8890_v27, %v1684_v14  ;;  %v1710_v46 = vmul.f32 %v8891_v17, %v1685_v53  ;;  %v1711_v8 = vmul.f32 %v8892_v33, %v1686_v21  ;;  %v1712_v60 = vmul.f32 %v8893_v41, %v1692_v22 }
 0x229   : > { %v1803_v56 = vmul.f32 %v8894_v23, %v1778_v48  ;;  %v1804_v26 = vmul.f32 %v6107_v49, %v1779_v40  ;;  %v1805_v6 = vmul.f32 %v6111_v42, %v1780_v62  ;;  %v1806_v4 = vmul.f32 %v6141_v58, %v1786_v35  ;;  %v1928_v38 = vpop.permute.xlu1 %1927 }
 0x22a   : > { %v1758_v16 = vrot.slane %v1750_v55, 2  ;;  %v1759_v19 = vrot.slane %v1751_v10, 2  ;;  %v1760_v28 = vrot.slane %v1752_v31, 2  ;;  %v1761_v32 = vrot.slane %v1753_v52, 2 }
 0x22b   : > { %v1831_v43 = vsel %vm940_vm6, %v6219_v54, %v6225_v36  ;;  %v1832_v11 = vsel %vm940_vm6, %v6225_v36, %v6256_v63  ;;  %v1833_v24 = vsel %vm940_vm6, %v6256_v63, %v6274_v34  ;;  %v1839_v20 = vsel %vm940_vm6, %v6274_v34, %v6219_v54  ;;  %v1975_v55 = vpop.permute.xlu0 %1974 }
 0x22c   : > { %v1713_v14 = vadd.f32 %v1709_v30, %v1668_v9  ;;  %v1714_v53 = vadd.f32 %v1710_v46, %v1669_v37  ;;  %v1715_v21 = vadd.f32 %v1711_v8, %v1670_v25  ;;  %v1716_v22 = vadd.f32 %v1712_v60, %v1671_v44  ;;  %v8895_v8 = vld [vmem:[#allocation30_spill] sm:$0xff] }
 0x22d   : > { %v1811_v10 = vrot.slane %v1803_v56, 4  ;;  %v1812_v31 = vrot.slane %v1804_v26, 4  ;;  %v1813_v52 = vrot.slane %v1805_v6, 4  ;;  %v1814_v48 = vrot.slane %v1806_v4, 4  ;;  %v1977_v40 = vpop.permute.xlu1 %1976 }
 0x22e   : > { %v1856_v36 = vmul.f32 %v6145_v3, %v1831_v43  ;;  %v1857_v62 = vmul.f32 %v6170_v12, %v1832_v11  ;;  %v1858_v63 = vmul.f32 %v6174_v5, %v1833_v24  ;;  %v1859_v35 = vmul.f32 %v6178_v29, %v1839_v20 }
 0x22f   : > { %v1766_v42 = vadd.f32 %v1758_v16, %v1713_v14  ;;  %v1767_v54 = vadd.f32 %v1759_v19, %v1714_v53  ;;  %v1768_v34 = vadd.f32 %v1760_v28, %v1715_v21  ;;  %v1769_v46 = vadd.f32 %v1761_v32, %v1716_v22  ;;  %v1979_v19 = vpop.permute.xlu0 %1978  ;;  %v8900_v53 = vld [vmem:[#allocation22_spill] sm:$0xff] }
 0x230   : > { %v6384_v30 = vrot.slane %v6153_v15, %v8895_v8  ;;  %v6388_v6 = vrot.slane %v6230_v51, %v8895_v8  ;;  %v6392_v56 = vrot.slane %v6235_v7, %v8895_v8  ;;  %v6396_v9 = vrot.slane %v6240_v39, %v8895_v8  ;;  %v8901_v22 = vld [vmem:[#allocation18_spill] sm:$0xff] }
 0x231   : > { %v1819_v37 = vadd.f32 %v1811_v10, %v1766_v42  ;;  %v1820_v25 = vadd.f32 %v1812_v31, %v1767_v54  ;;  %v1821_v44 = vadd.f32 %v1813_v52, %v1768_v34  ;;  %v1822_v60 = vadd.f32 %v1814_v48, %v1769_v46  ;;  %v1981_v28 = vpop.permute.xlu1 %1980  ;;  %v8903_v31 = vld [vmem:[#allocation24_spill] sm:$0xff] }
 0x232   : > { %8896 = vst [vmem:[#allocation31_spill] sm:$0xff] %v6384_v30  ;;  %8897 = vst [vmem:[#allocation32_spill] sm:$0xff] %v6388_v6  ;;  %v1864_v26 = vrot.slane %v1856_v36, 6  ;;  %v1865_v4 = vrot.slane %v1857_v62, 6  ;;  %v1866_v15 = vrot.slane %v1858_v63, 6  ;;  %v1867_v16 = vrot.slane %v1859_v35, 6 }
 0x233   : > { %8898 = vst [vmem:[#allocation45_spill] sm:$0xff] %v6392_v56  ;;  %8899 = vst [vmem:[#allocation58_spill] sm:$0xff] %v6396_v9  ;;  %v1929_v51 = vsel %vm1048_vm8, %v6340_v57, %v1924_v1  ;;  %v1930_v7 = vsel %vm1048_vm8, %v1924_v1, %v1926_v59  ;;  %v1931_v32 = vsel %vm1048_vm8, %v1926_v59, %v1928_v38  ;;  %vm8630_vm12 = vcmask 1041408  }
 0x234   : > { %v1937_v39 = vsel %vm1048_vm8, %v1928_v38, %v6340_v57  ;;  %v1888_v42 = vsel %vm994_vm7, %v6288_v47, %v6290_v50  ;;  %v1889_v43 = vsel %vm994_vm7, %v6290_v50, %v6296_v2  ;;  %v1890_v11 = vsel %vm994_vm7, %v6296_v2, %v6314_v61 }
 0x235   : > { %v1896_v1 = vsel %vm994_vm7, %v6314_v61, %v6288_v47  ;;  %v1982_v59 = vsel %vm1106_vm9, %v1975_v55, %v1977_v40  ;;  %v1983_v57 = vsel %vm1106_vm9, %v1977_v40, %v1979_v19  ;;  %v1984_v38 = vsel %vm1106_vm9, %v1979_v19, %v1981_v28  ;;  %v8902_v61 = vld [vmem:[#allocation23_spill] sm:$0xff] }
 0x236   : > { %v1990_v24 = vsel %vm1106_vm9, %v1981_v28, %v1975_v55  ;;  %v1954_v20 = vmul.f32 %v6300_v0, %v1929_v51  ;;  %v1955_v50 = vmul.f32 %v6304_v45, %v1930_v7  ;;  %v1956_v14 = vmul.f32 %v6308_v13, %v1931_v32 }
 0x237   : > { %v1957_v2 = vmul.f32 %v6312_v18, %v1937_v39  ;;  %v1913_v21 = vmul.f32 %v8900_v53, %v1888_v42  ;;  %v1914_v47 = vmul.f32 %v8901_v22, %v1889_v43  ;;  %v1915_v10 = vmul.f32 %v8902_v61, %v1890_v11 }
 0x238   : > { %v1916_v52 = vmul.f32 %v8903_v31, %v1896_v1  ;;  %v2007_v48 = vmul.f32 %v6384_v30, %v1982_v59  ;;  %v2008_v55 = vmul.f32 %v6388_v6, %v1983_v57  ;;  %v2009_v40 = vmul.f32 %v6392_v56, %v1984_v38 }
 0x239   : > { %v2010_v36 = vmul.f32 %v6396_v9, %v1990_v24  ;;  %v1872_v62 = vadd.f32 %v1864_v26, %v1819_v37  ;;  %v1873_v63 = vadd.f32 %v1865_v4, %v1820_v25  ;;  %v1874_v35 = vadd.f32 %v1866_v15, %v1821_v44  ;;  %v2031_v26 = vpop.permute.xlu0 %2030 }
 0x23a   : > { %v1875_v54 = vadd.f32 %v1867_v16, %v1822_v60  ;;  %v1962_v34 = vrot.slane %v1954_v20, 2  ;;  %v1963_v46 = vrot.slane %v1955_v50, 2  ;;  %v1964_v8 = vrot.slane %v1956_v14, 2 }
 0x23b   : > { %v1965_v19 = vrot.slane %v1957_v2, 2  ;;  %v1917_v28 = vadd.f32 %v1913_v21, %v1872_v62  ;;  %v1918_v51 = vadd.f32 %v1914_v47, %v1873_v63  ;;  %v1919_v7 = vadd.f32 %v1915_v10, %v1874_v35  ;;  %v2041_v21 = vld [vmem:[%s8296_s4] sm:$0xff]  ;;  %v2042_v10 = vld [vmem:[%s8296_s4 + $0x8] sm:$0xff]  ;;  %v2044_v62 = vld [vmem:[%s8296_s4 + $0x18] sm:$0xff] }
 0x23c   : > { %v1920_v32 = vadd.f32 %v1916_v52, %v1875_v54  ;;  %v2015_v39 = vrot.slane %v2007_v48, 4  ;;  %v2016_v42 = vrot.slane %v2008_v55, 4  ;;  %v2017_v43 = vrot.slane %v2009_v40, 4  ;;  %v4993_v52 = vld [vmem:[%s5111_s26 + $0x18] sm:$0xff]  ;;  %v4994_v48 = vld [vmem:[%s5111_s26 + $0x8] sm:$0xff]  ;;  %v4995_v55 = vld [vmem:[%s5111_s26 + $0x10] sm:$0xff] }
 0x23d   : > { %v2018_v11 = vrot.slane %v2010_v36, 4  ;;  %v1970_v1 = vadd.f32 %v1962_v34, %v1917_v28  ;;  %v1971_v59 = vadd.f32 %v1963_v46, %v1918_v51  ;;  %v1972_v57 = vadd.f32 %v1964_v8, %v1919_v7  ;;  %v4996_v40 = vld [vmem:[%s5111_s26] sm:$0xff]  ;;  %v2043_v36 = vld [vmem:[%s8296_s4 + $0x10] sm:$0xff]  ;;  %v2046_v35 = vld [vmem:[%s8296_s4 + $0x28] sm:$0xff] }
 0x23e   : > { %v1973_v38 = vadd.f32 %v1965_v19, %v1920_v32  ;;  %vm8629_vm15 = vcmask 15360   ;;  %v8904_v47 = vmov 0.0   ;;  %v2045_v63 = vld [vmem:[%s8296_s4 + $0x20] sm:$0xff]  ;;  %v2047_v54 = vld [vmem:[%s8296_s4 + $0x30] sm:$0xff]  ;;  %v2048_v34 = vld [vmem:[%s8296_s4 + $0x38] sm:$0xff] }
 0x23f   : > { %v2023_v37 = vadd.f32 %v2015_v39, %v1970_v1  ;;  %v2024_v25 = vadd.f32 %v2016_v42, %v1971_v59  ;;  %v2025_v44 = vadd.f32 %v2017_v43, %v1972_v57  ;;  %v2049_v46 = vld [vmem:[%s8296_s4 + $0x40] sm:$0xff]  ;;  %v2050_v8 = vld [vmem:[%s8296_s4 + $0x48] sm:$0xff]  ;;  %v2051_v19 = vld [vmem:[%s8296_s4 + $0x50] sm:$0xff] }
 0x240   : > { %v2026_v60 = vadd.f32 %v2018_v11, %v1973_v38  ;;  %v2052_v28 = vld [vmem:[%s8296_s4 + $0x58] sm:$0xff]  ;;  %v2053_v51 = vld [vmem:[%s8296_s4 + $0x60] sm:$0xff]  ;;  %v2054_v7 = vld [vmem:[%s8296_s4 + $0x68] sm:$0xf] }
 0x241   : > { %v2033_v4 = vadd.f32 %v2031_v26, %v2023_v37  ;;  %v2035_v15 = vadd.f32 %v2031_v26, %v2025_v44  ;;  %v2034_v16 = vadd.f32 %v2031_v26, %v2024_v25  ;;  %v3285_v32 = vld [vmem:[%s8298_s6] sm:$0x3] }
 0x242   : > { %v2036_v24 = vadd.f32 %v2031_v26, %v2026_v60 }
 0x243   : > { %v2037_v20 = vmax.f32 %v2033_v4, 0.0  ;;  %v2039_v50 = vmax.f32 %v2035_v15, 0.0  ;;  %v2038_v14 = vmax.f32 %v2034_v16, 0.0 }
 0x244   : > { %v2040_v2 = vmax.f32 %v2036_v24, 0.0 }
 0x245   : > { %4902 = vmatprep.subr.msk.mxu0 %vm8630_vm12, %v2038_v14 }
 0x246   : > { %4918 = vmatprep.subr.msk.mxu1 %vm8630_vm12, %v2040_v2  ;;  %4903 = vmatpush1.msk.msra.mxu0 %vm8630_vm12, %v2037_v20 }
 0x247   : > { %4919 = vmatpush1.msk.msra.mxu1 %vm8630_vm12, %v2039_v50  ;;  %4904 = vmatmul.mubr.msk.f32.vlgmr.msra.gmra.mrb[14].mxu0 %vm8629_vm15, %v2041_v21 }
 0x248   : > { %4920 = vmatmul.mubr.msk.f32.vlgmr.msra.gmra.mrb[14].mxu1 %vm8629_vm15, %v2041_v21  ;;  %2181 = vmatprep.mubr.f32.mxu0 %v8904_v47 }
 0x249   : > { %2330 = vmatprep.mubr.f32.mxu1 %v8904_v47  ;;  %3366 = vmatprep.subr.mxu1 %v4993_v52 }
 0x24a   : > { %3295 = vmatprep.subr.mxu0 %v4994_v48  ;;  %3367 = vmatpush1.msra.mxu1 %v4995_v55 }
 0x24b   : > { %3296 = vmatpush1.msra.mxu0 %v4996_v40 }
 0x24c   : > { %4905 = vmatmul.mubr.msk.f32.gmra.mrb[16].mxu0 %vm8629_vm15, %v2042_v10  ;;  %4921 = vmatmul.mubr.msk.f32.gmra.mrb[16].mxu1 %vm8629_vm15, %v2042_v10 }
 0x24d   : > { %2187 = vmatprep.mubr.f32.mxu0 %v8904_v47  ;;  %2336 = vmatprep.mubr.f32.mxu1 %v8904_v47 }
 0x250   : > { %4906 = vmatmul.mubr.msk.f32.gmra.mrb[18].mxu0 %vm8629_vm15, %v2043_v36  ;;  %4922 = vmatmul.mubr.msk.f32.gmra.mrb[18].mxu1 %vm8629_vm15, %v2043_v36 }
 0x251   : > { %2193 = vmatprep.mubr.f32.mxu0 %v8904_v47  ;;  %2342 = vmatprep.mubr.f32.mxu1 %v8904_v47 }
 0x254   : > { %4907 = vmatmul.mubr.msk.f32.gmra.mrb[20].mxu0 %vm8629_vm15, %v2044_v62  ;;  %4923 = vmatmul.mubr.msk.f32.gmra.mrb[20].mxu1 %vm8629_vm15, %v2044_v62 }
 0x255   : > { %2199 = vmatprep.mubr.f32.mxu0 %v8904_v47  ;;  %2348 = vmatprep.mubr.f32.mxu1 %v8904_v47 }
 0x258   : > { %4908 = vmatmul.mubr.msk.f32.gmra.mrb[22].mxu0 %vm8629_vm15, %v2045_v63  ;;  %4924 = vmatmul.mubr.msk.f32.gmra.mrb[22].mxu1 %vm8629_vm15, %v2045_v63 }
 0x259   : > { %2205 = vmatprep.mubr.f32.mxu0 %v8904_v47  ;;  %2354 = vmatprep.mubr.f32.mxu1 %v8904_v47 }
 0x25c   : > { %4909 = vmatmul.mubr.msk.f32.gmra.mrb[24].mxu0 %vm8629_vm15, %v2046_v35  ;;  %4925 = vmatmul.mubr.msk.f32.gmra.mrb[24].mxu1 %vm8629_vm15, %v2046_v35 }
 0x25d   : > { %2211 = vmatprep.mubr.f32.mxu0 %v8904_v47  ;;  %2360 = vmatprep.mubr.f32.mxu1 %v8904_v47 }
 0x260   : > { %4910 = vmatmul.mubr.msk.f32.gmra.mrb[26].mxu0 %vm8629_vm15, %v2047_v54  ;;  %4926 = vmatmul.mubr.msk.f32.gmra.mrb[26].mxu1 %vm8629_vm15, %v2047_v54 }
 0x261   : > { %2217 = vmatprep.mubr.f32.mxu0 %v8904_v47  ;;  %2366 = vmatprep.mubr.f32.mxu1 %v8904_v47 }
 0x264   : > { %4911 = vmatmul.mubr.msk.f32.gmra.mrb[28].mxu0 %vm8629_vm15, %v2048_v34  ;;  %4927 = vmatmul.mubr.msk.f32.gmra.mrb[28].mxu1 %vm8629_vm15, %v2048_v34 }
 0x265   : > { %2223 = vmatprep.mubr.f32.mxu0 %v8904_v47  ;;  %2372 = vmatprep.mubr.f32.mxu1 %v8904_v47 }
 0x268   : > { %4912 = vmatmul.mubr.msk.f32.gmra.mrb[30].mxu0 %vm8629_vm15, %v2049_v46  ;;  %4928 = vmatmul.mubr.msk.f32.gmra.mrb[30].mxu1 %vm8629_vm15, %v2049_v46 }
 0x269   : > { %2229 = vmatprep.mubr.f32.mxu0 %v8904_v47  ;;  %2378 = vmatprep.mubr.f32.mxu1 %v8904_v47 }
 0x26c   : > { %4913 = vmatmul.mubr.msk.f32.gmra.mrb[32].mxu0 %vm8629_vm15, %v2050_v8  ;;  %4929 = vmatmul.mubr.msk.f32.gmra.mrb[32].mxu1 %vm8629_vm15, %v2050_v8 }
 0x26d   : > { %2235 = vmatprep.mubr.f32.mxu0 %v8904_v47  ;;  %2384 = vmatprep.mubr.f32.mxu1 %v8904_v47 }
 0x270   : > { %4914 = vmatmul.mubr.msk.f32.gmra.mrb[34].mxu0 %vm8629_vm15, %v2051_v19  ;;  %4930 = vmatmul.mubr.msk.f32.gmra.mrb[34].mxu1 %vm8629_vm15, %v2051_v19 }
 0x271   : > { %2241 = vmatprep.mubr.f32.mxu0 %v8904_v47  ;;  %2390 = vmatprep.mubr.f32.mxu1 %v8904_v47 }
 0x274   : > { %4915 = vmatmul.mubr.msk.f32.gmra.mrb[36].mxu0 %vm8629_vm15, %v2052_v28  ;;  %4931 = vmatmul.mubr.msk.f32.gmra.mrb[36].mxu1 %vm8629_vm15, %v2052_v28 }
 0x275   : > { %2247 = vmatprep.mubr.f32.mxu0 %v8904_v47  ;;  %2396 = vmatprep.mubr.f32.mxu1 %v8904_v47 }
 0x278   : > { %4916 = vmatmul.mubr.msk.f32.gmra.mrb[38].mxu0 %vm8629_vm15, %v2053_v51  ;;  %4932 = vmatmul.mubr.msk.f32.gmra.mrb[38].mxu1 %vm8629_vm15, %v2053_v51 }
 0x279   : > { %2253 = vmatprep.mubr.f32.mxu0 %v8904_v47  ;;  %2402 = vmatprep.mubr.f32.mxu1 %v8904_v47 }
 0x27c   : > { %4917 = vmatmul.mubr.msk.f32.gmra.mrb[40].mxu0 %vm8629_vm15, %v2054_v7  ;;  %4933 = vmatmul.mubr.msk.f32.gmra.mrb[40].mxu1 %vm8629_vm15, %v2054_v7 }
 0x27d   : > { %3359 = vmatprep.mubr.f32.mxu0 %v8904_v47  ;;  %3430 = vmatprep.mubr.f32.mxu1 %v8904_v47  ;;  %v3290_v61 = vpop.permute.xlu1 %3289 }
 0x280   : > { %4934 = vmatmul.mubr.msk.f32.vlgmr.msra.gmra.mrb[42].mxu0 %vm8637_vm0, %v3285_v32  ;;  %4935 = vmatmul.mubr.msk.f32.vlgmr.msra.gmra.mrb[42].mxu1 %vm8637_vm0, %v3285_v32 }
 0x281   : > { %3545 = vmatprep.mubr.f32.mxu0 %v8904_v47  ;;  %3652 = vmatprep.mubr.f32.mxu1 %v8904_v47 }
 0x31a   : > { %v2177_v39 = vpop.f32.mrb[14].mxu0 }
 0x31b   : > { %v2326_v42 = vpop.f32.mrb[14].mxu1  ;;  %2416 = vrot.lane.b32.xlu0 %v2177_v39, %s5011_s28  ;;  %v2179_v11 = vpop.f32.mrb[15].mxu0 }
 0x31c   : > { %v2328_v43 = vpop.f32.mrb[15].mxu1 }
 0x31d   : > { %2410 = vrot.lane.b32.xlu1 %v2328_v43, %s5011_s28 }
 0x31f   : > { %v2332_v1 = vpop.f32.mrb[16].mxu1  ;;  %v2183_v59 = vpop.f32.mrb[16].mxu0  ;;  %2420 = vrot.lane.b32.xlu0 %v2326_v42, %s5011_s28 }
 0x320   : > { %v2334_v57 = vpop.f32.mrb[17].mxu1  ;;  %v2185_v38 = vpop.f32.mrb[17].mxu0 }
 0x321   : > { %2418 = vrot.lane.b32.xlu1 %v2179_v11, %s5011_s28 }
 0x323   : > { %v2338_v37 = vpop.f32.mrb[18].mxu1  ;;  %v2189_v25 = vpop.f32.mrb[18].mxu0  ;;  %2441 = vrot.lane.b32.xlu0 %v2177_v39, %s5010_s27 }
 0x324   : > { %v2340_v44 = vpop.f32.mrb[19].mxu1  ;;  %v2191_v60 = vpop.f32.mrb[19].mxu0 }
 0x325   : > { %2438 = vrot.lane.b32.xlu1 %v2328_v43, %s5010_s27 }
 0x327   : > { %v6551_v26 = vpop.f32.mrb[20].mxu1  ;;  %v6553_v4 = vpop.f32.mrb[20].mxu0  ;;  %2445 = vrot.lane.b32.xlu0 %v2326_v42, %s5010_s27 }
 0x328   : > { %v6556_v15 = vpop.f32.mrb[21].mxu1  ;;  %v6558_v16 = vpop.f32.mrb[21].mxu0 }
 0x329   : > { %2443 = vrot.lane.b32.xlu1 %v2179_v11, %s5010_s27 }
 0x32b   : > { %v6561_v24 = vpop.f32.mrb[22].mxu1  ;;  %v6563_v20 = vpop.f32.mrb[22].mxu0  ;;  %2482 = vrot.lane.b32.xlu0 %v2183_v59, %s8601_s29 }
 0x32c   : > { %v6566_v50 = vpop.f32.mrb[23].mxu1  ;;  %v6568_v14 = vpop.f32.mrb[23].mxu0 }
 0x32d   : > { %2476 = vrot.lane.b32.xlu1 %v2334_v57, %s8601_s29 }
 0x32f   : > { %v6571_v2 = vpop.f32.mrb[24].mxu1  ;;  %v6573_v21 = vpop.f32.mrb[24].mxu0  ;;  %2486 = vrot.lane.b32.xlu0 %v2332_v1, %s8601_s29 }
 0x330   : > { %v6576_v10 = vpop.f32.mrb[25].mxu1  ;;  %v6578_v52 = vpop.f32.mrb[25].mxu0 }
 0x331   : > { %2484 = vrot.lane.b32.xlu1 %v2185_v38, %s8601_s29 }
 0x333   : > { %v6581_v48 = vpop.f32.mrb[26].mxu1  ;;  %v6583_v55 = vpop.f32.mrb[26].mxu0  ;;  %2507 = vrot.lane.b32.xlu0 %v2183_v59, %s8599_s30 }
 0x334   : > { %8905 = vst [vmem:[#allocation76_spill] sm:$0xff] %v6581_v48  ;;  %8906 = vst [vmem:[#allocation44_spill] sm:$0xff] %v6583_v55  ;;  %v6586_v40 = vpop.f32.mrb[27].mxu1  ;;  %v6588_v36 = vpop.f32.mrb[27].mxu0 }
 0x335   : > { %8907 = vst [vmem:[#allocation94_spill] sm:$0xff] %v6586_v40  ;;  %8908 = vst [vmem:[#allocation57_spill] sm:$0xff] %v6588_v36  ;;  %2504 = vrot.lane.b32.xlu1 %v2334_v57, %s8599_s30 }
 0x337   : > { %v6591_v62 = vpop.f32.mrb[28].mxu1  ;;  %v6593_v63 = vpop.f32.mrb[28].mxu0  ;;  %2511 = vrot.lane.b32.xlu0 %v2332_v1, %s8599_s30 }
 0x338   : > { %8909 = vst [vmem:[#allocation75_spill] sm:$0xff] %v6591_v62  ;;  %v6596_v35 = vpop.f32.mrb[29].mxu1  ;;  %v6598_v54 = vpop.f32.mrb[29].mxu0 }
 0x339   : > { %8910 = vst [vmem:[#allocation91_spill] sm:$0xff] %v6596_v35  ;;  %2509 = vrot.lane.b32.xlu1 %v2185_v38, %s8599_s30 }
 0x33b   : > { %v6601_v34 = vpop.f32.mrb[30].mxu1  ;;  %v6603_v46 = vpop.f32.mrb[30].mxu0  ;;  %2548 = vrot.lane.b32.xlu0 %v2189_v25, %s8590_s13 }
 0x33c   : > { %8911 = vst [vmem:[#allocation52_spill] sm:$0xff] %v6601_v34  ;;  %8912 = vst [vmem:[#allocation2_spill] sm:$0xff] %v6603_v46  ;;  %v6606_v8 = vpop.f32.mrb[31].mxu1  ;;  %v6608_v19 = vpop.f32.mrb[31].mxu0 }
 0x33d   : > { %8913 = vst [vmem:[#allocation5_spill] sm:$0xff] %v6606_v8  ;;  %8914 = vst [vmem:[#allocation4_spill] sm:$0xff] %v6608_v19  ;;  %2542 = vrot.lane.b32.xlu1 %v2340_v44, %s8590_s13 }
 0x33f   : > { %v6611_v28 = vpop.f32.mrb[32].mxu1  ;;  %v6613_v51 = vpop.f32.mrb[32].mxu0  ;;  %2552 = vrot.lane.b32.xlu0 %v2338_v37, %s8590_s13 }
 0x340   : > { %8915 = vst [vmem:[#allocation3_spill] sm:$0xff] %v6611_v28  ;;  %8916 = vst [vmem:[#allocation11_spill] sm:$0xff] %v6613_v51  ;;  %v6616_v7 = vpop.f32.mrb[33].mxu1  ;;  %v6618_v32 = vpop.f32.mrb[33].mxu0 }
 0x341   : > { %8917 = vst [vmem:[#allocation10_spill] sm:$0xff] %v6616_v7  ;;  %8918 = vst [vmem:[#allocation12_spill] sm:$0xff] %v6618_v32  ;;  %2550 = vrot.lane.b32.xlu1 %v2191_v60, %s8590_s13 }
 0x343   : > { %v6621_v39 = vpop.f32.mrb[34].mxu1  ;;  %v6623_v42 = vpop.f32.mrb[34].mxu0  ;;  %2573 = vrot.lane.b32.xlu0 %v2189_v25, %s8921_s16 }
 0x344   : > { %8919 = vst [vmem:[#allocation13_spill] sm:$0xff] %v6621_v39  ;;  %8920 = vst [vmem:[#allocation29_spill] sm:$0xff] %v6623_v42  ;;  %v6626_v43 = vpop.f32.mrb[35].mxu1  ;;  %v6628_v11 = vpop.f32.mrb[35].mxu0 }
 0x345   : > { %8922 = vst [vmem:[#allocation14_spill] sm:$0xff] %v6626_v43  ;;  %8923 = vst [vmem:[#allocation30_spill] sm:$0xff] %v6628_v11  ;;  %2570 = vrot.lane.b32.xlu1 %v2340_v44, %s8921_s16 }
 0x347   : > { %v6631_v1 = vpop.f32.mrb[36].mxu1  ;;  %v6633_v59 = vpop.f32.mrb[36].mxu0  ;;  %2577 = vrot.lane.b32.xlu0 %v2338_v37, %s8921_s16 }
 0x348   : > { %8924 = vst [vmem:[#allocation124_spill] sm:$0xff] %v6631_v1  ;;  %8925 = vst [vmem:[#allocation125_spill] sm:$0xff] %v6633_v59  ;;  %v6636_v57 = vpop.f32.mrb[37].mxu1  ;;  %v6638_v38 = vpop.f32.mrb[37].mxu0 }
 0x349   : > { %8926 = vst [vmem:[#allocation126_spill] sm:$0xff] %v6636_v57  ;;  %8927 = vst [vmem:[#allocation127_spill] sm:$0xff] %v6638_v38  ;;  %2575 = vrot.lane.b32.xlu1 %v2191_v60, %s8921_s16 }
 0x34b   : > { %v6641_v56 = vpop.f32.mrb[38].mxu1  ;;  %v6643_v25 = vpop.f32.mrb[38].mxu0  ;;  %2614 = vrot.lane.b32.xlu0 %v6553_v4, %s8930_s18 }
 0x34c   : > { %8928 = vst [vmem:[#allocation128_spill] sm:$0xff] %v6641_v56  ;;  %8929 = vst [vmem:[#allocation129_spill] sm:$0xff] %v6643_v25  ;;  %v6647_v44 = vpop.f32.mrb[39].mxu1  ;;  %v6649_v6 = vpop.f32.mrb[39].mxu0 }
 0x34d   : > { %8931 = vst [vmem:[#allocation130_spill] sm:$0xff] %v6647_v44  ;;  %8932 = vst [vmem:[#allocation131_spill] sm:$0xff] %v6649_v6  ;;  %2608 = vrot.lane.b32.xlu1 %v6556_v15, %s8930_s18 }
 0x34f   : > { %v6653_v37 = vpop.f32.mrb[40].mxu1  ;;  %v6655_v9 = vpop.f32.mrb[40].mxu0  ;;  %2618 = vrot.lane.b32.xlu0 %v6551_v26, %s8930_s18 }
 0x350   : > { %8933 = vst [vmem:[#allocation132_spill] sm:$0xff] %v6653_v37  ;;  %8934 = vst [vmem:[#allocation133_spill] sm:$0xff] %v6655_v9  ;;  %v6659_v60 = vpop.f32.mrb[41].mxu1  ;;  %v6661_v30 = vpop.f32.mrb[41].mxu0 }
 0x351   : > { %8935 = vst [vmem:[#allocation134_spill] sm:$0xff] %v6659_v60  ;;  %8936 = vst [vmem:[#allocation135_spill] sm:$0xff] %v6661_v30  ;;  %2616 = vrot.lane.b32.xlu1 %v6558_v16, %s8930_s18 }
 0x353   : > { %v3361_v22 = vpop.f32.mrb[42].mxu0  ;;  %v3432_v31 = vpop.f32.mrb[42].mxu1  ;;  %2639 = vrot.lane.b32.xlu0 %v6553_v4, %s8937_s19 }
 0x354   : > { %v3362_v53 = vadd.f32 %v3361_v22, %v3290_v61  ;;  %v3363_v13 = vpop.f32.mrb[43].mxu0  ;;  %v3434_v37 = vpop.f32.mrb[43].mxu1  ;;  %v3433_v9 = vadd.f32 %v3432_v31, %v3290_v61  ;;  %v3441_v22 = vld [vmem:[%s8300_s8] sm:$0xff] }
 0x355   : > { %v3364_v45 = vadd.f32 %v3363_v13, %v3290_v61  ;;  %v3435_v18 = vadd.f32 %v3434_v37, %v3290_v61  ;;  %2636 = vrot.lane.b32.xlu1 %v6556_v15, %s8937_s19  ;;  %v3445_v13 = vld [vmem:[%s8300_s8 + $0x20] sm:$0xff] }
 0x356   : > { %v3437_v60 = vmax.f32 %v3362_v53, 0.0  ;;  %v3439_v5 = vmax.f32 %v3433_v9, 0.0 }
 0x357   : > { %v3438_v30 = vmax.f32 %v3364_v45, 0.0  ;;  %v3440_v0 = vmax.f32 %v3435_v18, 0.0  ;;  %2643 = vrot.lane.b32.xlu0 %v6551_v26, %s8937_s19  ;;  %v3442_v45 = vld [vmem:[%s8300_s8 + $0x8] sm:$0xff] }
 0x358   : > { %v3446_v18 = vld [vmem:[%s8300_s8 + $0x28] sm:$0xff] }
 0x359   : > { %2641 = vrot.lane.b32.xlu1 %v6558_v16, %s8937_s19  ;;  %4936 = vmatprep.subr.msk.mxu0 %vm8630_vm12, %v3438_v30  ;;  %v3447_v30 = vld [vmem:[%s8300_s8 + $0x30] sm:$0x3f] }
 0x35a   : > { %4945 = vmatprep.subr.msk.mxu1 %vm8630_vm12, %v3440_v0  ;;  %4937 = vmatpush1.msk.msra.mxu0 %vm8630_vm12, %v3437_v60  ;;  %v3444_v0 = vld [vmem:[%s8300_s8 + $0x18] sm:$0xff] }
 0x35b   : > { %4946 = vmatpush1.msk.msra.mxu1 %vm8630_vm12, %v3439_v5  ;;  %4938 = vmatmul.mubr.msk.f32.vlgmr.msra.gmra.mrb[44].mxu0 %vm8629_vm15, %v3441_v22  ;;  %v3443_v5 = vld [vmem:[%s8300_s8 + $0x10] sm:$0xff] }
 0x35c   : > { %4947 = vmatmul.mubr.msk.f32.vlgmr.msra.gmra.mrb[44].mxu1 %vm8629_vm15, %v3441_v22  ;;  %2680 = vrot.lane.b32.xlu0 %v6563_v20, %s8560_s17 }
 0x35d   : > { %2674 = vrot.lane.b32.xlu1 %v6566_v50, %s8560_s17  ;;  %3658 = vmatprep.mubr.f32.mxu1 %v8904_v47 }
 0x35e   : > { %3551 = vmatprep.mubr.f32.mxu0 %v8904_v47 }
 0x35f   : > { %4939 = vmatmul.mubr.msk.f32.gmra.mrb[46].mxu0 %vm8629_vm15, %v3442_v45 }
 0x360   : > { %2684 = vrot.lane.b32.xlu0 %v6561_v24, %s8560_s17  ;;  %4948 = vmatmul.mubr.msk.f32.gmra.mrb[46].mxu1 %vm8629_vm15, %v3442_v45 }
 0x361   : > { %2682 = vrot.lane.b32.xlu1 %v6568_v14, %s8560_s17  ;;  %3664 = vmatprep.mubr.f32.mxu1 %v8904_v47 }
 0x362   : > { %3557 = vmatprep.mubr.f32.mxu0 %v8904_v47 }
 0x363   : > { %4940 = vmatmul.mubr.msk.f32.gmra.mrb[48].mxu0 %vm8629_vm15, %v3443_v5 }
 0x364   : > { %2705 = vrot.lane.b32.xlu0 %v6563_v20, %s8938_s20  ;;  %4949 = vmatmul.mubr.msk.f32.gmra.mrb[48].mxu1 %vm8629_vm15, %v3443_v5 }
 0x365   : > { %2702 = vrot.lane.b32.xlu1 %v6566_v50, %s8938_s20  ;;  %3563 = vmatprep.mubr.f32.mxu0 %v8904_v47 }
 0x366   : > { %3670 = vmatprep.mubr.f32.mxu1 %v8904_v47 }
 0x367   : > { %4941 = vmatmul.mubr.msk.f32.gmra.mrb[50].mxu0 %vm8629_vm15, %v3444_v0 }
 0x368   : > { %2709 = vrot.lane.b32.xlu0 %v6561_v24, %s8938_s20  ;;  %4950 = vmatmul.mubr.msk.f32.gmra.mrb[50].mxu1 %vm8629_vm15, %v3444_v0 }
 0x369   : > { %2707 = vrot.lane.b32.xlu1 %v6568_v14, %s8938_s20  ;;  %3569 = vmatprep.mubr.f32.mxu0 %v8904_v47 }
 0x36a   : > { %3676 = vmatprep.mubr.f32.mxu1 %v8904_v47 }
 0x36b   : > { %4942 = vmatmul.mubr.msk.f32.gmra.mrb[52].mxu0 %vm8629_vm15, %v3445_v13 }
 0x36c   : > { %2746 = vrot.lane.b32.xlu0 %v6573_v21, %s8939_s15  ;;  %4951 = vmatmul.mubr.msk.f32.gmra.mrb[52].mxu1 %vm8629_vm15, %v3445_v13 }
 0x36d   : > { %2740 = vrot.lane.b32.xlu1 %v6576_v10, %s8939_s15  ;;  %3575 = vmatprep.mubr.f32.mxu0 %v8904_v47 }
 0x36e   : > { %3682 = vmatprep.mubr.f32.mxu1 %v8904_v47 }
 0x36f   : > { %4943 = vmatmul.mubr.msk.f32.gmra.mrb[54].mxu0 %vm8629_vm15, %v3446_v18 }
 0x370   : > { %4952 = vmatmul.mubr.msk.f32.gmra.mrb[54].mxu1 %vm8629_vm15, %v3446_v18  ;;  %3581 = vmatprep.mubr.f32.mxu0 %v8904_v47 }
 0x371   : > { %2748 = vrot.lane.b32.xlu1 %v6578_v52, %s8939_s15  ;;  %3688 = vmatprep.mubr.f32.mxu1 %v8904_v47 }
 0x373   : > { %4944 = vmatmul.mubr.msk.f32.gmra.mrb[56].mxu0 %vm8629_vm15, %v3447_v30 }
 0x374   : > { %4953 = vmatmul.mubr.msk.f32.gmra.mrb[56].mxu1 %vm8629_vm15, %v3447_v30  ;;  %4713 = vmatprep.mubr.f32.mxu0 %v8904_v47  ;;  %vm9129_vm15 = vcmask 7168  }
 0x375   : > { %4784 = vmatprep.mubr.f32.mxu1 %v8904_v47  ;;  %vm9133_vm12 = vmmov %vm9129_vm15 }
 0x38d   : > { %v6752_v61 = vpop.permute.xlu0 %2416 }
 0x38f   : > { %v6748_v9 = vpop.permute.xlu1 %2410 }
 0x391   : > { %v6756_v26 = vpop.permute.xlu0 %2420 }
 0x393   : > { %v6750_v53 = vpop.permute.xlu1 %2418 }
 0x395   : > { %v6762_v47 = vpop.permute.xlu0 %2441 }
 0x397   : > { %v6754_v31 = vpop.permute.xlu1 %2438 }
 0x399   : > { %v6781_v13 = vpop.permute.xlu0 %2445 }
 0x39b   : > { %v6759_v24 = vpop.permute.xlu1 %2443 }
 0x39d   : > { %v6798_v49 = vpop.permute.xlu0 %2482 }
 0x39f   : > { %v6772_v22 = vpop.permute.xlu1 %2476 }
 0x3a1   : > { %v6813_v41 = vpop.permute.xlu0 %2486 }
 0x3a3   : > { %v6795_v56 = vpop.permute.xlu1 %2484 }
 0x3a5   : > { %v6826_v57 = vpop.permute.xlu0 %2507 }
 0x3a7   : > { %v6810_v17 = vpop.permute.xlu1 %2504 }
 0x3ab   : > { %v6821_v6 = vpop.permute.xlu1 %2509 }
 0x3af   : > { %v6832_v38 = vpop.permute.xlu1 %2542 }
 0x42e   : > { %v3547_v4 = vpop.f32.mrb[44].mxu0 }
 0x42f   : > { %v3654_v15 = vpop.f32.mrb[44].mxu1  ;;  %3727 = vrot.lane.b32.xlu1 %v3547_v4, %s5010_s27  ;;  %v3549_v16 = vpop.f32.mrb[45].mxu0 }
 0x430   : > { %v3656_v20 = vpop.f32.mrb[45].mxu1 }
 0x431   : > { %3724 = vrot.lane.b32.xlu0 %v3656_v20, %s5010_s27 }
 0x432   : > { %v6764_v50 = vpop.f32.mrb[46].mxu0 }
 0x433   : > { %3731 = vrot.lane.b32.xlu1 %v3654_v15, %s5010_s27  ;;  %v6767_v14 = vpop.f32.mrb[46].mxu1  ;;  %v6769_v37 = vpop.f32.mrb[47].mxu0 }
 0x434   : > { %v3662_v60 = vpop.f32.mrb[47].mxu1 }
 0x435   : > { %3729 = vrot.lane.b32.xlu0 %v3549_v16, %s5010_s27 }
 0x436   : > { %v6774_v45 = vpop.f32.mrb[48].mxu0 }
 0x437   : > { %3702 = vrot.lane.b32.xlu1 %v3547_v4, %s5011_s28  ;;  %v6777_v5 = vpop.f32.mrb[48].mxu1  ;;  %v6779_v0 = vpop.f32.mrb[49].mxu0 }
 0x438   : > { %v6783_v18 = vpop.f32.mrb[49].mxu1 }
 0x439   : > { %3696 = vrot.lane.b32.xlu0 %v3656_v20, %s5011_s28 }
 0x43a   : > { %v6786_v30 = vpop.f32.mrb[50].mxu0 }
 0x43b   : > { %8940 = vst [vmem:[#allocation136_spill] sm:$0xff] %v6786_v30  ;;  %3706 = vrot.lane.b32.xlu1 %v3654_v15, %s5011_s28  ;;  %v6789_v12 = vpop.f32.mrb[51].mxu0  ;;  %v6791_v29 = vpop.f32.mrb[50].mxu1 }
 0x43c   : > { %8941 = vst [vmem:[#allocation137_spill] sm:$0xff] %v6789_v12  ;;  %8942 = vst [vmem:[#allocation138_spill] sm:$0xff] %v6791_v29  ;;  %v6793_v3 = vpop.f32.mrb[51].mxu1 }
 0x43d   : > { %8943 = vst [vmem:[#allocation139_spill] sm:$0xff] %v6793_v3  ;;  %3704 = vrot.lane.b32.xlu0 %v3549_v16, %s5011_s28 }
 0x43e   : > { %v6800_v58 = vpop.f32.mrb[52].mxu0 }
 0x43f   : > { %3764 = vrot.lane.b32.xlu1 %v3547_v4, %s8601_s29  ;;  %v6803_v23 = vpop.f32.mrb[53].mxu0  ;;  %v6805_v44 = vpop.f32.mrb[52].mxu1 }
 0x440   : > { %v6807_v33 = vpop.f32.mrb[53].mxu1 }
 0x441   : > { %3761 = vrot.lane.b32.xlu0 %v3656_v20, %s8601_s29 }
 0x442   : > { %v6816_v27 = vpop.f32.mrb[54].mxu0 }
 0x443   : > { %3768 = vrot.lane.b32.xlu1 %v3654_v15, %s8601_s29  ;;  %v6819_v25 = vpop.f32.mrb[55].mxu0  ;;  %v6824_v1 = vpop.f32.mrb[54].mxu1 }
 0x444   : > { %v6829_v59 = vpop.f32.mrb[55].mxu1 }
 0x445   : > { %3766 = vrot.lane.b32.xlu0 %v3549_v16, %s8601_s29 }
 0x446   : > { %v6869_v11 = vpop.f32.mrb[56].mxu0 }
 0x447   : > { %3801 = vrot.lane.b32.xlu1 %v3547_v4, %s8599_s30  ;;  %v6836_v4 = vpop.permute.xlu0 %2511  ;;  %v6875_v7 = vpop.f32.mrb[57].mxu0 }
 0x448   : > { %v6880_v32 = vpop.f32.mrb[56].mxu1 }
 0x449   : > { %3798 = vrot.lane.b32.xlu0 %v3656_v20, %s8599_s30  ;;  %v6841_v20 = vpop.permute.xlu1 %2550  ;;  %v6884_v34 = vpop.f32.mrb[57].mxu1 }
 0x44b   : > { %3805 = vrot.lane.b32.xlu1 %v3654_v15, %s8599_s30  ;;  %v6845_v15 = vpop.permute.xlu0 %2548 }
 0x44d   : > { %3803 = vrot.lane.b32.xlu0 %v3549_v16, %s8599_s30  ;;  %v6850_v16 = vpop.permute.xlu1 %2570 }
 0x44f   : > { %3842 = vrot.lane.b32.xlu1 %v6764_v50, %s8590_s13  ;;  %v6854_v39 = vpop.permute.xlu0 %2552 }
 0x451   : > { %3836 = vrot.lane.b32.xlu0 %v3662_v60, %s8590_s13  ;;  %v6860_v43 = vpop.permute.xlu1 %2575 }
 0x453   : > { %3846 = vrot.lane.b32.xlu1 %v6767_v14, %s8590_s13  ;;  %v6863_v42 = vpop.permute.xlu0 %2573 }
 0x455   : > { %3844 = vrot.lane.b32.xlu0 %v6769_v37, %s8590_s13  ;;  %v6871_v28 = vpop.permute.xlu1 %2608 }
 0x457   : > { %3867 = vrot.lane.b32.xlu1 %v6764_v50, %s8921_s16  ;;  %v6877_v51 = vpop.permute.xlu0 %2577 }
 0x459   : > { %3864 = vrot.lane.b32.xlu0 %v3662_v60, %s8921_s16  ;;  %v6886_v8 = vpop.permute.xlu1 %2616 }
 0x45b   : > { %3871 = vrot.lane.b32.xlu1 %v6767_v14, %s8921_s16  ;;  %v6890_v46 = vpop.permute.xlu0 %2614 }
 0x45d   : > { %3869 = vrot.lane.b32.xlu0 %v6769_v37, %s8921_s16 }
 0x45f   : > { %3904 = vrot.lane.b32.xlu1 %v6764_v50, %s8930_s18 }
 0x461   : > { %3901 = vrot.lane.b32.xlu0 %v3662_v60, %s8930_s18 }
 0x463   : > { %3908 = vrot.lane.b32.xlu1 %v6767_v14, %s8930_s18 }
 0x465   : > { %3906 = vrot.lane.b32.xlu0 %v6769_v37, %s8930_s18 }
 0x467   : > { %3941 = vrot.lane.b32.xlu1 %v6764_v50, %s8937_s19  ;;  %v6896_v50 = vpop.permute.xlu1 %2636 }
 0x469   : > { %3938 = vrot.lane.b32.xlu0 %v3662_v60, %s8937_s19 }
 0x46b   : > { %3945 = vrot.lane.b32.xlu1 %v6767_v14, %s8937_s19  ;;  %v6900_v14 = vpop.permute.xlu0 %2618 }
 0x46d   : > { %3943 = vrot.lane.b32.xlu0 %v6769_v37, %s8937_s19  ;;  %v6906_v37 = vpop.permute.xlu1 %2641 }
 0x46e   : > { %8944 = vst [vmem:[#allocation140_spill] sm:$0xff] %v6906_v37 }
 0x46f   : > { %3982 = vrot.lane.b32.xlu1 %v6774_v45, %s8560_s17  ;;  %v6910_v60 = vpop.permute.xlu0 %2639 }
 0x471   : > { %3976 = vrot.lane.b32.xlu0 %v6783_v18, %s8560_s17  ;;  %v6916_v19 = vpop.permute.xlu1 %2674 }
 0x472   : > { %8945 = vst [vmem:[#allocation141_spill] sm:$0xff] %v6916_v19 }
 0x473   : > { %3986 = vrot.lane.b32.xlu1 %v6777_v5, %s8560_s17  ;;  %v6920_v62 = vpop.permute.xlu0 %2643 }
 0x474   : > { %8946 = vst [vmem:[#allocation142_spill] sm:$0xff] %v6920_v62 }
 0x475   : > { %3984 = vrot.lane.b32.xlu0 %v6779_v0, %s8560_s17  ;;  %v6926_v37 = vpop.permute.xlu1 %2682  ;;  %s8966_s17 = smov 119  }
 0x476   : > { %8947 = vst [vmem:[#allocation143_spill] sm:$0xff] %v6926_v37 }
 0x477   : > { %4007 = vrot.lane.b32.xlu1 %v6774_v45, %s8938_s20  ;;  %v6930_v35 = vpop.permute.xlu0 %2680 }
 0x478   : > { %8948 = vst [vmem:[#allocation144_spill] sm:$0xff] %v6930_v35 }
 0x479   : > { %4004 = vrot.lane.b32.xlu0 %v6783_v18, %s8938_s20  ;;  %v6936_v19 = vpop.permute.xlu1 %2702 }
 0x47a   : > { %8950 = vst [vmem:[#allocation145_spill] sm:$0xff] %v6936_v19 }
 0x47b   : > { %4011 = vrot.lane.b32.xlu1 %v6777_v5, %s8938_s20  ;;  %v6940_v62 = vpop.permute.xlu0 %2684 }
 0x47c   : > { %8951 = vst [vmem:[#allocation146_spill] sm:$0xff] %v6940_v62 }
 0x47d   : > { %4009 = vrot.lane.b32.xlu0 %v6779_v0, %s8938_s20  ;;  %s8949_s20 = smov 7   ;;  %v6946_v37 = vpop.permute.xlu1 %2707 }
 0x47e   : > { %8953 = vst [vmem:[#allocation147_spill] sm:$0xff] %v6946_v37 }
 0x47f   : > { %4044 = vrot.lane.b32.xlu1 %v6774_v45, %s8939_s15 }
 0x481   : > { %4041 = vrot.lane.b32.xlu0 %v6783_v18, %s8939_s15 }
 0x483   : > { %4048 = vrot.lane.b32.xlu1 %v6777_v5, %s8939_s15 }
 0x485   : > { %4046 = vrot.lane.b32.xlu0 %v6779_v0, %s8939_s15 }
 0x487   : > { %4081 = vrot.lane.b32.xlu1 %v6774_v45, %s8949_s20  ;;  %v6950_v45 = vpop.permute.xlu0 %2705 }
 0x488   : > { %8955 = vst [vmem:[#allocation148_spill] sm:$0xff] %v6950_v45 }
 0x489   : > { %4078 = vrot.lane.b32.xlu0 %v6783_v18, %s8949_s20 }
 0x48b   : > { %4085 = vrot.lane.b32.xlu1 %v6777_v5, %s8949_s20  ;;  %v6956_v5 = vpop.permute.xlu1 %2740 }
 0x48c   : > { %8956 = vst [vmem:[#allocation149_spill] sm:$0xff] %v6956_v5 }
 0x48d   : > { %4083 = vrot.lane.b32.xlu0 %v6779_v0, %s8949_s20  ;;  %v6960_v0 = vpop.permute.xlu0 %2709 }
 0x48e   : > { %8957 = vst [vmem:[#allocation150_spill] sm:$0xff] %v6960_v0 }
 0x48f   : > { %4122 = vrot.lane.b32.xlu1 %v6786_v30, %s8952_s24  ;;  %v6966_v18 = vpop.permute.xlu1 %2748 }
 0x490   : > { %8959 = vst [vmem:[#allocation151_spill] sm:$0xff] %v6966_v18 }
 0x491   : > { %4156 = vrot.lane.b32.xlu0 %v6786_v30, %s8954_s25  ;;  %v6970_v37 = vpop.permute.xlu0 %2746 }
 0x492   : > { %8960 = vst [vmem:[#allocation152_spill] sm:$0xff] %v6970_v37 }
 0x493   : > { %4126 = vrot.lane.b32.xlu1 %v6791_v29, %s8952_s24 }
 0x495   : > { %4160 = vrot.lane.b32.xlu0 %v6791_v29, %s8954_s25 }
 0x497   : > { %4158 = vrot.lane.b32.xlu1 %v6789_v12, %s8954_s25 }
 0x499   : > { %4193 = vrot.lane.b32.xlu0 %v6786_v30, %s8958_s23 }
 0x49b   : > { %4162 = vrot.lane.b32.xlu1 %v6793_v3, %s8954_s25 }
 0x49d   : > { %4197 = vrot.lane.b32.xlu0 %v6791_v29, %s8958_s23 }
 0x49f   : > { %4195 = vrot.lane.b32.xlu1 %v6789_v12, %s8958_s23 }
 0x4a1   : > { %4116 = vrot.lane.b32.xlu0 %v6793_v3, %s8952_s24  ;;  %v6976_v5 = vpop.permute.xlu1 %3727 }
 0x4a3   : > { %v6978_v62 = vpop.permute.xlu0 %3724  ;;  %4199 = vrot.lane.b32.xlu1 %v6793_v3, %s8958_s23 }
 0x4a5   : > { %4124 = vrot.lane.b32.xlu0 %v6789_v12, %s8952_s24  ;;  %v6984_v18 = vpop.permute.xlu1 %3731 }
 0x4a7   : > { %v6986_v0 = vpop.permute.xlu0 %3729  ;;  %4236 = vrot.lane.b32.xlu1 %v6803_v23, %s8961_s14 }
 0x4a9   : > { %4234 = vrot.lane.b32.xlu0 %v6800_v58, %s8961_s14  ;;  %v6992_v37 = vpop.permute.xlu1 %3702 }
 0x4aa   : > { %8962 = vst [vmem:[#allocation153_spill] sm:$0xff] %v6992_v37 }
 0x4ab   : > { %v6994_v19 = vpop.permute.xlu0 %3696  ;;  %4240 = vrot.lane.b32.xlu1 %v6807_v33, %s8961_s14 }
 0x4ac   : > { %8963 = vst [vmem:[#allocation154_spill] sm:$0xff] %v6994_v19 }
 0x4ad   : > { %4238 = vrot.lane.b32.xlu0 %v6805_v44, %s8961_s14  ;;  %v7000_v45 = vpop.permute.xlu1 %3706 }
 0x4ae   : > { %8964 = vst [vmem:[#allocation155_spill] sm:$0xff] %v7000_v45 }
 0x4af   : > { %v7002_v35 = vpop.permute.xlu0 %3704  ;;  %4261 = vrot.lane.b32.xlu1 %v6803_v23, %s8966_s17 }
 0x4b0   : > { %8965 = vst [vmem:[#allocation156_spill] sm:$0xff] %v7002_v35 }
 0x4b1   : > { %4259 = vrot.lane.b32.xlu0 %v6800_v58, %s8966_s17  ;;  %v7008_v3 = vpop.permute.xlu1 %3764 }
 0x4b3   : > { %v7010_v29 = vpop.permute.xlu0 %3761  ;;  %4265 = vrot.lane.b32.xlu1 %v6807_v33, %s8966_s17 }
 0x4b5   : > { %4263 = vrot.lane.b32.xlu0 %v6805_v44, %s8966_s17  ;;  %v7016_v12 = vpop.permute.xlu1 %3768 }
 0x4b6   : > { %8967 = vst [vmem:[#allocation157_spill] sm:$0xff] %v7016_v12 }
 0x4b7   : > { %v7018_v30 = vpop.permute.xlu0 %3766  ;;  %4298 = vrot.lane.b32.xlu1 %v6803_v23, %s5011_s28 }
 0x4b8   : > { %8968 = vst [vmem:[#allocation158_spill] sm:$0xff] %v7018_v30 }
 0x4b9   : > { %4296 = vrot.lane.b32.xlu0 %v6800_v58, %s5011_s28  ;;  %v7024_v35 = vpop.permute.xlu1 %3801 }
 0x4ba   : > { %8969 = vst [vmem:[#allocation159_spill] sm:$0xff] %v7024_v35 }
 0x4bb   : > { %v7026_v45 = vpop.permute.xlu0 %3798  ;;  %4302 = vrot.lane.b32.xlu1 %v6807_v33, %s5011_s28 }
 0x4bc   : > { %8970 = vst [vmem:[#allocation160_spill] sm:$0xff] %v7026_v45 }
 0x4bd   : > { %4300 = vrot.lane.b32.xlu0 %v6805_v44, %s5011_s28  ;;  %v7032_v19 = vpop.permute.xlu1 %3805 }
 0x4be   : > { %8971 = vst [vmem:[#allocation161_spill] sm:$0xff] %v7032_v19 }
 0x4bf   : > { %v7034_v37 = vpop.permute.xlu0 %3803  ;;  %4335 = vrot.lane.b32.xlu1 %v6803_v23, %s5010_s27 }
 0x4c0   : > { %8972 = vst [vmem:[#allocation162_spill] sm:$0xff] %v7034_v37 }
 0x4c1   : > { %4333 = vrot.lane.b32.xlu0 %v6800_v58, %s5010_s27  ;;  %v7040_v30 = vpop.permute.xlu1 %3842 }
 0x4c2   : > { %8973 = vst [vmem:[#allocation163_spill] sm:$0xff] %v7040_v30 }
 0x4c3   : > { %v7042_v35 = vpop.permute.xlu0 %3836  ;;  %4339 = vrot.lane.b32.xlu1 %v6807_v33, %s5010_s27 }
 0x4c4   : > { %8974 = vst [vmem:[#allocation164_spill] sm:$0xff] %v7042_v35 }
 0x4c5   : > { %4337 = vrot.lane.b32.xlu0 %v6805_v44, %s5010_s27  ;;  %v7048_v45 = vpop.permute.xlu1 %3846 }
 0x4c6   : > { %8975 = vst [vmem:[#allocation165_spill] sm:$0xff] %v7048_v45 }
 0x4c7   : > { %v7050_v19 = vpop.permute.xlu0 %3844  ;;  %4376 = vrot.lane.b32.xlu1 %v6819_v25, %s8601_s29 }
 0x4c8   : > { %8976 = vst [vmem:[#allocation166_spill] sm:$0xff] %v7050_v19 }
 0x4c9   : > { %4374 = vrot.lane.b32.xlu0 %v6816_v27, %s8601_s29  ;;  %v7056_v58 = vpop.permute.xlu1 %3867 }
 0x4ca   : > { %8977 = vst [vmem:[#allocation167_spill] sm:$0xff] %v7056_v58 }
 0x4cb   : > { %v7058_v23 = vpop.permute.xlu0 %3864  ;;  %4380 = vrot.lane.b32.xlu1 %v6829_v59, %s8601_s29 }
 0x4cc   : > { %8978 = vst [vmem:[#allocation168_spill] sm:$0xff] %v7058_v23 }
 0x4cd   : > { %4378 = vrot.lane.b32.xlu0 %v6824_v1, %s8601_s29  ;;  %v7064_v33 = vpop.permute.xlu1 %3871  ;;  %s9175_s29 = smov 64  }
 0x4ce   : > { %8979 = vst [vmem:[#allocation169_spill] sm:$0xff] %v7064_v33 }
 0x4cf   : > { %v7066_v44 = vpop.permute.xlu0 %3869  ;;  %4401 = vrot.lane.b32.xlu1 %v6819_v25, %s8599_s30 }
 0x4d0   : > { %8980 = vst [vmem:[#allocation170_spill] sm:$0xff] %v7066_v44 }
 0x4d1   : > { %4399 = vrot.lane.b32.xlu0 %v6816_v27, %s8599_s30  ;;  %v7072_v19 = vpop.permute.xlu1 %3904 }
 0x4d2   : > { %8981 = vst [vmem:[#allocation171_spill] sm:$0xff] %v7072_v19 }
 0x4d3   : > { %v7074_v58 = vpop.permute.xlu0 %3901  ;;  %4405 = vrot.lane.b32.xlu1 %v6829_v59, %s8599_s30 }
 0x4d4   : > { %8982 = vst [vmem:[#allocation172_spill] sm:$0xff] %v7074_v58 }
 0x4d5   : > { %4403 = vrot.lane.b32.xlu0 %v6824_v1, %s8599_s30  ;;  %v7080_v23 = vpop.permute.xlu1 %3908 }
 0x4d6   : > { %8983 = vst [vmem:[#allocation173_spill] sm:$0xff] %v7080_v23 }
 0x4d7   : > { %v7082_v33 = vpop.permute.xlu0 %3906  ;;  %4438 = vrot.lane.b32.xlu1 %v6819_v25, %s8590_s13 }
 0x4d8   : > { %8984 = vst [vmem:[#allocation174_spill] sm:$0xff] %v7082_v33 }
 0x4d9   : > { %4436 = vrot.lane.b32.xlu0 %v6816_v27, %s8590_s13  ;;  %v7088_v44 = vpop.permute.xlu1 %3941 }
 0x4da   : > { %8985 = vst [vmem:[#allocation175_spill] sm:$0xff] %v7088_v44 }
 0x4db   : > { %v7090_v19 = vpop.permute.xlu0 %3938  ;;  %4442 = vrot.lane.b32.xlu1 %v6829_v59, %s8590_s13 }
 0x4dc   : > { %8986 = vst [vmem:[#allocation176_spill] sm:$0xff] %v7090_v19 }
 0x4dd   : > { %4440 = vrot.lane.b32.xlu0 %v6824_v1, %s8590_s13  ;;  %v7096_v58 = vpop.permute.xlu1 %3945  ;;  %s9001_s13 = smov 55  }
 0x4de   : > { %8987 = vst [vmem:[#allocation177_spill] sm:$0xff] %v7096_v58 }
 0x4df   : > { %v7098_v23 = vpop.permute.xlu0 %3943  ;;  %4475 = vrot.lane.b32.xlu1 %v6819_v25, %s8921_s16 }
 0x4e0   : > { %8988 = vst [vmem:[#allocation178_spill] sm:$0xff] %v7098_v23 }
 0x4e1   : > { %4473 = vrot.lane.b32.xlu0 %v6816_v27, %s8921_s16  ;;  %v7104_v33 = vpop.permute.xlu1 %3982 }
 0x4e2   : > { %8989 = vst [vmem:[#allocation179_spill] sm:$0xff] %v7104_v33 }
 0x4e3   : > { %v7106_v44 = vpop.permute.xlu0 %3976  ;;  %4479 = vrot.lane.b32.xlu1 %v6829_v59, %s8921_s16 }
 0x4e4   : > { %8990 = vst [vmem:[#allocation180_spill] sm:$0xff] %v7106_v44 }
 0x4e5   : > { %4477 = vrot.lane.b32.xlu0 %v6824_v1, %s8921_s16  ;;  %v7112_v19 = vpop.permute.xlu1 %3986 }
 0x4e6   : > { %8991 = vst [vmem:[#allocation181_spill] sm:$0xff] %v7112_v19 }
 0x4e7   : > { %v7114_v58 = vpop.permute.xlu0 %3984  ;;  %4516 = vrot.lane.b32.xlu1 %v6875_v7, %s8930_s18 }
 0x4e8   : > { %8992 = vst [vmem:[#allocation182_spill] sm:$0xff] %v7114_v58 }
 0x4e9   : > { %4514 = vrot.lane.b32.xlu0 %v6869_v11, %s8930_s18  ;;  %v7120_v27 = vpop.permute.xlu1 %4007 }
 0x4ea   : > { %8993 = vst [vmem:[#allocation183_spill] sm:$0xff] %v7120_v27 }
 0x4eb   : > { %v7122_v25 = vpop.permute.xlu0 %4004  ;;  %4520 = vrot.lane.b32.xlu1 %v6884_v34, %s8930_s18 }
 0x4ec   : > { %8994 = vst [vmem:[#allocation184_spill] sm:$0xff] %v7122_v25 }
 0x4ed   : > { %4518 = vrot.lane.b32.xlu0 %v6880_v32, %s8930_s18  ;;  %v7128_v1 = vpop.permute.xlu1 %4011 }
 0x4ee   : > { %8995 = vst [vmem:[#allocation185_spill] sm:$0xff] %v7128_v1 }
 0x4ef   : > { %v7130_v59 = vpop.permute.xlu0 %4009  ;;  %4541 = vrot.lane.b32.xlu1 %v6875_v7, %s8937_s19 }
 0x4f0   : > { %8996 = vst [vmem:[#allocation186_spill] sm:$0xff] %v7130_v59 }
 0x4f1   : > { %4539 = vrot.lane.b32.xlu0 %v6869_v11, %s8937_s19  ;;  %v7136_v58 = vpop.permute.xlu1 %4044 }
 0x4f2   : > { %8997 = vst [vmem:[#allocation187_spill] sm:$0xff] %v7136_v58 }
 0x4f3   : > { %v7138_v27 = vpop.permute.xlu0 %4041  ;;  %4545 = vrot.lane.b32.xlu1 %v6884_v34, %s8937_s19 }
 0x4f4   : > { %8998 = vst [vmem:[#allocation188_spill] sm:$0xff] %v7138_v27  ;;  %v2454_v27 = vsel %vm732_vm1, %v6754_v31, %v6762_v47 }
 0x4f5   : > { %4543 = vrot.lane.b32.xlu0 %v6880_v32, %s8937_s19  ;;  %v7144_v25 = vpop.permute.xlu1 %4048 }
 0x4f6   : > { %8999 = vst [vmem:[#allocation189_spill] sm:$0xff] %v7144_v25 }
 0x4f7   : > { %v7146_v1 = vpop.permute.xlu0 %4046  ;;  %4578 = vrot.lane.b32.xlu1 %v6875_v7, %s9001_s13  ;;  %v2447_v7 = vsel %vm732_vm1, %v6762_v47, %v6759_v24  ;;  %v9006_v47 = vld [vmem:[#allocation34_spill] sm:$0xff] }
 0x4f8   : > { %9000 = vst [vmem:[#allocation190_spill] sm:$0xff] %v7146_v1  ;;  %v2449_v1 = vsel %vm732_vm1, %v6781_v13, %v6754_v31  ;;  %v2429_v31 = vsel %vm690_vm2, %v6748_v9, %v6752_v61 }
 0x4f9   : > { %4576 = vrot.lane.b32.xlu0 %v6869_v11, %s9001_s13  ;;  %v7152_v59 = vpop.permute.xlu1 %4081  ;;  %v9004_v11 = vld [vmem:[#allocation33_spill] sm:$0xff]  ;;  %v2458_v19 = vmul.f32 %v2449_v1, %v9006_v47  ;;  %v2495_v1 = vsel %vm786_vm3, %v6772_v22, %v6798_v49 }
 0x4fa   : > { %9002 = vst [vmem:[#allocation191_spill] sm:$0xff] %v7152_v59  ;;  %v2455_v25 = vmul.f32 %v2454_v27, %v9004_v11  ;;  %v2448_v59 = vsel %vm732_vm1, %v6759_v24, %v6781_v13  ;;  %v9007_v27 = vld [vmem:[#allocation50_spill] sm:$0xff]  ;;  %v2424_v13 = vsel %vm690_vm2, %v6756_v26, %v6748_v9  ;;  %v2520_v9 = vsel %vm840_vm4, %v6810_v17, %v6826_v57 }
 0x4fb   : > { %v7157_v58 = vpop.permute.xlu0 %4078  ;;  %4582 = vrot.lane.b32.xlu1 %v6884_v34, %s9001_s13  ;;  %v4613_v34 = vld [vmem:[%s8301_s9] sm:$0x3]  ;;  %v2456_v44 = vmul.f32 %v2447_v7, %v9007_v27  ;;  %v2466_v35 = vrot.slane %v2458_v19, 4  ;;  %v9015_v19 = vld [vmem:[#allocation39_spill] sm:$0xff] }
 0x4fc   : > { %9003 = vst [vmem:[#allocation192_spill] sm:$0xff] %v7157_v58  ;;  %v2463_v23 = vrot.slane %v2455_v25, 4  ;;  %v2490_v25 = vsel %vm786_vm3, %v6813_v41, %v6772_v22  ;;  %v2488_v22 = vsel %vm786_vm3, %v6798_v49, %v6795_v56 }
 0x4fd   : > { %4580 = vrot.lane.b32.xlu0 %v6880_v32, %s9001_s13  ;;  %v7173_v58 = vpop.permute.xlu1 %4085  ;;  %v9009_v32 = vld [vmem:[#allocation51_spill] sm:$0xff] }
 0x4fe   : > { %9005 = vst [vmem:[#allocation33_spill] sm:$0xff] %v7173_v58  ;;  %v2457_v24 = vmul.f32 %v2448_v59, %v9009_v32  ;;  %v2422_v58 = vsel %vm690_vm2, %v6752_v61, %v6750_v53  ;;  %v2423_v59 = vsel %vm690_vm2, %v6750_v53, %v6756_v26  ;;  %v2464_v61 = vrot.slane %v2456_v44, 4  ;;  %v9013_v53 = vld [vmem:[#allocation36_spill] sm:$0xff]  ;;  %v9016_v32 = vld [vmem:[#allocation38_spill] sm:$0xff] }
 0x4ff   : > { %v7183_v33 = vpop.permute.xlu0 %4083  ;;  %2750 = vrot.lane.b32.xlu1 %v6571_v2, %s8939_s15  ;;  %v2433_v26 = vmul.f32 %v2424_v13, %v9013_v53  ;;  %v2496_v44 = vmul.f32 %v2495_v1, %v9015_v19  ;;  %v2432_v37 = vmul.f32 %v2423_v59, %v9016_v32  ;;  %v9019_v13 = vld [vmem:[#allocation40_spill] sm:$0xff]  ;;  %s9348_s15 = sshll.u32 %s9350_s22, 5 }
 0x500   : > { %9008 = vst [vmem:[#allocation34_spill] sm:$0xff] %v7183_v33  ;;  %v9011_v33 = vld [vmem:[#allocation35_spill] sm:$0xff] }
 0x501   : > { %4616 = vperm.xlu0 %4991, %v4613_v34   ;;  %v7197_v7 = vpop.permute.xlu1 %4122  ;;  %v2430_v45 = vmul.f32 %v2429_v31, %v9011_v33  ;;  %v2515_v34 = vsel %vm840_vm4, %v6836_v4, %v6810_v17  ;;  %v9014_v31 = vld [vmem:[#allocation37_spill] sm:$0xff]  ;;  %v2465_v33 = vrot.slane %v2457_v24, 4  ;;  %v9017_v17 = vld [vmem:[#allocation43_spill] sm:$0xff]  ;;  %v9020_v24 = vld [vmem:[#allocation46_spill] sm:$0xff]  ;;  %v2474_v49 = vadd.f32 %v2466_v35, %v2433_v26 }
 0x502   : > { %9010 = vst [vmem:[#allocation193_spill] sm:$0xff] %v7197_v7  ;;  %v2431_v30 = vmul.f32 %v2422_v58, %v9014_v31  ;;  %v2521_v27 = vmul.f32 %v2520_v9, %v9017_v17  ;;  %v2489_v58 = vsel %vm786_vm3, %v6795_v56, %v6813_v41  ;;  %v2524_v1 = vmul.f32 %v2515_v34, %v9020_v24  ;;  %v9022_v41 = vld [vmem:[#allocation41_spill] sm:$0xff] }
 0x503   : > { %v7212_v7 = vpop.permute.xlu0 %4156  ;;  %2771 = vrot.lane.b32.xlu1 %v6573_v21, %s8949_s20  ;;  %v2471_v12 = vadd.f32 %v2463_v23, %v2430_v45  ;;  %v2513_v45 = vsel %vm840_vm4, %v6826_v57, %v6821_v6  ;;  %v2473_v9 = vadd.f32 %v2465_v33, %v2432_v37  ;;  %v2497_v56 = vmul.f32 %v2488_v22, %v9022_v41  ;;  %v9023_v57 = vld [vmem:[#allocation42_spill] sm:$0xff]  ;;  %v9026_v37 = vld [vmem:[#allocation49_spill] sm:$0xff]  ;;  %v9027_v22 = vld [vmem:[#allocation59_spill] sm:$0xff] }
 0x504   : > { %9012 = vst [vmem:[#allocation194_spill] sm:$0xff] %v7212_v7  ;;  %v2499_v7 = vmul.f32 %v2490_v25, %v9019_v13  ;;  %v2472_v23 = vadd.f32 %v2464_v61, %v2431_v30  ;;  %v2586_v34 = vsel %vm940_vm6, %v6850_v16, %v6863_v42  ;;  %v2498_v35 = vmul.f32 %v2489_v58, %v9023_v57  ;;  %v9024_v61 = vld [vmem:[#allocation47_spill] sm:$0xff] }
 0x505   : > { %2768 = vrot.lane.b32.xlu0 %v6576_v10, %s8949_s20  ;;  %v7226_v21 = vpop.permute.xlu1 %4126  ;;  %v2514_v10 = vsel %vm840_vm4, %v6821_v6, %v6836_v4  ;;  %v2500_v25 = vadd.f32 %v2496_v44, %v2471_v12  ;;  %v2529_v30 = vrot.slane %v2521_v27, 4  ;;  %v2522_v26 = vmul.f32 %v2513_v45, %v9024_v61  ;;  %v9029_v45 = vld [vmem:[#allocation60_spill] sm:$0xff] }
 0x506   : > { %9018 = vst [vmem:[#allocation36_spill] sm:$0xff] %v7226_v21  ;;  %v2581_v6 = vsel %vm940_vm6, %v6877_v51, %v6850_v16  ;;  %v2503_v12 = vadd.f32 %v2499_v7, %v2474_v49  ;;  %v2532_v4 = vrot.slane %v2524_v1, 4  ;;  %v2523_v33 = vmul.f32 %v2514_v10, %v9026_v37  ;;  %v9034_v21 = vld [vmem:[#allocation62_spill] sm:$0xff] }
 0x507   : > { %v7239_v59 = vpop.permute.xlu0 %4160  ;;  %2775 = vrot.lane.b32.xlu1 %v6571_v2, %s8949_s20  ;;  %v2579_v44 = vsel %vm940_vm6, %v6863_v42, %v6860_v43  ;;  %v2561_v27 = vsel %vm898_vm5, %v6832_v38, %v6845_v15  ;;  %v2556_v16 = vsel %vm898_vm5, %v6854_v39, %v6832_v38  ;;  %v2580_v7 = vsel %vm940_vm6, %v6860_v43, %v6877_v51  ;;  %v9030_v51 = vld [vmem:[#allocation61_spill] sm:$0xff] }
 0x508   : > { %9021 = vst [vmem:[#allocation37_spill] sm:$0xff] %v7239_v59  ;;  %v2501_v42 = vadd.f32 %v2497_v56, %v2472_v23  ;;  %v2554_v1 = vsel %vm898_vm5, %v6845_v15, %v6841_v20  ;;  %v2555_v38 = vsel %vm898_vm5, %v6841_v20, %v6854_v39  ;;  %v2590_v49 = vmul.f32 %v2581_v6, %v9029_v45  ;;  %v9032_v56 = vld [vmem:[#allocation53_spill] sm:$0xff]  ;;  %v9033_v15 = vld [vmem:[#allocation54_spill] sm:$0xff]  ;;  %v9035_v20 = vld [vmem:[#allocation55_spill] sm:$0xff] }
 0x509   : > { %2773 = vrot.lane.b32.xlu0 %v6578_v52, %s8949_s20  ;;  %v7254_v2 = vpop.permute.xlu1 %4158  ;;  %v2587_v52 = vmul.f32 %v2586_v34, %v9027_v22  ;;  %v2502_v10 = vadd.f32 %v2498_v35, %v2473_v9  ;;  %v2537_v34 = vadd.f32 %v2529_v30, %v2500_v25  ;;  %v2530_v59 = vrot.slane %v2522_v26, 4  ;;  %v9036_v9 = vld [vmem:[#allocation56_spill] sm:$0xff] }
 0x50a   : > { %9025 = vst [vmem:[#allocation39_spill] sm:$0xff] %v7254_v2  ;;  %v2588_v43 = vmul.f32 %v2579_v44, %v9030_v51  ;;  %v2531_v23 = vrot.slane %v2523_v33, 4  ;;  %v2565_v2 = vmul.f32 %v2556_v16, %v9033_v15  ;;  %v2589_v22 = vmul.f32 %v2580_v7, %v9034_v21 }
 0x50b   : > { %v7270_v58 = vpop.permute.xlu0 %4193  ;;  %2812 = vrot.lane.b32.xlu1 %v6583_v55, %s8952_s24  ;;  %v2540_v39 = vadd.f32 %v2532_v4, %v2503_v12  ;;  %v2563_v6 = vmul.f32 %v2554_v1, %v9035_v20  ;;  %v2564_v25 = vmul.f32 %v2555_v38, %v9036_v9  ;;  %v2595_v35 = vrot.slane %v2587_v52, 4 }
 0x50c   : > { %9028 = vst [vmem:[#allocation38_spill] sm:$0xff] %v7270_v58  ;;  %v2562_v58 = vmul.f32 %v2561_v27, %v9032_v56  ;;  %v2598_v26 = vrot.slane %v2590_v49, 4  ;;  %v2627_v33 = vsel %vm994_vm7, %v6871_v28, %v6890_v46  ;;  %v2622_v44 = vsel %vm994_vm7, %v6900_v14, %v6871_v28 }
 0x50d   : > { %2806 = vrot.lane.b32.xlu0 %v6586_v40, %s8952_s24  ;;  %v7284_v55 = vpop.permute.xlu1 %4162  ;;  %v2620_v12 = vsel %vm994_vm7, %v6890_v46, %v6886_v8  ;;  %v2538_v4 = vadd.f32 %v2530_v59, %v2501_v42  ;;  %v2596_v27 = vrot.slane %v2588_v43, 4  ;;  %v2539_v52 = vadd.f32 %v2531_v23, %v2502_v10 }
 0x50e   : > { %9031 = vst [vmem:[#allocation43_spill] sm:$0xff] %v7284_v55  ;;  %v2566_v7 = vadd.f32 %v2562_v58, %v2537_v34  ;;  %v2569_v1 = vadd.f32 %v2565_v2, %v2540_v39  ;;  %v2597_v38 = vrot.slane %v2589_v22, 4  ;;  %v9040_v55 = vld [vmem:[#allocation65_spill] sm:$0xff]  ;;  %v2621_v2 = vsel %vm994_vm7, %v6886_v8, %v6900_v14 }
 0x50f   : > { %v7291_v30 = vpop.permute.xlu0 %4197  ;;  %2816 = vrot.lane.b32.xlu1 %v6581_v48, %s8952_s24  ;;  %v2567_v49 = vadd.f32 %v2563_v6, %v2538_v4  ;;  %v9038_v48 = vld [vmem:[#allocation63_spill] sm:$0xff]  ;;  %v2629_v21 = vmul.f32 %v2620_v12, %v9040_v55  ;;  %v2568_v46 = vadd.f32 %v2564_v25, %v2539_v52  ;;  %v2652_v58 = vsel %vm1048_vm8, %v6896_v50, %v6910_v60  ;;  %v9042_v6 = vld [vmem:[#allocation66_spill] sm:$0xff]  ;;  %v9047_v52 = vld [vmem:[#allocation157_spill] sm:$0xff] }
 0x510   : > { %9037 = vst [vmem:[#allocation40_spill] sm:$0xff] %v7291_v30  ;;  %v2628_v40 = vmul.f32 %v2627_v33, %v9038_v48  ;;  %v9039_v30 = vld [vmem:[#allocation64_spill] sm:$0xff]  ;;  %v2603_v59 = vadd.f32 %v2595_v35, %v2566_v7  ;;  %v2606_v42 = vadd.f32 %v2598_v26, %v2569_v1  ;;  %v3740_v10 = vsel %vm732_vm1, %v6978_v62, %v6976_v5  ;;  %v9045_v33 = vld [vmem:[#allocation67_spill] sm:$0xff]  ;;  %v9046_v4 = vld [vmem:[#allocation50_spill] sm:$0xff] }
 0x511   : > { %2814 = vrot.lane.b32.xlu0 %v6588_v36, %s8952_s24  ;;  %v7306_v16 = vpop.permute.xlu1 %4195  ;;  %v2631_v28 = vmul.f32 %v2622_v44, %v9039_v30  ;;  %v2604_v22 = vadd.f32 %v2596_v27, %v2567_v49  ;;  %v3735_v34 = vsel %vm732_vm1, %v6984_v18, %v6978_v62  ;;  %v2605_v23 = vadd.f32 %v2597_v38, %v2568_v46  ;;  %v9044_v62 = vld [vmem:[#allocation91_spill] sm:$0xff]  ;;  %v9048_v1 = vld [vmem:[#allocation158_spill] sm:$0xff]  ;;  %v9050_v49 = vld [vmem:[#allocation153_spill] sm:$0xff] }
 0x512   : > { %v3733_v8 = vsel %vm732_vm1, %v6976_v5, %v6986_v0  ;;  %v7334_v14 = vadd.f32 %v2628_v40, %v2603_v59  ;;  %v2630_v25 = vmul.f32 %v2621_v2, %v9042_v6  ;;  %v7346_v44 = vmul.f32 %v2652_v58, %v9045_v33  ;;  %v9053_v59 = vld [vmem:[#allocation159_spill] sm:$0xff]  ;;  %v9055_v2 = vld [vmem:[#allocation156_spill] sm:$0xff] }
 0x513   : > { %v7311_v51 = vpop.permute.xlu0 %4116  ;;  %2852 = vrot.lane.b32.xlu1 %v6598_v54, %s8954_s25  ;;  %v7336_v39 = vadd.f32 %v2631_v28, %v2606_v42  ;;  %v7339_v35 = vadd.f32 %v2629_v21, %v2604_v22  ;;  %v3741_v12 = vmul.f32 %v3740_v10, %v9004_v11  ;;  %v3744_v5 = vmul.f32 %v3735_v34, %v9006_v47  ;;  %v9049_v47 = vld [vmem:[#allocation75_spill] sm:$0xff]  ;;  %v9051_v28 = vld [vmem:[#allocation154_spill] sm:$0xff]  ;;  %v9054_v42 = vld [vmem:[#allocation160_spill] sm:$0xff] }
 0x514   : > { %v3777_v40 = vsel %vm786_vm3, %v7010_v29, %v7008_v3  ;;  %v3734_v21 = vsel %vm732_vm1, %v6986_v0, %v6984_v18  ;;  %v3742_v27 = vmul.f32 %v3733_v8, %v9046_v4  ;;  %v3772_v7 = vsel %vm786_vm3, %v9047_v52, %v7010_v29  ;;  %v9052_v0 = vld [vmem:[#allocation155_spill] sm:$0xff]  ;;  %v9056_v10 = vld [vmem:[#allocation161_spill] sm:$0xff]  ;;  %v9057_v8 = vld [vmem:[#allocation162_spill] sm:$0xff] }
 0x515   : > { %2850 = vrot.lane.b32.xlu0 %v6593_v63, %s8954_s25  ;;  %v7329_v43 = vpop.permute.xlu1 %4199  ;;  %9041 = vst [vmem:[#allocation46_spill] sm:$0xff] %v7336_v39  ;;  %9043 = vst [vmem:[#allocation41_spill] sm:$0xff] %v7339_v35  ;;  %v3770_v11 = vsel %vm786_vm3, %v7008_v3, %v9048_v1  ;;  %v3715_v46 = vsel %vm690_vm2, %v9051_v28, %v9050_v49  ;;  %v3710_v18 = vsel %vm690_vm2, %v9052_v0, %v9051_v28  ;;  %v9123_v39 = vld [vmem:[#allocation84_spill] sm:$0xff] }
 0x516   : > { %v3771_v29 = vsel %vm786_vm3, %v9048_v1, %v9047_v52  ;;  %v3814_v3 = vsel %vm840_vm4, %v9054_v42, %v9053_v59  ;;  %v3708_v22 = vsel %vm690_vm2, %v9050_v49, %v9055_v2  ;;  %v3778_v58 = vmul.f32 %v3777_v40, %v9015_v19  ;;  %v9058_v49 = vld [vmem:[#allocation51_spill] sm:$0xff] }
 0x517   : > { %v7341_v26 = vpop.permute.xlu0 %4124  ;;  %2856 = vrot.lane.b32.xlu1 %v9044_v62, %s8954_s25  ;;  %v3809_v34 = vsel %vm840_vm4, %v9056_v10, %v9054_v42  ;;  %v3807_v4 = vsel %vm840_vm4, %v9053_v59, %v9057_v8  ;;  %v3709_v52 = vsel %vm690_vm2, %v9055_v2, %v9052_v0  ;;  %v3781_v1 = vmul.f32 %v3772_v7, %v9019_v13  ;;  %v9059_v59 = vld [vmem:[#allocation35_spill] sm:$0xff] }
 0x518   : > { %v3779_v19 = vmul.f32 %v3770_v11, %v9022_v41  ;;  %v3808_v40 = vsel %vm840_vm4, %v9057_v8, %v9056_v10  ;;  %v3743_v42 = vmul.f32 %v3734_v21, %v9058_v49  ;;  %v3716_v36 = vmul.f32 %v3715_v46, %v9059_v59  ;;  %v9065_v49 = vld [vmem:[#allocation165_spill] sm:$0xff]  ;;  %v9066_v59 = vld [vmem:[#allocation2_spill] sm:$0xff] }
 0x519   : > { %2854 = vrot.lane.b32.xlu0 %v9049_v47, %s8954_s25  ;;  %v7365_v38 = vpop.permute.xlu1 %4236  ;;  %v3780_v35 = vmul.f32 %v3771_v29, %v9023_v57  ;;  %v3719_v13 = vmul.f32 %v3710_v18, %v9013_v53  ;;  %v3717_v41 = vmul.f32 %v3708_v22, %v9014_v31  ;;  %v3818_v7 = vmul.f32 %v3809_v34, %v9020_v24  ;;  %s413_s25 = scalar_lea.vmem %s8304_s12, %s9348_s15 }
 0x51a   : > { %v3816_v11 = vmul.f32 %v3807_v4, %v9024_v61  ;;  %v3749_v21 = vrot.slane %v3741_v12, 2  ;;  %v3718_v46 = vmul.f32 %v3709_v52, %v9016_v32  ;;  %v3786_v2 = vrot.slane %v3778_v58, 4 }
 0x51b   : > { %v7389_v28 = vpop.permute.xlu0 %4234  ;;  %2877 = vrot.lane.b32.xlu1 %v6598_v54, %s8958_s23  ;;  %v3815_v54 = vmul.f32 %v3814_v3, %v9017_v17  ;;  %v3817_v57 = vmul.f32 %v3808_v40, %v9026_v37  ;;  %v3750_v29 = vrot.slane %v3742_v27, 2  ;;  %v3789_v53 = vrot.slane %v3781_v1, 4 }
 0x51c   : > { %v3787_v18 = vrot.slane %v3779_v19, 4  ;;  %v3751_v31 = vrot.slane %v3743_v42, 2  ;;  %v3757_v3 = vadd.f32 %v3749_v21, %v3716_v36  ;;  %v3788_v24 = vrot.slane %v3780_v35, 4  ;;  %v9061_v36 = vld [vmem:[#allocation4_spill] sm:$0xff]  ;;  %v9069_v21 = vld [vmem:[#allocation169_spill] sm:$0xff]  ;;  %v9109_v35 = vld [vmem:[#allocation191_spill] sm:$0xff] }
 0x51d   : > { %2875 = vrot.lane.b32.xlu0 %v6593_v63, %s8958_s23  ;;  %v7407_v0 = vpop.permute.xlu1 %4240  ;;  %v3752_v63 = vrot.slane %v3744_v5, 2  ;;  %v3823_v22 = vrot.slane %v3815_v54, 6  ;;  %v3758_v37 = vadd.f32 %v3750_v29, %v3717_v41  ;;  %v3826_v12 = vrot.slane %v3818_v7, 6  ;;  %v9064_v19 = vld [vmem:[#allocation164_spill] sm:$0xff]  ;;  %v9067_v41 = vld [vmem:[#allocation167_spill] sm:$0xff] }
 0x51e   : > { %v3824_v58 = vrot.slane %v3816_v11, 6  ;;  %v7423_v10 = vadd.f32 %v2630_v25, %v2605_v23  ;;  %v3794_v5 = vadd.f32 %v3786_v2, %v3757_v3  ;;  %v3825_v27 = vrot.slane %v3817_v57, 6  ;;  %v9063_v25 = vld [vmem:[#allocation163_spill] sm:$0xff]  ;;  %v9068_v7 = vld [vmem:[#allocation168_spill] sm:$0xff]  ;;  %v9070_v57 = vld [vmem:[#allocation166_spill] sm:$0xff] }
 0x51f   : > { %v7415_v17 = vpop.permute.xlu0 %4238  ;;  %2881 = vrot.lane.b32.xlu1 %v9044_v62, %s8958_s23  ;;  %v3760_v61 = vadd.f32 %v3752_v63, %v3719_v13  ;;  %v3759_v62 = vadd.f32 %v3751_v31, %v3718_v46  ;;  %v3795_v52 = vadd.f32 %v3787_v18, %v3758_v37  ;;  %v3855_v40 = vsel %vm898_vm5, %v9064_v19, %v9063_v25  ;;  %v9072_v3 = vld [vmem:[#allocation5_spill] sm:$0xff]  ;;  %v9073_v37 = vld [vmem:[#allocation171_spill] sm:$0xff] }
 0x520   : > { %9060 = vst [vmem:[#allocation42_spill] sm:$0xff] %v7423_v10  ;;  %v3831_v23 = vadd.f32 %v3823_v22, %v3794_v5  ;;  %v3850_v42 = vsel %vm898_vm5, %v9065_v49, %v9064_v19  ;;  %v3880_v11 = vsel %vm940_vm6, %v9068_v7, %v9067_v41  ;;  %v3875_v46 = vsel %vm940_vm6, %v9069_v21, %v9068_v7  ;;  %v9111_v10 = vld [vmem:[#allocation3_spill] sm:$0xff] }
 0x521   : > { %2879 = vrot.lane.b32.xlu0 %v9049_v47, %s8958_s23  ;;  %v7421_v32 = vpop.permute.xlu1 %4261  ;;  %v9062_v47 = vld [vmem:[#allocation142_spill] sm:$0xff]  ;;  %v3797_v4 = vadd.f32 %v3789_v53, %v3760_v61  ;;  %v3796_v1 = vadd.f32 %v3788_v24, %v3759_v62  ;;  %v3848_v63 = vsel %vm898_vm5, %v9063_v25, %v9070_v57  ;;  %v3849_v29 = vsel %vm898_vm5, %v9070_v57, %v9065_v49  ;;  %v9075_v62 = vld [vmem:[#allocation59_spill] sm:$0xff]  ;;  %v9079_v49 = vld [vmem:[#allocation61_spill] sm:$0xff] }
 0x522   : > { %v7433_v8 = vsel %vm1048_vm8, %v9062_v47, %v6896_v50  ;;  %v3832_v50 = vadd.f32 %v3824_v58, %v3795_v52  ;;  %v9071_v53 = vld [vmem:[#allocation170_spill] sm:$0xff]  ;;  %v3856_v24 = vmul.f32 %v3855_v40, %v9032_v56  ;;  %v3859_v22 = vmul.f32 %v3850_v42, %v9033_v15  ;;  %v9078_v15 = vld [vmem:[#allocation52_spill] sm:$0xff] }
 0x523   : > { %v7425_v34 = vpop.permute.xlu0 %4259  ;;  %2918 = vrot.lane.b32.xlu1 %v9061_v36, %s8961_s14  ;;  %v3834_v13 = vadd.f32 %v3826_v12, %v3797_v4  ;;  %v3833_v2 = vadd.f32 %v3825_v27, %v3796_v1  ;;  %v3873_v18 = vsel %vm940_vm6, %v9067_v41, %v9071_v53  ;;  %v3874_v61 = vsel %vm940_vm6, %v9071_v53, %v9069_v21  ;;  %v9074_v12 = vld [vmem:[#allocation172_spill] sm:$0xff]  ;;  %v9076_v4 = vld [vmem:[#allocation173_spill] sm:$0xff]  ;;  %v9077_v1 = vld [vmem:[#allocation174_spill] sm:$0xff] }
 0x524   : > { %v3917_v58 = vsel %vm994_vm7, %v9074_v12, %v9073_v37  ;;  %v3881_v5 = vmul.f32 %v3880_v11, %v9075_v62  ;;  %v3884_v27 = vmul.f32 %v3875_v46, %v9029_v45  ;;  %v3912_v52 = vsel %vm994_vm7, %v9076_v4, %v9074_v12  ;;  %v9080_v41 = vld [vmem:[#allocation62_spill] sm:$0xff]  ;;  %v9081_v21 = vld [vmem:[#allocation175_spill] sm:$0xff]  ;;  %v9082_v46 = vld [vmem:[#allocation176_spill] sm:$0xff] }
 0x525   : > { %2916 = vrot.lane.b32.xlu0 %v9066_v59, %s8961_s14  ;;  %v7443_v54 = vpop.permute.xlu1 %4265  ;;  %v3910_v56 = vsel %vm994_vm7, %v9073_v37, %v9077_v1  ;;  %v3857_v19 = vmul.f32 %v3848_v63, %v9035_v20  ;;  %v3858_v40 = vmul.f32 %v3849_v29, %v9036_v9  ;;  %v3882_v42 = vmul.f32 %v3873_v18, %v9079_v49  ;;  %v9083_v53 = vld [vmem:[#allocation177_spill] sm:$0xff]  ;;  %v9084_v18 = vld [vmem:[#allocation178_spill] sm:$0xff] }
 0x526   : > { %v3911_v45 = vsel %vm994_vm7, %v9077_v1, %v9076_v4  ;;  %v3883_v7 = vmul.f32 %v3874_v61, %v9080_v41  ;;  %v3918_v11 = vmul.f32 %v3917_v58, %v9038_v48  ;;  %v3954_v57 = vsel %vm1048_vm8, %v9082_v46, %v9081_v21  ;;  %v9086_v41 = vld [vmem:[#allocation69_spill] sm:$0xff] }
 0x527   : > { %v7460_v31 = vpop.permute.xlu0 %4263  ;;  %2922 = vrot.lane.b32.xlu1 %v9072_v3, %s8961_s14  ;;  %v3949_v20 = vsel %vm1048_vm8, %v9083_v53, %v9082_v46  ;;  %v3921_v9 = vmul.f32 %v3912_v52, %v9039_v30  ;;  %v3919_v29 = vmul.f32 %v3910_v56, %v9040_v55  ;;  %v3947_v48 = vsel %vm1048_vm8, %v9081_v21, %v9084_v18  ;;  %v9085_v52 = vld [vmem:[#allocation68_spill] sm:$0xff] }
 0x528   : > { %v3948_v61 = vsel %vm1048_vm8, %v9084_v18, %v9083_v53  ;;  %v3860_v37 = vadd.f32 %v3856_v24, %v3831_v23  ;;  %v3889_v12 = vrot.slane %v3881_v5, 2  ;;  %v3892_v58 = vrot.slane %v3884_v27, 2  ;;  %v9087_v23 = vld [vmem:[#allocation70_spill] sm:$0xff]  ;;  %v9089_v46 = vld [vmem:[#allocation180_spill] sm:$0xff] }
 0x529   : > { %2920 = vrot.lane.b32.xlu0 %v9078_v15, %s8961_s14  ;;  %v7482_v25 = vpop.permute.xlu1 %4298  ;;  %v3920_v62 = vmul.f32 %v3911_v45, %v9042_v6  ;;  %v3863_v30 = vadd.f32 %v3859_v22, %v3834_v13  ;;  %v3890_v55 = vrot.slane %v3882_v42, 2  ;;  %v3955_v4 = vmul.f32 %v3954_v57, %v9045_v33  ;;  %v9088_v45 = vld [vmem:[#allocation179_spill] sm:$0xff]  ;;  %v9091_v18 = vld [vmem:[#allocation12_spill] sm:$0xff] }
 0x52a   : > { %v3958_v1 = vmul.f32 %v3949_v20, %v9085_v52  ;;  %v3891_v56 = vrot.slane %v3883_v7, 2  ;;  %v3926_v49 = vrot.slane %v3918_v11, 4  ;;  %v3956_v21 = vmul.f32 %v3947_v48, %v9086_v41 }
 0x52b   : > { %v7498_v63 = vpop.permute.xlu0 %4296  ;;  %2943 = vrot.lane.b32.xlu1 %v9061_v36, %s8966_s17  ;;  %v3957_v24 = vmul.f32 %v3948_v61, %v9087_v23  ;;  %v3861_v6 = vadd.f32 %v3857_v19, %v3832_v50  ;;  %v3929_v27 = vrot.slane %v3921_v9, 4  ;;  %v3927_v13 = vrot.slane %v3919_v29, 4  ;;  %v9090_v50 = vld [vmem:[#allocation181_spill] sm:$0xff]  ;;  %v9092_v61 = vld [vmem:[#allocation71_spill] sm:$0xff] }
 0x52c   : > { %v3897_v22 = vadd.f32 %v3889_v12, %v3860_v37  ;;  %v3900_v42 = vadd.f32 %v3892_v58, %v3863_v30  ;;  %v3928_v33 = vrot.slane %v3920_v62, 4  ;;  %v3995_v7 = vsel %vm1106_vm9, %v9089_v46, %v9088_v45  ;;  %v9093_v12 = vld [vmem:[#allocation183_spill] sm:$0xff]  ;;  %v9094_v58 = vld [vmem:[#allocation184_spill] sm:$0xff] }
 0x52d   : > { %2941 = vrot.lane.b32.xlu0 %v9066_v59, %s8966_s17  ;;  %v7513_v36 = vpop.permute.xlu1 %4302  ;;  %v3862_v59 = vadd.f32 %v3858_v40, %v3833_v2  ;;  %v3898_v57 = vadd.f32 %v3890_v55, %v3861_v6  ;;  %v3963_v53 = vrot.slane %v3955_v4, 6  ;;  %v3966_v20 = vrot.slane %v3958_v1, 6  ;;  %v9095_v55 = vld [vmem:[#allocation72_spill] sm:$0xff]  ;;  %v9096_v1 = vld [vmem:[#allocation185_spill] sm:$0xff] }
 0x52e   : > { %v3990_v2 = vsel %vm1106_vm9, %v9090_v50, %v9089_v46  ;;  %v3934_v19 = vadd.f32 %v3926_v49, %v3897_v22  ;;  %v3964_v40 = vrot.slane %v3956_v21, 6  ;;  %v3965_v9 = vrot.slane %v3957_v24, 6  ;;  %v9097_v49 = vld [vmem:[#allocation186_spill] sm:$0xff]  ;;  %v9098_v24 = vld [vmem:[#allocation11_spill] sm:$0xff] }
 0x52f   : > { %v7519_v5 = vpop.permute.xlu0 %4300  ;;  %2947 = vrot.lane.b32.xlu1 %v9072_v3, %s8966_s17  ;;  %v3899_v3 = vadd.f32 %v3891_v56, %v3862_v59  ;;  %v3937_v48 = vadd.f32 %v3929_v27, %v3900_v42  ;;  %v3996_v37 = vmul.f32 %v3995_v7, %v9092_v61  ;;  %v4020_v62 = vsel %vm1148_vm10, %v9094_v58, %v9093_v12  ;;  %v9100_v7 = vld [vmem:[#allocation77_spill] sm:$0xff] }
 0x530   : > { %v3999_v4 = vmul.f32 %v3990_v2, %v9095_v55  ;;  %v4015_v56 = vsel %vm1148_vm10, %v9096_v1, %v9094_v58  ;;  %v4013_v21 = vsel %vm1148_vm10, %v9093_v12, %v9097_v49  ;;  %v3971_v59 = vadd.f32 %v3963_v53, %v3934_v19  ;;  %v9101_v2 = vld [vmem:[#allocation187_spill] sm:$0xff]  ;;  %v9104_v53 = vld [vmem:[#allocation10_spill] sm:$0xff]  ;;  %v9110_v55 = vld [vmem:[#allocation192_spill] sm:$0xff] }
 0x531   : > { %2945 = vrot.lane.b32.xlu0 %v9078_v15, %s8966_s17  ;;  %v7528_v11 = vpop.permute.xlu1 %4335  ;;  %v3935_v15 = vadd.f32 %v3927_v13, %v3898_v57  ;;  %v3936_v30 = vadd.f32 %v3928_v33, %v3899_v3  ;;  %v3974_v27 = vadd.f32 %v3966_v20, %v3937_v48  ;;  %v9099_v13 = vld [vmem:[#allocation182_spill] sm:$0xff]  ;;  %v4014_v42 = vsel %vm1148_vm10, %v9097_v49, %v9096_v1  ;;  %v9102_v3 = vld [vmem:[#allocation188_spill] sm:$0xff]  ;;  %v9120_v61 = vld [vmem:[#allocation85_spill] sm:$0xff] }
 0x532   : > { %v3988_v22 = vsel %vm1106_vm9, %v9088_v45, %v9099_v13  ;;  %v4021_v57 = vmul.f32 %v4020_v62, %v9100_v7  ;;  %v4057_v12 = vsel %vm8637_vm0, %v9102_v3, %v9101_v2  ;;  %v4000_v20 = vadd.f32 %v3996_v37, %v3971_v59  ;;  %v9105_v19 = vld [vmem:[#allocation78_spill] sm:$0xff]  ;;  %v9107_v62 = vld [vmem:[#allocation73_spill] sm:$0xff]  ;;  %v9108_v1 = vld [vmem:[#allocation80_spill] sm:$0xff] }
 0x533   : > { %v7533_v29 = vpop.permute.xlu0 %4333  ;;  %2984 = vrot.lane.b32.xlu1 %v9091_v18, %s5011_s28  ;;  %v3972_v33 = vadd.f32 %v3964_v40, %v3935_v15  ;;  %v3973_v46 = vadd.f32 %v3965_v9, %v3936_v30  ;;  %v3989_v45 = vsel %vm1106_vm9, %v9099_v13, %v9090_v50  ;;  %v4024_v48 = vmul.f32 %v4015_v56, %v9105_v19  ;;  %v9106_v40 = vld [vmem:[#allocation79_spill] sm:$0xff]  ;;  %v9113_v59 = vld [vmem:[#allocation81_spill] sm:$0xff] }
 0x534   : > { %v4022_v9 = vmul.f32 %v4013_v21, %v9106_v40  ;;  %v4003_v15 = vadd.f32 %v3999_v4, %v3974_v27  ;;  %v3997_v30 = vmul.f32 %v3988_v22, %v9107_v62  ;;  %v4023_v49 = vmul.f32 %v4014_v42, %v9108_v1  ;;  %v9114_v56 = vld [vmem:[#allocation189_spill] sm:$0xff]  ;;  %v9115_v4 = vld [vmem:[#allocation190_spill] sm:$0xff] }
 0x535   : > { %2982 = vrot.lane.b32.xlu0 %v9098_v24, %s5011_s28  ;;  %v7550_v6 = vpop.permute.xlu1 %4339  ;;  %v4094_v7 = vsel %vm8631_vm11, %v9110_v55, %v9109_v35  ;;  %v4058_v50 = vmul.f32 %v4057_v12, %v9113_v59  ;;  %v4052_v21 = vsel %vm8637_vm0, %v9114_v56, %v9102_v3  ;;  %v4050_v27 = vsel %vm8637_vm0, %v9101_v2, %v9115_v4  ;;  %v9116_v22 = vld [vmem:[#allocation74_spill] sm:$0xff]  ;;  %v9117_v62 = vld [vmem:[#allocation33_spill] sm:$0xff] }
 0x536   : > { %v4051_v13 = vsel %vm8637_vm0, %v9115_v4, %v9114_v56  ;;  %v3998_v42 = vmul.f32 %v3989_v45, %v9116_v22  ;;  %v4029_v40 = vrot.slane %v4021_v57, 2  ;;  %v4089_v1 = vsel %vm8631_vm11, %v9117_v62, %v9110_v55  ;;  %v9118_v12 = vld [vmem:[#allocation34_spill] sm:$0xff]  ;;  %v9122_v22 = vld [vmem:[#allocation83_spill] sm:$0xff] }
 0x537   : > { %v7562_v58 = vpop.permute.xlu0 %4337  ;;  %2988 = vrot.lane.b32.xlu1 %v9104_v53, %s5011_s28  ;;  %v4087_v59 = vsel %vm8631_vm11, %v9109_v35, %v9118_v12  ;;  %v4032_v2 = vrot.slane %v4024_v48, 2  ;;  %v4030_v19 = vrot.slane %v4022_v9, 2  ;;  %v4095_v56 = vmul.f32 %v4094_v7, %v9120_v61  ;;  %v9121_v4 = vld [vmem:[#allocation82_spill] sm:$0xff]  ;;  %v9126_v61 = vld [vmem:[#allocation87_spill] sm:$0xff] }
 0x538   : > { %9103 = vst [vmem:[#allocation47_spill] sm:$0xff] %v7562_v58  ;;  %v4088_v57 = vsel %vm8631_vm11, %v9118_v12, %v9117_v62  ;;  %v4031_v45 = vrot.slane %v4023_v49, 2  ;;  %v4061_v55 = vmul.f32 %v4052_v21, %v9121_v4  ;;  %v4060_v35 = vmul.f32 %v4051_v13, %v9123_v39  ;;  %v9125_v9 = vld [vmem:[#allocation86_spill] sm:$0xff]  ;;  %v9127_v21 = vld [vmem:[#allocation88_spill] sm:$0xff]  ;;  %v9128_v12 = vld [vmem:[#allocation193_spill] sm:$0xff] }
 0x539   : > { %2986 = vrot.lane.b32.xlu0 %v9111_v10, %s5011_s28  ;;  %v7578_v37 = vpop.permute.xlu1 %4376  ;;  %v4066_v48 = vrot.slane %v4058_v50, 4  ;;  %v4098_v7 = vmul.f32 %v4089_v1, %v9125_v9  ;;  %v4096_v58 = vmul.f32 %v4087_v59, %v9126_v61  ;;  %v7616_v62 = vmul.f32 %v7433_v8, %v9085_v52  ;;  %v9131_v61 = vld [vmem:[#allocation95_spill] sm:$0xff]  ;;  %vm9134_vm11 = vmmov %vm9133_vm12  ;;  %s9159_s28 = smov 65  }
 0x53a   : > { %9112 = vst [vmem:[#allocation49_spill] sm:$0xff] %v7578_v37  ;;  %v4059_v37 = vmul.f32 %v4050_v27, %v9122_v22  ;;  %v4002_v49 = vadd.f32 %v3998_v42, %v3973_v46  ;;  %v4097_v27 = vmul.f32 %v4088_v57, %v9127_v21  ;;  %v4135_v13 = vsel %vm9129_vm15, %v7311_v51, %v9128_v12 }
 0x53b   : > { %v7597_v3 = vpop.permute.xlu0 %4374  ;;  %3009 = vrot.lane.b32.xlu1 %v9091_v18, %s5010_s27  ;;  %v4001_v18 = vadd.f32 %v3997_v30, %v3972_v33  ;;  %v4037_v33 = vadd.f32 %v4029_v40, %v4000_v20  ;;  %v4040_v30 = vadd.f32 %v4032_v2, %v4003_v15  ;;  %v4103_v59 = vrot.slane %v4095_v56, 6  ;;  %v9136_v15 = vld [vmem:[#allocation30_spill] sm:$0xff]  ;;  %v9138_v2 = vld [vmem:[#allocation137_spill] sm:$0xff] }
 0x53c   : > { %9119 = vst [vmem:[#allocation60_spill] sm:$0xff] %v7597_v3  ;;  %v4039_v50 = vadd.f32 %v4031_v45, %v4002_v49  ;;  %v4069_v22 = vrot.slane %v4061_v55, 4  ;;  %v4067_v8 = vrot.slane %v4059_v37, 4  ;;  %v4068_v52 = vrot.slane %v4060_v35, 4  ;;  %v9139_v55 = vld [vmem:[#allocation39_spill] sm:$0xff]  ;;  %v9141_v49 = vld [vmem:[#allocation37_spill] sm:$0xff] }
 0x53d   : > { %3007 = vrot.lane.b32.xlu0 %v9098_v24, %s5010_s27  ;;  %v7610_v3 = vpop.permute.xlu1 %4380  ;;  %v4038_v1 = vadd.f32 %v4030_v19, %v4001_v18  ;;  %v4074_v42 = vadd.f32 %v4066_v48, %v4037_v33  ;;  %v4106_v57 = vrot.slane %v4098_v7, 6  ;;  %v4104_v21 = vrot.slane %v4096_v58, 6  ;;  %v9137_v58 = vld [vmem:[#allocation136_spill] sm:$0xff] }
 0x53e   : > { %9124 = vst [vmem:[#allocation53_spill] sm:$0xff] %v7610_v3  ;;  %v4136_v39 = vmul.f32 %v4135_v13, %v9131_v61  ;;  %v4105_v9 = vrot.slane %v4097_v27, 6  ;;  %v4128_v19 = vsel %vm9133_vm12, %v9128_v12, %v7341_v26  ;;  %v4144_v37 = vrot.slane %v9137_v58, 2  ;;  %v9142_v27 = vld [vmem:[#allocation29_spill] sm:$0xff]  ;;  %v9143_v13 = vld [vmem:[#allocation96_spill] sm:$0xff]  ;;  %v9145_v58 = vld [vmem:[#allocation102_spill] sm:$0xff] }
 0x53f   : > { %v7622_v24 = vpop.permute.xlu0 %4378  ;;  %3013 = vrot.lane.b32.xlu1 %v9104_v53, %s5010_s27  ;;  %v9132_v53 = vld [vmem:[#allocation36_spill] sm:$0xff]  ;;  %v4145_v56 = vrot.slane %v9138_v2, 2  ;;  %v4111_v45 = vadd.f32 %v4103_v59, %v4074_v42  ;;  %v4077_v18 = vadd.f32 %v4069_v22, %v4040_v30  ;;  %v4075_v48 = vadd.f32 %v4067_v8, %v4038_v1  ;;  %v9144_v59 = vld [vmem:[#allocation101_spill] sm:$0xff] }
 0x540   : > { %9130 = vst [vmem:[#allocation54_spill] sm:$0xff] %v7622_v24  ;;  %v4130_v20 = vsel %vm9129_vm15, %v9132_v53, %v7311_v51  ;;  %v9140_v51 = vld [vmem:[#allocation194_spill] sm:$0xff]  ;;  %v4076_v7 = vadd.f32 %v4068_v52, %v4039_v50  ;;  %v4137_v42 = vmul.f32 %v4128_v19, %v9144_v59  ;;  %v9146_v1 = vld [vmem:[#allocation89_spill] sm:$0xff]  ;;  %vm9167_vm15 = vcmask 973824  }
 0x541   : > { %3011 = vrot.lane.b32.xlu0 %v9111_v10, %s5010_s27  ;;  %v7628_v46 = vpop.permute.xlu1 %4401  ;;  %v4129_v10 = vsel %vm9134_vm11, %v7341_v26, %v9132_v53  ;;  %s9135_s27 = smov 71   ;;  %v4164_v35 = vsel %vm8636_vm13, %v9140_v51, %v9139_v55  ;;  %v4165_v26 = vsel %vm8636_vm13, %v9139_v55, %v9141_v49  ;;  %v4139_v33 = vmul.f32 %v4130_v20, %v9143_v13  ;;  %v9147_v52 = vld [vmem:[#allocation14_spill] sm:$0xff]  ;;  %v9148_v55 = vld [vmem:[#allocation43_spill] sm:$0xff]  ;;  %v9157_v59 = vld [vmem:[#allocation97_spill] sm:$0xff] }
 0x542   : > { %v4140_v53 = vadd.f32 %v4136_v39, %v4111_v45  ;;  %v4138_v2 = vmul.f32 %v4129_v10, %v9145_v58  ;;  %v4114_v61 = vadd.f32 %v4106_v57, %v4077_v18  ;;  %v4112_v22 = vadd.f32 %v4104_v21, %v4075_v48  ;;  %v9149_v20 = vld [vmem:[#allocation38_spill] sm:$0xff]  ;;  %v9153_v48 = vld [vmem:[#allocation13_spill] sm:$0xff] }
 0x543   : > { %v7640_v40 = vpop.permute.xlu0 %4399  ;;  %3050 = vrot.lane.b32.xlu1 %v9136_v15, %s9135_s27  ;;  %v4113_v30 = vadd.f32 %v4105_v9, %v4076_v7  ;;  %v4173_v50 = vmul.f32 %v4164_v35, %v9146_v1  ;;  %v4166_v4 = vsel %vm8636_vm13, %v9141_v49, %v9148_v55  ;;  %v4172_v39 = vsel %vm8636_vm13, %v9148_v55, %v9140_v51  ;;  %v9150_v9 = vld [vmem:[#allocation40_spill] sm:$0xff]  ;;  %v9151_v19 = vld [vmem:[#allocation138_spill] sm:$0xff] }
 0x544   : > { %v4201_v21 = vsel %vm8635_vm14, %v9149_v20, %v7306_v16  ;;  %v4202_v57 = vsel %vm8635_vm14, %v7306_v16, %v9150_v9  ;;  %v4146_v10 = vrot.slane %v9151_v19, 2  ;;  %v9152_v45 = vld [vmem:[#allocation90_spill] sm:$0xff]  ;;  %v4203_v18 = vsel %vm8635_vm14, %v9150_v9, %v7329_v43  ;;  %v9155_v19 = vld [vmem:[#allocation92_spill] sm:$0xff] }
 0x545   : > { %3048 = vrot.lane.b32.xlu0 %v9142_v27, %s9135_s27  ;;  %v7654_v12 = vpop.permute.xlu1 %4405  ;;  %v4174_v35 = vmul.f32 %v4165_v26, %v9152_v45  ;;  %v4209_v51 = vsel %vm8635_vm14, %v7329_v43, %v9149_v20  ;;  %v4143_v49 = vadd.f32 %v4139_v33, %v4114_v61  ;;  %v4152_v55 = vadd.f32 %v4144_v37, %v4140_v53  ;;  %v9156_v26 = vld [vmem:[#allocation93_spill] sm:$0xff]  ;;  %v9158_v9 = vld [vmem:[#allocation98_spill] sm:$0xff]  ;;  %v9160_v43 = vld [vmem:[#allocation139_spill] sm:$0xff] }
 0x546   : > { %v4141_v16 = vadd.f32 %v4137_v42, %v4112_v22  ;;  %v4142_v1 = vadd.f32 %v4138_v2, %v4113_v30  ;;  %v4175_v58 = vmul.f32 %v4166_v4, %v9155_v19  ;;  %v4176_v45 = vmul.f32 %v4172_v39, %v9156_v26  ;;  %v9161_v61 = vld [vmem:[#allocation99_spill] sm:$0xff]  ;;  %v9162_v33 = vld [vmem:[#allocation100_spill] sm:$0xff]  ;;  %vm9168_vm14 = vmmov %vm9167_vm15 }
 0x547   : > { %v7660_v8 = vpop.permute.xlu0 %4403  ;;  %3054 = vrot.lane.b32.xlu1 %v9147_v52, %s9135_s27  ;;  %v4210_v13 = vmul.f32 %v4201_v21, %v9157_v59  ;;  %v4211_v24 = vmul.f32 %v4202_v57, %v9158_v9  ;;  %v4147_v20 = vrot.slane %v9160_v43, 2  ;;  %v4212_v37 = vmul.f32 %v4203_v18, %v9161_v61  ;;  %v9164_v2 = vld [vmem:[#allocation140_spill] sm:$0xff]  ;;  %vm9169_vm13 = vmmov %vm9168_vm14 }
 0x548   : > { %v4213_v53 = vmul.f32 %v4209_v51, %v9162_v33  ;;  %v9163_v4 = vrot.slane %v7346_v44, 4  ;;  %v2645_v22 = vsel %vm1048_vm8, %v6910_v60, %v9164_v2  ;;  %v4182_v30 = vrot.slane %v4174_v35, 4  ;;  %vm9170_vm0 = vmmov %vm9169_vm13 }
 0x549   : > { %3052 = vrot.lane.b32.xlu0 %v9153_v48, %s9135_s27  ;;  %v7686_v7 = vpop.permute.xlu1 %4438  ;;  %v4155_v39 = vadd.f32 %v4147_v20, %v4143_v49  ;;  %v4153_v21 = vadd.f32 %v4145_v56, %v4141_v16  ;;  %v4154_v57 = vadd.f32 %v4146_v10, %v4142_v1  ;;  %v4184_v18 = vrot.slane %v4176_v45, 4  ;;  %v9177_v16 = vld [vmem:[#allocation107_spill] sm:$0xff] }
 0x54a   : > { %9154 = vst [vmem:[#allocation55_spill] sm:$0xff] %v7686_v7  ;;  %v4181_v7 = vrot.slane %v4173_v50, 4  ;;  %v7702_v42 = vadd.f32 %v9163_v4, %v7334_v14  ;;  %v4183_v14 = vrot.slane %v4175_v58, 4  ;;  %v4218_v51 = vrot.slane %v4210_v13, 6 }
 0x54b   : > { %v7692_v3 = vpop.permute.xlu0 %4436  ;;  %3075 = vrot.lane.b32.xlu1 %v9136_v15, %s9159_s28  ;;  %v2646_v15 = vsel %vm1048_vm8, %v9164_v2, %v9062_v47  ;;  %v4219_v43 = vrot.slane %v4211_v24, 6  ;;  %v4220_v60 = vrot.slane %v4212_v37, 6  ;;  %v4221_v47 = vrot.slane %v4213_v53, 6  ;;  %v9178_v37 = vld [vmem:[#allocation110_spill] sm:$0xff]  ;;  %v9179_v2 = vld [vmem:[#allocation108_spill] sm:$0xff] }
 0x54c   : > { %v4189_v44 = vadd.f32 %v4181_v7, %v4152_v55  ;;  %vm9165_vm11 = vcmask 982016   ;;  %v4267_v13 = vsel %vm9167_vm15, %v7425_v34, %v7421_v32  ;;  %v4275_v24 = vsel %vm9168_vm14, %v7443_v54, %v7425_v34  ;;  %v9171_v7 = vld [vmem:[#allocation103_spill] sm:$0xff]  ;;  %v9172_v34 = vld [vmem:[#allocation106_spill] sm:$0xff] }
 0x54d   : > { %3073 = vrot.lane.b32.xlu0 %v9142_v27, %s9159_s28  ;;  %v7712_v50 = vpop.permute.xlu1 %4442  ;;  %v4242_v27 = vsel %vm9165_vm11, %v7389_v28, %v7365_v38  ;;  %vm9166_vm12 = vmmov %vm9165_vm11  ;;  %v4268_v58 = vsel %vm9169_vm13, %v7421_v32, %v7460_v31  ;;  %v4269_v1 = vsel %vm9170_vm0, %v7460_v31, %v7443_v54  ;;  %v4190_v45 = vadd.f32 %v4182_v30, %v4153_v21 }
 0x54e   : > { %v4250_v56 = vsel %vm9166_vm12, %v7407_v0, %v7389_v28  ;;  %v4226_v10 = vadd.f32 %v4218_v51, %v4189_v44  ;;  %v4191_v35 = vadd.f32 %v4183_v14, %v4154_v57  ;;  %v4251_v49 = vmul.f32 %v4242_v27, %v9171_v7  ;;  %vm9173_vm13 = vmmov %vm9165_vm11  ;;  %v9181_v44 = vld [vmem:[#allocation125_spill] sm:$0xff]  ;;  %v9182_v27 = vld [vmem:[#allocation104_spill] sm:$0xff] }
 0x54f   : > { %v7714_v4 = vpop.permute.xlu0 %4440  ;;  %3079 = vrot.lane.b32.xlu1 %v9147_v52, %s9159_s28  ;;  %v4192_v52 = vadd.f32 %v4184_v18, %v4155_v39  ;;  %v4254_v55 = vmul.f32 %v4250_v56, %v9172_v34  ;;  %v4243_v32 = vsel %vm9173_vm13, %v7365_v38, %v7415_v17  ;;  %vm9174_vm0 = vmmov %vm9165_vm11  ;;  %v4276_v20 = vmul.f32 %v4267_v13, %v9177_v16  ;;  %v9180_v39 = vld [vmem:[#allocation109_spill] sm:$0xff]  ;;  %v9215_v34 = vld [vmem:[#allocation15_spill] sm:$0xff] }
 0x550   : > { %v4244_v54 = vsel %vm9174_vm0, %v7415_v17, %v7407_v0  ;;  %v4279_v53 = vmul.f32 %v4275_v24, %v9178_v37  ;;  %v4277_v30 = vmul.f32 %v4268_v58, %v9179_v2  ;;  %v4278_v21 = vmul.f32 %v4269_v1, %v9180_v39  ;;  %v9183_v13 = vld [vmem:[#allocation105_spill] sm:$0xff]  ;;  %v9184_v1 = vld [vmem:[#allocation126_spill] sm:$0xff] }
 0x551   : > { %3077 = vrot.lane.b32.xlu0 %v9153_v48, %s9159_s28  ;;  %v7738_v28 = vpop.permute.xlu1 %4475  ;;  %v9176_v48 = vld [vmem:[#allocation127_spill] sm:$0xff]  ;;  %v4304_v38 = vsel %vm690_vm2, %v7498_v63, %v7482_v25  ;;  %v4312_v0 = vsel %vm690_vm2, %v7513_v36, %v7498_v63  ;;  %v4305_v17 = vsel %vm690_vm2, %v7482_v25, %v7519_v5  ;;  %v4306_v57 = vsel %vm690_vm2, %v7519_v5, %v7513_v36  ;;  %v9188_v39 = vld [vmem:[#allocation113_spill] sm:$0xff] }
 0x552   : > { %v4227_v18 = vadd.f32 %v4219_v43, %v4190_v45  ;;  %v4228_v51 = vadd.f32 %v4220_v60, %v4191_v35  ;;  %v4252_v56 = vmul.f32 %v4243_v32, %v9182_v27  ;;  %v4253_v24 = vmul.f32 %v4244_v54, %v9183_v13  ;;  %v9185_v43 = vld [vmem:[#allocation111_spill] sm:$0xff]  ;;  %v9186_v45 = vld [vmem:[#allocation114_spill] sm:$0xff]  ;;  %v9187_v32 = vld [vmem:[#allocation112_spill] sm:$0xff] }
 0x553   : > { %v7748_v31 = vpop.permute.xlu0 %4473  ;;  %3116 = vrot.lane.b32.xlu1 %v9176_v48, %s9175_s29  ;;  %v2664_v63 = vrot.slane %v7616_v62, 4  ;;  %v7776_v58 = vmul.f32 %v2645_v22, %v9086_v41  ;;  %v7779_v25 = vmul.f32 %v2646_v15, %v9087_v23  ;;  %v4229_v36 = vadd.f32 %v4221_v47, %v4192_v52  ;;  %v9189_v23 = vld [vmem:[#allocation124_spill] sm:$0xff] }
 0x554   : > { %v4313_v60 = vmul.f32 %v4304_v38, %v9185_v43  ;;  %v4316_v35 = vmul.f32 %v4312_v0, %v9186_v45  ;;  %v4314_v54 = vmul.f32 %v4305_v17, %v9187_v32  ;;  %v4315_v62 = vmul.f32 %v4306_v57, %v9188_v39  ;;  %v9207_v32 = vld [vmem:[#allocation55_spill] sm:$0xff] }
 0x555   : > { %3114 = vrot.lane.b32.xlu0 %v9181_v44, %s9175_s29  ;;  %v7770_v14 = vpop.permute.xlu1 %4479  ;;  %v4284_v2 = vrot.slane %v4276_v20, 2  ;;  %v4287_v41 = vrot.slane %v4279_v53, 2  ;;  %v4285_v22 = vrot.slane %v4277_v30, 2  ;;  %v4286_v37 = vrot.slane %v4278_v21, 2  ;;  %v9190_v53 = vld [vmem:[#allocation47_spill] sm:$0xff] }
 0x556   : > { %v4255_v47 = vadd.f32 %v4251_v49, %v4226_v10  ;;  %v4258_v52 = vadd.f32 %v4254_v55, %v4229_v36  ;;  %v4256_v16 = vadd.f32 %v4252_v56, %v4227_v18  ;;  %v4257_v13 = vadd.f32 %v4253_v24, %v4228_v51  ;;  %v9191_v56 = vld [vmem:[#allocation115_spill] sm:$0xff]  ;;  %v9192_v24 = vld [vmem:[#allocation118_spill] sm:$0xff] }
 0x557   : > { %v7781_v5 = vpop.permute.xlu0 %4477  ;;  %3120 = vrot.lane.b32.xlu1 %v9184_v1, %s9175_s29  ;;  %v4341_v38 = vsel %vm732_vm1, %v7533_v29, %v7528_v11  ;;  %v4349_v20 = vsel %vm732_vm1, %v7550_v6, %v7533_v29  ;;  %v4342_v30 = vsel %vm732_vm1, %v7528_v11, %v9190_v53  ;;  %v4343_v21 = vsel %vm732_vm1, %v9190_v53, %v7550_v6  ;;  %v9193_v53 = vld [vmem:[#allocation116_spill] sm:$0xff] }
 0x558   : > { %v4321_v49 = vrot.slane %v4313_v60, 4  ;;  %v4324_v55 = vrot.slane %v4316_v35, 4  ;;  %v4322_v0 = vrot.slane %v4314_v54, 4  ;;  %v4323_v17 = vrot.slane %v4315_v62, 4  ;;  %v9195_v35 = vld [vmem:[#allocation46_spill] sm:$0xff] }
 0x559   : > { %3118 = vrot.lane.b32.xlu0 %v9189_v23, %s9175_s29  ;;  %v7791_v15 = vpop.permute.xlu1 %4516  ;;  %v4292_v57 = vadd.f32 %v4284_v2, %v4255_v47  ;;  %v4295_v18 = vadd.f32 %v4287_v41, %v4258_v52  ;;  %v4293_v29 = vadd.f32 %v4285_v22, %v4256_v16  ;;  %v4294_v51 = vadd.f32 %v4286_v37, %v4257_v13  ;;  %v9196_v37 = vld [vmem:[#allocation144_spill] sm:$0xff]  ;;  %v9197_v13 = vld [vmem:[#allocation141_spill] sm:$0xff] }
 0x55a   : > { %v4350_v6 = vmul.f32 %v4341_v38, %v9191_v56  ;;  %v4353_v36 = vmul.f32 %v4349_v20, %v9192_v24  ;;  %v4351_v39 = vmul.f32 %v4342_v30, %v9193_v53  ;;  %v7818_v54 = vadd.f32 %v2664_v63, %v9195_v35  ;;  %v9205_v35 = vld [vmem:[#allocation6_spill] sm:$0xff]  ;;  %v9211_v24 = vld [vmem:[#allocation120_spill] sm:$0xff] }
 0x55b   : > { %v7805_v10 = vpop.permute.xlu0 %4514  ;;  %3141 = vrot.lane.b32.xlu1 %v9176_v48, %s8921_s16  ;;  %v9194_v48 = vld [vmem:[#allocation117_spill] sm:$0xff]  ;;  %v4329_v41 = vadd.f32 %v4321_v49, %v4292_v57  ;;  %v4332_v22 = vadd.f32 %v4324_v55, %v4295_v18  ;;  %v4330_v47 = vadd.f32 %v4322_v0, %v4293_v29  ;;  %v4331_v52 = vadd.f32 %v4323_v17, %v4294_v51  ;;  %v9199_v57 = vld [vmem:[#allocation60_spill] sm:$0xff]  ;;  %v9201_v29 = vld [vmem:[#allocation54_spill] sm:$0xff] }
 0x55c   : > { %v4352_v60 = vmul.f32 %v4343_v21, %v9194_v48  ;;  %v4407_v63 = vsel %vm840_vm4, %v7640_v40, %v7628_v46  ;;  %v4415_v38 = vsel %vm840_vm4, %v7654_v12, %v7640_v40  ;;  %v4408_v20 = vsel %vm840_vm4, %v7628_v46, %v7660_v8  ;;  %v9198_v17 = vld [vmem:[#allocation49_spill] sm:$0xff]  ;;  %v9203_v51 = vld [vmem:[#allocation123_spill] sm:$0xff] }
 0x55d   : > { %3139 = vrot.lane.b32.xlu0 %v9181_v44, %s8921_s16  ;;  %v7811_v11 = vpop.permute.xlu1 %4520  ;;  %v7825_v44 = vsel %vm1106_vm9, %v9197_v13, %v9196_v37  ;;  %v4358_v21 = vrot.slane %v4350_v6, 6  ;;  %v4361_v49 = vrot.slane %v4353_v36, 6  ;;  %v4359_v55 = vrot.slane %v4351_v39, 6  ;;  %v9200_v18 = vld [vmem:[#allocation53_spill] sm:$0xff]  ;;  %v9202_v39 = vld [vmem:[#allocation131_spill] sm:$0xff]  ;;  %v9204_v36 = vld [vmem:[#allocation8_spill] sm:$0xff] }
 0x55e   : > { %v4360_v0 = vrot.slane %v4352_v60, 6  ;;  %v4382_v40 = vsel %vm786_vm3, %v9199_v57, %v9198_v17  ;;  %v4390_v46 = vsel %vm786_vm3, %v9200_v18, %v9199_v57  ;;  %v4416_v6 = vmul.f32 %v4407_v63, %v9203_v51  ;;  %v9206_v57 = vld [vmem:[#allocation7_spill] sm:$0xff] }
 0x55f   : > { %v7827_v62 = vpop.permute.xlu0 %4518  ;;  %3145 = vrot.lane.b32.xlu1 %v9184_v1, %s8921_s16  ;;  %v4409_v1 = vsel %vm840_vm4, %v7660_v8, %v7654_v12  ;;  %v4383_v12 = vsel %vm786_vm3, %v9198_v17, %v9201_v29  ;;  %v4384_v8 = vsel %vm786_vm3, %v9201_v29, %v9200_v18  ;;  %v4419_v60 = vmul.f32 %v4415_v38, %v9204_v36  ;;  %v9208_v38 = vld [vmem:[#allocation129_spill] sm:$0xff]  ;;  %v9209_v51 = vld [vmem:[#allocation119_spill] sm:$0xff] }
 0x560   : > { %v4417_v16 = vmul.f32 %v4408_v20, %v9205_v35  ;;  %v4418_v2 = vmul.f32 %v4409_v1, %v9206_v57  ;;  %v4444_v17 = vsel %vm898_vm5, %v7692_v3, %v9207_v32  ;;  %v4452_v18 = vsel %vm898_vm5, %v7712_v50, %v7692_v3  ;;  %v9210_v3 = vld [vmem:[#allocation122_spill] sm:$0xff] }
 0x561   : > { %3143 = vrot.lane.b32.xlu0 %v9189_v23, %s8921_s16  ;;  %v7845_v30 = vpop.permute.xlu1 %4541  ;;  %v4445_v29 = vsel %vm898_vm5, %v9207_v32, %v7714_v4  ;;  %v4446_v63 = vsel %vm898_vm5, %v7714_v4, %v7712_v50  ;;  %v4366_v1 = vadd.f32 %v4358_v21, %v4329_v41  ;;  %v4369_v57 = vadd.f32 %v4361_v49, %v4332_v22  ;;  %v9212_v32 = vld [vmem:[#allocation121_spill] sm:$0xff]  ;;  %v9213_v50 = vld [vmem:[#allocation130_spill] sm:$0xff]  ;;  %v9216_v41 = vld [vmem:[#allocation48_spill] sm:$0xff] }
 0x562   : > { %v4367_v35 = vadd.f32 %v4359_v55, %v4330_v47  ;;  %v4368_v36 = vadd.f32 %v4360_v0, %v4331_v52  ;;  %v4391_v48 = vmul.f32 %v4382_v40, %v9209_v51  ;;  %v4394_v53 = vmul.f32 %v4390_v46, %v9210_v3  ;;  %v9214_v4 = vld [vmem:[#allocation9_spill] sm:$0xff]  ;;  %v9217_v47 = vld [vmem:[#allocation16_spill] sm:$0xff] }
 0x563   : > { %v7859_v23 = vpop.permute.xlu0 %4539  ;;  %3182 = vrot.lane.b32.xlu1 %v9202_v39, %s8930_s18  ;;  %v4392_v56 = vmul.f32 %v4383_v12, %v9211_v24  ;;  %v4393_v45 = vmul.f32 %v4384_v8, %v9212_v32  ;;  %v4453_v27 = vmul.f32 %v4444_v17, %v9214_v4  ;;  %v4456_v7 = vmul.f32 %v4452_v18, %v9215_v34  ;;  %v9218_v40 = vld [vmem:[#allocation128_spill] sm:$0xff]  ;;  %v9219_v34 = vld [vmem:[#allocation19_spill] sm:$0xff]  ;;  %v9220_v32 = vld [vmem:[#allocation17_spill] sm:$0xff] }
 0x564   : > { %v4454_v22 = vmul.f32 %v4445_v29, %v9216_v41  ;;  %v4455_v52 = vmul.f32 %v4446_v63, %v9217_v47  ;;  %v4424_v21 = vrot.slane %v4416_v6, 2  ;;  %v4427_v49 = vrot.slane %v4419_v60, 2  ;;  %v9221_v24 = vld [vmem:[#allocation20_spill] sm:$0xff]  ;;  %v9222_v51 = vld [vmem:[#allocation21_spill] sm:$0xff] }
 0x565   : > { %3180 = vrot.lane.b32.xlu0 %v9208_v38, %s8930_s18  ;;  %v7881_v20 = vpop.permute.xlu1 %4545  ;;  %v4425_v55 = vrot.slane %v4417_v16, 2  ;;  %v4426_v0 = vrot.slane %v4418_v2, 2  ;;  %v4481_v12 = vsel %vm940_vm6, %v7748_v31, %v7738_v28  ;;  %v4489_v8 = vsel %vm940_vm6, %v7770_v14, %v7748_v31 }
 0x566   : > { %v4482_v17 = vsel %vm940_vm6, %v7738_v28, %v7781_v5  ;;  %v4483_v2 = vsel %vm940_vm6, %v7781_v5, %v7770_v14  ;;  %v4395_v16 = vadd.f32 %v4391_v48, %v4366_v1  ;;  %v4398_v6 = vadd.f32 %v4394_v53, %v4369_v57  ;;  %v9226_v57 = vld [vmem:[#allocation148_spill] sm:$0xff]  ;;  %v9227_v1 = vld [vmem:[#allocation145_spill] sm:$0xff] }
 0x567   : > { %v4544_v43 = vpop.permute.xlu0 %4543  ;;  %3186 = vrot.lane.b32.xlu1 %v9213_v50, %s8930_s18  ;;  %v4396_v60 = vadd.f32 %v4392_v56, %v4367_v35  ;;  %v4397_v18 = vadd.f32 %v4393_v45, %v4368_v36  ;;  %v4461_v63 = vrot.slane %v4453_v27, 4  ;;  %v4464_v47 = vrot.slane %v4456_v7, 4  ;;  %v9223_v27 = vld [vmem:[#allocation41_spill] sm:$0xff]  ;;  %v9225_v36 = vld [vmem:[#allocation71_spill] sm:$0xff] }
 0x568   : > { %v4462_v41 = vrot.slane %v4454_v22, 4  ;;  %v4463_v31 = vrot.slane %v4455_v52, 4  ;;  %v4490_v4 = vmul.f32 %v4481_v12, %v9219_v34  ;;  %v4493_v28 = vmul.f32 %v4489_v8, %v9220_v32 }
 0x569   : > { %3184 = vrot.lane.b32.xlu0 %v9218_v40, %s8930_s18  ;;  %v4579_v46 = vpop.permute.xlu1 %4578  ;;  %v4491_v3 = vmul.f32 %v4482_v17, %v9221_v24  ;;  %v4492_v14 = vmul.f32 %v4483_v2, %v9222_v51  ;;  %v4432_v45 = vadd.f32 %v4424_v21, %v4395_v16  ;;  %v4435_v56 = vadd.f32 %v4427_v49, %v4398_v6 }
 0x56a   : > { %v4433_v53 = vadd.f32 %v4425_v55, %v4396_v60  ;;  %v4434_v48 = vadd.f32 %v4426_v0, %v4397_v18  ;;  %v9224_v7 = vrot.slane %v7776_v58, 4  ;;  %v7922_v35 = vmul.f32 %v7825_v44, %v9225_v36  ;;  %v3271_v44 = vld [vmem:[%s8297_s5] sm:$0xf] }
 0x56b   : > { %v4577_v29 = vpop.permute.xlu0 %4576  ;;  %3207 = vrot.lane.b32.xlu1 %v9202_v39, %s8937_s19  ;;  %v7927_v22 = vsel %vm1148_vm10, %v9227_v1, %v9226_v57  ;;  %v4469_v58 = vadd.f32 %v4461_v63, %v4432_v45  ;;  %v4472_v21 = vadd.f32 %v4464_v47, %v4435_v56  ;;  %v4498_v0 = vrot.slane %v4490_v4, 6  ;;  %v4628_v47 = vld [vmem:[%s8303_s11] sm:$0xf]  ;;  %v9229_v63 = vld [vmem:[#allocation25_spill] sm:$0xff] }
 0x56c   : > { %v7918_v39 = vadd.f32 %v9224_v7, %v9223_v27  ;;  %v4470_v49 = vadd.f32 %v4462_v41, %v4433_v53  ;;  %v4471_v55 = vadd.f32 %v4463_v31, %v4434_v48  ;;  %v4501_v12 = vrot.slane %v4493_v28, 6  ;;  %v9234_v48 = vld [vmem:[#allocation24_spill] sm:$0xff] }
 0x56d   : > { %3205 = vrot.lane.b32.xlu0 %v9208_v38, %s8937_s19  ;;  %v4583_v5 = vpop.permute.xlu1 %4582  ;;  %v9228_v38 = vld [vmem:[#allocation150_spill] sm:$0xff]  ;;  %v4499_v8 = vrot.slane %v4491_v3, 6  ;;  %v4500_v17 = vrot.slane %v4492_v14, 6  ;;  %v4555_v41 = vsel %vm1048_vm8, %v7881_v20, %v7859_v23  ;;  %v4548_v4 = vsel %vm1048_vm8, %v7845_v30, %v4544_v43  ;;  %v9231_v14 = vld [vmem:[#allocation27_spill] sm:$0xff] }
 0x56e   : > { %v7932_v52 = vsel %vm1148_vm10, %v9228_v38, %v9227_v1  ;;  %v4549_v3 = vsel %vm1048_vm8, %v4544_v43, %v7881_v20  ;;  %v4530_v6 = vsel %vm994_vm7, %v7811_v11, %v7805_v10  ;;  %v4524_v43 = vsel %vm994_vm7, %v7827_v62, %v7811_v11  ;;  %v9233_v11 = vld [vmem:[#allocation22_spill] sm:$0xff] }
 0x56f   : > { %3211 = vrot.lane.b32.xlu1 %v9213_v50, %s8937_s19  ;;  %v4581_v2 = vpop.permute.xlu0 %4580  ;;  %v4547_v50 = vsel %vm1048_vm8, %v7859_v23, %v7845_v30  ;;  %v4523_v23 = vsel %vm994_vm7, %v7791_v15, %v7827_v62  ;;  %v4584_v30 = vsel %vm1106_vm9, %v4577_v29, %v4579_v46  ;;  %v4592_v20 = vsel %vm1106_vm9, %v4583_v5, %v4577_v29  ;;  %v9235_v29 = vld [vmem:[#allocation18_spill] sm:$0xff] }
 0x570   : > { %v4585_v60 = vsel %vm1106_vm9, %v4579_v46, %v4581_v2  ;;  %v4586_v18 = vsel %vm1106_vm9, %v4581_v2, %v4583_v5  ;;  %v4556_v31 = vmul.f32 %v4547_v50, %v9229_v63  ;;  %v4557_v45 = vmul.f32 %v4548_v4, %v9231_v14  ;;  %v9236_v46 = vld [vmem:[#allocation23_spill] sm:$0xff]  ;;  %v9239_v50 = vld [vmem:[#allocation32_spill] sm:$0xff]  ;;  %v9240_v4 = vld [vmem:[#allocation45_spill] sm:$0xff] }
 0x571   : > { %3209 = vrot.lane.b32.xlu0 %v9218_v40, %s8937_s19  ;;  %v7941_v16 = vpop.permute.xlu1 %2750  ;;  %v4522_v40 = vsel %vm994_vm7, %v7805_v10, %v7791_v15  ;;  %v9230_v10 = vld [vmem:[#allocation26_spill] sm:$0xff]  ;;  %v9232_v15 = vld [vmem:[#allocation28_spill] sm:$0xff]  ;;  %v4534_v27 = vmul.f32 %v4530_v6, %v9234_v48  ;;  %v4532_v7 = vmul.f32 %v4523_v23, %v9235_v29  ;;  %v4533_v36 = vmul.f32 %v4524_v43, %v9236_v46  ;;  %v9237_v5 = vld [vmem:[#allocation31_spill] sm:$0xff] }
 0x572   : > { %v4559_v28 = vmul.f32 %v4555_v41, %v9230_v10  ;;  %v4558_v56 = vmul.f32 %v4549_v3, %v9232_v15  ;;  %v4531_v62 = vmul.f32 %v4522_v40, %v9233_v11  ;;  %v4593_v1 = vmul.f32 %v4584_v30, %v9237_v5  ;;  %v9241_v3 = vld [vmem:[#allocation135_spill] sm:$0xff]  ;;  %v9242_v43 = vld [vmem:[#allocation133_spill] sm:$0xff] }
 0x573   : > { %3274 = vperm.xlu1 %4992, %v3271_v44   ;;  %v9238_v44 = vld [vmem:[#allocation58_spill] sm:$0xff]  ;;  %v4594_v41 = vmul.f32 %v4585_v60, %v9239_v50  ;;  %v4595_v14 = vmul.f32 %v4586_v18, %v9240_v4  ;;  %v4509_v10 = vadd.f32 %v4501_v12, %v4472_v21  ;;  %v4507_v40 = vadd.f32 %v4499_v8, %v4470_v49 }
 0x574   : > { %v4596_v2 = vmul.f32 %v4592_v20, %v9238_v44  ;;  %v4508_v11 = vadd.f32 %v4500_v17, %v4471_v55  ;;  %v4564_v6 = vrot.slane %v4556_v31, 2  ;;  %v4567_v48 = vrot.slane %v4559_v28, 2  ;;  %v9243_v21 = vld [vmem:[#allocation134_spill] sm:$0xff]  ;;  %v9247_v31 = vld [vmem:[#allocation147_spill] sm:$0xff] }
 0x575   : > { %4631 = vperm.xlu0 %4991, %v4628_v47   ;;  %v7976_v53 = vpop.permute.xlu1 %2771  ;;  %v4506_v47 = vadd.f32 %v4498_v0, %v4469_v58  ;;  %v4565_v23 = vrot.slane %v4557_v45, 2  ;;  %v4566_v29 = vrot.slane %v4558_v56, 2  ;;  %v4538_v60 = vadd.f32 %v4534_v27, %v4509_v10  ;;  %v9244_v49 = vld [vmem:[#allocation42_spill] sm:$0xff] }
 0x576   : > { %v4536_v50 = vadd.f32 %v4532_v7, %v4507_v40  ;;  %v4537_v18 = vadd.f32 %v4533_v36, %v4508_v11  ;;  %v4601_v44 = vrot.slane %v4593_v1, 4  ;;  %v4604_v4 = vrot.slane %v4596_v2, 4  ;;  %v9246_v8 = vld [vmem:[#allocation146_spill] sm:$0xff]  ;;  %v9248_v11 = vld [vmem:[#allocation132_spill] sm:$0xff]  ;;  %v9254_v40 = vld [vmem:[#allocation149_spill] sm:$0xff] }
 0x577   : > { %3248 = vrot.lane.b32.xlu1 %v9241_v3, %s9001_s13  ;;  %v4535_v20 = vadd.f32 %v4531_v62, %v4506_v47  ;;  %v4602_v3 = vrot.slane %v4594_v41, 4  ;;  %v4603_v58 = vrot.slane %v4595_v14, 4  ;;  %v9245_v55 = vrot.slane %v7779_v25, 4  ;;  %v9249_v62 = vld [vmem:[#allocation143_spill] sm:$0xff]  ;;  %v9251_v27 = vld [vmem:[#allocation78_spill] sm:$0xff]  ;;  %v9252_v2 = vld [vmem:[#allocation72_spill] sm:$0xff] }
 0x578   : > { %v2698_v12 = vadd.f32 %v7922_v35, %v7702_v42  ;;  %v2688_v17 = vsel %vm1106_vm9, %v9246_v8, %v9197_v13  ;;  %v2712_v10 = vsel %vm1148_vm10, %v9247_v31, %v9228_v38  ;;  %v4575_v14 = vadd.f32 %v4567_v48, %v4538_v60  ;;  %v9250_v35 = vld [vmem:[#allocation77_spill] sm:$0xff]  ;;  %v9253_v41 = vld [vmem:[#allocation80_spill] sm:$0xff] }
 0x579   : > { %3246 = vrot.lane.b32.xlu0 %v9242_v43, %s9001_s13  ;;  %v7990_v30 = vpop.permute.xlu1 %2775  ;;  %v2671_v0 = vadd.f32 %v9245_v55, %v9244_v49  ;;  %v4572_v28 = vadd.f32 %v4564_v6, %v4535_v20  ;;  %v4573_v45 = vadd.f32 %v4565_v23, %v4536_v50  ;;  %v4574_v56 = vadd.f32 %v4566_v29, %v4537_v18  ;;  %v9256_v20 = vld [vmem:[#allocation73_spill] sm:$0xff]  ;;  %v9257_v18 = vld [vmem:[#allocation74_spill] sm:$0xff] }
 0x57a   : > { %v2686_v42 = vsel %vm1106_vm9, %v9196_v37, %v9249_v62  ;;  %v2687_v13 = vsel %vm1106_vm9, %v9249_v62, %v9246_v8  ;;  %v2719_v38 = vmul.f32 %v7927_v22, %v9250_v35  ;;  %v2722_v48 = vmul.f32 %v7932_v52, %v9251_v27  ;;  %v4627_v62 = vld [vmem:[%s8302_s10] sm:$0xf] }
 0x57b   : > { %3252 = vrot.lane.b32.xlu1 %v9243_v21, %s9001_s13  ;;  %v4609_v29 = vadd.f32 %v4601_v44, %v4572_v28  ;;  %v4612_v7 = vadd.f32 %v4604_v4, %v4575_v14  ;;  %v4610_v36 = vadd.f32 %v4602_v3, %v4573_v45  ;;  %v4611_v1 = vadd.f32 %v4603_v58, %v4574_v56  ;;  %v9259_v28 = vld [vmem:[#allocation152_spill] sm:$0xff]  ;;  %v9261_v45 = vld [vmem:[#allocation82_spill] sm:$0xff] }
 0x57c   : > { %v2697_v50 = vmul.f32 %v2688_v17, %v9252_v2  ;;  %v2711_v37 = vsel %vm1148_vm10, %v9226_v57, %v9247_v31  ;;  %v2721_v47 = vmul.f32 %v2712_v10, %v9253_v41  ;;  %vm9255_vm14 = vcmask 64512   ;;  %v9258_v31 = vld [vmem:[#allocation79_spill] sm:$0xff] }
 0x57d   : > { %3250 = vrot.lane.b32.xlu0 %v9248_v11, %s9001_s13  ;;  %v8007_v25 = vpop.permute.xlu1 %2812  ;;  %v2754_v6 = vsel %vm9255_vm14, %v7941_v16, %v9254_v40  ;;  %v2695_v60 = vmul.f32 %v2686_v42, %v9256_v20  ;;  %v2696_v3 = vmul.f32 %v2687_v13, %v9257_v18  ;;  %v2727_v58 = vrot.slane %v2719_v38, 4  ;;  %vm9260_vm10 = vmmov %vm9255_vm14  ;;  %v9262_v13 = vld [vmem:[#allocation151_spill] sm:$0xff] }
 0x57e   : > { %v2730_v21 = vrot.slane %v2722_v48, 4  ;;  %v2701_v17 = vadd.f32 %v2697_v50, %v7818_v54  ;;  %v2720_v10 = vmul.f32 %v2711_v37, %v9258_v31  ;;  %v2759_v14 = vsel %vm9260_vm10, %v9254_v40, %v9259_v28  ;;  %vm9263_vm11 = vmmov %vm9260_vm10  ;;  %v9268_v48 = vld [vmem:[#allocation85_spill] sm:$0xff]  ;;  %v9279_v18 = vld [vmem:[#allocation87_spill] sm:$0xff] }
 0x57f   : > { %v2763_v56 = vmul.f32 %v2754_v6, %v9261_v45  ;;  %v2729_v42 = vrot.slane %v2721_v47, 4  ;;  %v2753_v35 = vsel %vm9263_vm11, %v9262_v13, %v7941_v16  ;;  %vm9264_vm12 = vcmask 56320   ;;  %v9272_v50 = vld [vmem:[#allocation81_spill] sm:$0xff]  ;;  %v9276_v47 = vld [vmem:[#allocation84_spill] sm:$0xff] }
 0x580   : > { %v4617_v22 = vpop.permute.xlu0 %4616  ;;  %vm9265_vm15 = vmmov %vm9264_vm12  ;;  %vm9266_vm13 = vcmask 1041408   ;;  %v2738_v27 = vadd.f32 %v2730_v21, %v2701_v17  ;;  %v2735_v2 = vadd.f32 %v2727_v58, %v2698_v12  ;;  %v2760_v37 = vmul.f32 %v2759_v14, %v9272_v50  ;;  %v9280_v58 = vld [vmem:[#allocation88_spill] sm:$0xff] }
 0x581   : > { %v4619_v23 = vadd.f32 %v4617_v22, %v4609_v29  ;;  %v4620_v43 = vadd.f32 %v4617_v22, %v4610_v36  ;;  %v4621_v52 = vadd.f32 %v4617_v22, %v4611_v1  ;;  %v4622_v44 = vadd.f32 %v4617_v22, %v4612_v7  ;;  %v8027_v4 = vpop.permute.xlu1 %2816  ;;  %vm9267_vm0 = vmmov %vm9266_vm13  ;;  %v9269_v7 = vld [vmem:[#allocation86_spill] sm:$0xff] }
 0x582   : > { %vm9270_vm14 = vmmov %vm9267_vm0  ;;  %v2700_v1 = vadd.f32 %v2696_v3, %v2671_v0  ;;  %vm9273_vm11 = vcmask 15360   ;;  %v2762_v40 = vmul.f32 %v2753_v35, %v9276_v47  ;;  %v2767_v6 = vadd.f32 %v2763_v56, %v2738_v27  ;;  %v9286_v35 = vld [vmem:[#allocation94_spill] sm:$0xff] }
 0x583   : > { %v4623_v57 = vmax.f32 %v4619_v23, 0.0  ;;  %v4624_v49 = vmax.f32 %v4620_v43, 0.0  ;;  %v4625_v55 = vmax.f32 %v4621_v52, 0.0  ;;  %v4626_v8 = vmax.f32 %v4622_v44, 0.0  ;;  %vm9271_vm10 = vmmov %vm9267_vm0  ;;  %v9291_v47 = vld [vmem:[#allocation102_spill] sm:$0xff] }
 0x584   : > { %v2769_v11 = vpop.permute.xlu0 %2768  ;;  %v2728_v43 = vrot.slane %v2720_v10, 4  ;;  %v2737_v52 = vadd.f32 %v2729_v42, %v2700_v1 }
 0x585   : > { %v2779_v54 = vsel %vm9264_vm12, %v7990_v30, %v2769_v11  ;;  %v2784_v38 = vsel %vm9265_vm15, %v2769_v11, %v7976_v53  ;;  %4954 = vmatprep.subr.msk.mxu0 %vm9266_vm13, %v4624_v49  ;;  %4957 = vmatprep.subr.msk.mxu1 %vm9267_vm0, %v4626_v8  ;;  %v8053_v16 = vpop.permute.xlu1 %2852  ;;  %vm9274_vm12 = vmmov %vm9273_vm11  ;;  %vm9275_vm15 = vcmask 64512   ;;  %vm9277_vm13 = vcmask 56320   ;;  %v9281_v49 = vld [vmem:[#allocation83_spill] sm:$0xff] }
 0x586   : > { %v2785_v29 = vmul.f32 %v2784_v38, %v9268_v48  ;;  %v2788_v36 = vmul.f32 %v2779_v54, %v9269_v7  ;;  %4955 = vmatpush1.msk.msra.mxu0 %vm9270_vm14, %v4623_v57  ;;  %4958 = vmatpush1.msk.msra.mxu1 %vm9271_vm10, %v4625_v55  ;;  %v2752_v41 = vsel %vm9275_vm15, %v9259_v28, %v9262_v13  ;;  %vm9278_vm0 = vmmov %vm9277_vm13  ;;  %vm9282_vm14 = vcmask 7168   ;;  %v9287_v38 = vld [vmem:[#allocation44_spill] sm:$0xff] }
 0x587   : > { %4956 = vmatmul.mubr.msk.f32.vlgmr.msra.gmra.mrb[58].mxu0 %vm9273_vm11, %v4627_v62  ;;  %4959 = vmatmul.mubr.msk.f32.vlgmr.msra.gmra.mrb[58].mxu1 %vm9274_vm12, %v4627_v62  ;;  %v2699_v57 = vadd.f32 %v2695_v60, %v7918_v39  ;;  %v2761_v55 = vmul.f32 %v2752_v41, %v9281_v49  ;;  %v2764_v8 = vadd.f32 %v2760_v37, %v2735_v2  ;;  %vm9283_vm10 = vmmov %vm9282_vm14  ;;  %v9284_v62 = vld [vmem:[#allocation95_spill] sm:$0xff]  ;;  %v9285_v39 = vld [vmem:[#allocation96_spill] sm:$0xff]  ;;  %v2837_v54 = vrot.slane %v9286_v35, 4 }
 0x588   : > { %v2796_v22 = vrot.slane %v2788_v36, 4  ;;  %v2774_v23 = vpop.permute.xlu0 %2773  ;;  %v2793_v44 = vrot.slane %v2785_v29, 4  ;;  %v2766_v17 = vadd.f32 %v2762_v40, %v2737_v52  ;;  %v2834_v27 = vrot.slane %v9287_v38, 4  ;;  %vm9288_vm11 = vmmov %vm9283_vm10  ;;  %v9290_v37 = vld [vmem:[#allocation101_spill] sm:$0xff] }
 0x589   : > { %v2777_v0 = vsel %vm9277_vm13, %v7976_v53, %v2774_v23  ;;  %v2778_v12 = vsel %vm9278_vm0, %v2774_v23, %v7990_v30  ;;  %v2857_v10 = vpop.permute.xlu1 %2856  ;;  %v2736_v14 = vadd.f32 %v2728_v43, %v2699_v57  ;;  %vm9289_vm12 = vmmov %vm9283_vm10  ;;  %v9292_v23 = vld [vmem:[#allocation76_spill] sm:$0xff]  ;;  %v9293_v52 = vld [vmem:[#allocation57_spill] sm:$0xff]  ;;  %vm9294_vm15 = vcmask 1039360  }
 0x58a   : > { %v2804_v20 = vadd.f32 %v2796_v22, %v2767_v6  ;;  %v2786_v3 = vmul.f32 %v2777_v0, %v9279_v18  ;;  %v2787_v21 = vmul.f32 %v2778_v12, %v9280_v58  ;;  %v2801_v56 = vadd.f32 %v2793_v44, %v2764_v8  ;;  %vm9295_vm13 = vmmov %vm9294_vm15 }
 0x58b   : > { %v2765_v13 = vadd.f32 %v2761_v55, %v2736_v14  ;;  %v2836_v43 = vrot.slane %v9292_v23, 4  ;;  %v2835_v0 = vrot.slane %v9293_v52, 4  ;;  %vm9297_vm0 = vmmov %vm9295_vm13  ;;  %v9299_v14 = vld [vmem:[#allocation90_spill] sm:$0xff] }
 0x58c   : > { %v2795_v31 = vrot.slane %v2787_v21, 4  ;;  %v2807_v28 = vpop.permute.xlu0 %2806  ;;  %v2794_v53 = vrot.slane %v2786_v3, 4 }
 0x58d   : > { %v2820_v30 = vsel %vm9282_vm14, %v8027_v4, %v2807_v28  ;;  %v2825_v45 = vsel %vm9283_vm10, %v2807_v28, %v8007_v25  ;;  %v2878_v50 = vpop.permute.xlu1 %2877  ;;  %vm9298_vm14 = vmmov %vm9297_vm0  ;;  %vm9300_vm10 = vcmask 990208  }
 0x58e   : > { %v2803_v11 = vadd.f32 %v2795_v31, %v2766_v17  ;;  %v2826_v42 = vmul.f32 %v2825_v45, %v9284_v62  ;;  %v2829_v60 = vmul.f32 %v2820_v30, %v9285_v39  ;;  %v2802_v36 = vadd.f32 %v2794_v53, %v2765_v13 }
 0x590   : > { %v2830_v48 = vadd.f32 %v2826_v42, %v2801_v56  ;;  %v2833_v29 = vadd.f32 %v2829_v60, %v2804_v20  ;;  %v2815_v7 = vpop.permute.xlu0 %2814 }
 0x591   : > { %v2818_v1 = vsel %vm9288_vm11, %v8007_v25, %v2815_v7  ;;  %v2819_v2 = vsel %vm9289_vm12, %v2815_v7, %v8027_v4  ;;  %v9296_v4 = vld [vmem:[#allocation89_spill] sm:$0xff]  ;;  %v2882_v49 = vpop.permute.xlu1 %2881  ;;  %vm9301_vm11 = vmmov %vm9300_vm10 }
 0x592   : > { %v2827_v41 = vmul.f32 %v2818_v1, %v9290_v37  ;;  %v2828_v40 = vmul.f32 %v2819_v2, %v9291_v47  ;;  %v2842_v6 = vadd.f32 %v2834_v27, %v2830_v48  ;;  %v2845_v22 = vadd.f32 %v2837_v54, %v2833_v29  ;;  %vm9302_vm12 = vmmov %vm9300_vm10  ;;  %v9307_v47 = vld [vmem:[#allocation106_spill] sm:$0xff] }
 0x594   : > { %v2831_v12 = vadd.f32 %v2827_v41, %v2802_v36  ;;  %v2832_v44 = vadd.f32 %v2828_v40, %v2803_v11  ;;  %v2851_v20 = vpop.permute.xlu0 %2850  ;;  %v9306_v41 = vld [vmem:[#allocation103_spill] sm:$0xff] }
 0x595   : > { %v2858_v25 = vsel %vm9294_vm15, %v2851_v20, %v8053_v16  ;;  %v2866_v18 = vsel %vm9295_vm13, %v2857_v10, %v2851_v20  ;;  %v2919_v42 = vpop.permute.xlu1 %2918  ;;  %vm9303_vm15 = vmmov %vm9300_vm10  ;;  %vm9304_vm13 = vcmask 982016  }
 0x596   : > { %v2867_v3 = vmul.f32 %v2858_v25, %v9296_v4  ;;  %v2870_v58 = vmul.f32 %v2866_v18, %v9156_v26  ;;  %v2843_v21 = vadd.f32 %v2835_v0, %v2831_v12  ;;  %v2844_v57 = vadd.f32 %v2836_v43, %v2832_v44  ;;  %v9310_v43 = vld [vmem:[#allocation104_spill] sm:$0xff]  ;;  %v9311_v0 = vld [vmem:[#allocation105_spill] sm:$0xff] }
 0x598   : > { %v2871_v55 = vadd.f32 %v2867_v3, %v2842_v6  ;;  %v2874_v8 = vadd.f32 %v2870_v58, %v2845_v22  ;;  %v2855_v17 = vpop.permute.xlu0 %2854 }
 0x599   : > { %v2859_v31 = vsel %vm9297_vm0, %v8053_v16, %v2855_v17  ;;  %v2860_v28 = vsel %vm9298_vm14, %v2855_v17, %v2857_v10  ;;  %v2923_v29 = vpop.permute.xlu1 %2922  ;;  %vm9305_vm0 = vmmov %vm9304_vm13 }
 0x59a   : > { %v2868_v53 = vmul.f32 %v2859_v31, %v9299_v14  ;;  %v2869_v30 = vmul.f32 %v2860_v28, %v9155_v19  ;;  %vm9308_vm14 = vmmov %vm9305_vm0 }
 0x59c   : > { %v2872_v45 = vadd.f32 %v2868_v53, %v2843_v21  ;;  %v2873_v56 = vadd.f32 %v2869_v30, %v2844_v57  ;;  %v2876_v11 = vpop.permute.xlu0 %2875 }
 0x59d   : > { %v2883_v26 = vsel %vm9300_vm10, %v2876_v11, %v2878_v50  ;;  %v2891_v62 = vsel %vm9301_vm11, %v2882_v49, %v2876_v11  ;;  %vm9309_vm10 = vmmov %vm9305_vm0  ;;  %v2944_v18 = vpop.permute.xlu1 %2943  ;;  %vm9312_vm11 = vcmask 973824  }
 0x59e   : > { %v2892_v39 = vmul.f32 %v2883_v26, %v9157_v59  ;;  %v2895_v60 = vmul.f32 %v2891_v62, %v9162_v33 }
 0x5a0   : > { %v2900_v13 = vrot.slane %v2892_v39, 4  ;;  %v2903_v16 = vrot.slane %v2895_v60, 4  ;;  %v2880_v35 = vpop.permute.xlu0 %2879 }
 0x5a1   : > { %v2884_v10 = vsel %vm9302_vm12, %v2878_v50, %v2880_v35  ;;  %v2885_v54 = vsel %vm9303_vm15, %v2880_v35, %v2882_v49  ;;  %v2948_v3 = vpop.permute.xlu1 %2947  ;;  %vm9313_vm12 = vmmov %vm9312_vm11 }
 0x5a2   : > { %v2908_v19 = vadd.f32 %v2900_v13, %v2871_v55  ;;  %v2911_v38 = vadd.f32 %v2903_v16, %v2874_v8  ;;  %v2893_v27 = vmul.f32 %v2884_v10, %v9158_v9  ;;  %v2894_v48 = vmul.f32 %v2885_v54, %v9161_v61  ;;  %vm9314_vm15 = vmmov %vm9312_vm11 }
 0x5a4   : > { %v2901_v7 = vrot.slane %v2893_v27, 4  ;;  %v2902_v36 = vrot.slane %v2894_v48, 4  ;;  %v2917_v1 = vpop.permute.xlu0 %2916 }
 0x5a5   : > { %v2924_v59 = vsel %vm9304_vm13, %v2917_v1, %v2919_v42  ;;  %v2932_v33 = vsel %vm9305_vm0, %v2923_v29, %v2917_v1  ;;  %v2985_v21 = vpop.permute.xlu1 %2984  ;;  %vm9315_vm13 = vmmov %vm9312_vm11 }
 0x5a6   : > { %v2909_v2 = vadd.f32 %v2901_v7, %v2872_v45  ;;  %v2910_v37 = vadd.f32 %v2902_v36, %v2873_v56  ;;  %v2933_v50 = vmul.f32 %v2924_v59, %v9306_v41  ;;  %v2936_v40 = vmul.f32 %v2932_v33, %v9307_v47  ;;  %v9316_v36 = vld [vmem:[#allocation107_spill] sm:$0xff]  ;;  %v9317_v59 = vld [vmem:[#allocation110_spill] sm:$0xff]  ;;  %v9319_v41 = vld [vmem:[#allocation109_spill] sm:$0xff] }
 0x5a8   : > { %v2937_v6 = vadd.f32 %v2933_v50, %v2908_v19  ;;  %v2940_v22 = vadd.f32 %v2936_v40, %v2911_v38  ;;  %v2921_v23 = vpop.permute.xlu0 %2920 }
 0x5a9   : > { %v2925_v9 = vsel %vm9308_vm14, %v2919_v42, %v2921_v23  ;;  %v2926_v61 = vsel %vm9309_vm10, %v2921_v23, %v2923_v29  ;;  %v2989_v49 = vpop.permute.xlu1 %2988 }
 0x5aa   : > { %v2934_v52 = vmul.f32 %v2925_v9, %v9310_v43  ;;  %v2935_v12 = vmul.f32 %v2926_v61, %v9311_v0 }
 0x5ac   : > { %v2938_v44 = vadd.f32 %v2934_v52, %v2909_v2  ;;  %v2939_v20 = vadd.f32 %v2935_v12, %v2910_v37  ;;  %v2942_v25 = vpop.permute.xlu0 %2941  ;;  %v9318_v2 = vld [vmem:[#allocation108_spill] sm:$0xff]  ;;  %v9320_v12 = vld [vmem:[#allocation111_spill] sm:$0xff] }
 0x5ad   : > { %v3010_v8 = vpop.permute.xlu1 %3009  ;;  %v2949_v38 = vsel %vm9312_vm11, %v2942_v25, %v2944_v18  ;;  %v2957_v27 = vsel %vm9313_vm12, %v2948_v3, %v2942_v25 }
 0x5ae   : > { %v2958_v1 = vmul.f32 %v2949_v38, %v9316_v36  ;;  %v2961_v33 = vmul.f32 %v2957_v27, %v9317_v59 }
 0x5b0   : > { %v2946_v4 = vpop.permute.xlu0 %2945  ;;  %v2966_v9 = vrot.slane %v2958_v1, 4  ;;  %v2969_v61 = vrot.slane %v2961_v33, 4  ;;  %v9322_v33 = vld [vmem:[#allocation115_spill] sm:$0xff] }
 0x5b1   : > { %v3014_v31 = vpop.permute.xlu1 %3013  ;;  %v2950_v48 = vsel %vm9314_vm15, %v2944_v18, %v2946_v4  ;;  %v2951_v29 = vsel %vm9315_vm13, %v2946_v4, %v2948_v3  ;;  %v9321_v18 = vld [vmem:[#allocation114_spill] sm:$0xff] }
 0x5b2   : > { %v2959_v37 = vmul.f32 %v2950_v48, %v9318_v2  ;;  %v2960_v50 = vmul.f32 %v2951_v29, %v9319_v41  ;;  %v2974_v48 = vadd.f32 %v2966_v9, %v2937_v6  ;;  %v2977_v29 = vadd.f32 %v2969_v61, %v2940_v22  ;;  %v9325_v6 = vld [vmem:[#allocation117_spill] sm:$0xff] }
 0x5b4   : > { %v2983_v58 = vpop.permute.xlu0 %2982  ;;  %v2967_v43 = vrot.slane %v2959_v37, 4  ;;  %v2968_v52 = vrot.slane %v2960_v50, 4  ;;  %v9323_v37 = vld [vmem:[#allocation118_spill] sm:$0xff] }
 0x5b5   : > { %v8112_v14 = vpop.permute.xlu1 %3050  ;;  %v2990_v40 = vsel %vm690_vm2, %v2983_v58, %v2985_v21  ;;  %v2998_v23 = vsel %vm690_vm2, %v2989_v49, %v2983_v58 }
 0x5b6   : > { %v2999_v25 = vmul.f32 %v2990_v40, %v9320_v12  ;;  %v3002_v4 = vmul.f32 %v2998_v23, %v9321_v18  ;;  %v2975_v50 = vadd.f32 %v2967_v43, %v2938_v44  ;;  %v2976_v40 = vadd.f32 %v2968_v52, %v2939_v20  ;;  %v9324_v12 = vld [vmem:[#allocation116_spill] sm:$0xff] }
 0x5b8   : > { %v2987_v57 = vpop.permute.xlu0 %2986  ;;  %v3003_v23 = vadd.f32 %v2999_v25, %v2974_v48 }
 0x5b9   : > { %v8116_v30 = vpop.permute.xlu1 %3054  ;;  %v2991_v1 = vsel %vm690_vm2, %v2985_v21, %v2987_v57  ;;  %v2992_v59 = vsel %vm690_vm2, %v2987_v57, %v2989_v49  ;;  %v9326_v21 = vld [vmem:[#allocation112_spill] sm:$0xff]  ;;  %v9327_v49 = vld [vmem:[#allocation113_spill] sm:$0xff] }
 0x5ba   : > { %v3000_v57 = vmul.f32 %v2991_v1, %v9326_v21  ;;  %v3001_v9 = vmul.f32 %v2992_v59, %v9327_v49  ;;  %v9330_v1 = vld [vmem:[#allocation119_spill] sm:$0xff]  ;;  %v9334_v21 = vld [vmem:[#allocation120_spill] sm:$0xff] }
 0x5bc   : > { %v3008_v55 = vpop.permute.xlu0 %3007 }
 0x5bd   : > { %v3076_v56 = vpop.permute.xlu1 %3075  ;;  %v3015_v3 = vsel %vm732_vm1, %v3008_v55, %v3010_v8  ;;  %v3023_v38 = vsel %vm732_vm1, %v3014_v31, %v3008_v55  ;;  %v3006_v55 = vadd.f32 %v3002_v4, %v2977_v29  ;;  %v9329_v29 = vld [vmem:[#allocation8_spill] sm:$0xff] }
 0x5be   : > { %v3024_v2 = vmul.f32 %v3015_v3, %v9322_v33  ;;  %v3027_v41 = vmul.f32 %v3023_v38, %v9323_v37  ;;  %v9328_v38 = vld [vmem:[#allocation123_spill] sm:$0xff] }
 0x5c0   : > { %v3012_v17 = vpop.permute.xlu0 %3011  ;;  %v3032_v61 = vrot.slane %v3024_v2, 4  ;;  %v3035_v43 = vrot.slane %v3027_v41, 4  ;;  %v9332_v2 = vld [vmem:[#allocation6_spill] sm:$0xff]  ;;  %v9333_v41 = vld [vmem:[#allocation7_spill] sm:$0xff] }
 0x5c1   : > { %v3080_v26 = vpop.permute.xlu1 %3079  ;;  %v3016_v58 = vsel %vm732_vm1, %v3010_v8, %v3012_v17  ;;  %v3017_v36 = vsel %vm732_vm1, %v3012_v17, %v3014_v31  ;;  %vm4815_vm1 = vcmask 1043456  }
 0x5c2   : > { %v3025_v18 = vmul.f32 %v3016_v58, %v9324_v12  ;;  %v3026_v22 = vmul.f32 %v3017_v36, %v9325_v6  ;;  %v3040_v12 = vadd.f32 %v3032_v61, %v3003_v23  ;;  %v3043_v6 = vadd.f32 %v3035_v43, %v3006_v55 }
 0x5c4   : > { %v3049_v28 = vpop.permute.xlu0 %3048  ;;  %v3034_v36 = vrot.slane %v3026_v22, 4 }
 0x5c5   : > { %v8120_v42 = vpop.permute.xlu1 %3116  ;;  %v3056_v44 = vsel %vm786_vm3, %v3049_v28, %v8112_v14  ;;  %v3064_v20 = vsel %vm786_vm3, %v8116_v30, %v3049_v28  ;;  %v3033_v28 = vrot.slane %v3025_v18, 4 }
 0x5c6   : > { %v3065_v59 = vmul.f32 %v3056_v44, %v9330_v1 }
 0x5c8   : > { %v8114_v53 = vpop.permute.xlu0 %3052 }
 0x5c9   : > { %v8124_v60 = vpop.permute.xlu1 %3120  ;;  %v3058_v3 = vsel %vm786_vm3, %v8114_v53, %v8116_v30  ;;  %v9335_v30 = vld [vmem:[#allocation121_spill] sm:$0xff] }
 0x5cc   : > { %v3074_v45 = vpop.permute.xlu0 %3073 }
 0x5cd   : > { %v8128_v16 = vpop.permute.xlu1 %3141  ;;  %v3081_v8 = vsel %vm840_vm4, %v3074_v45, %v3076_v56  ;;  %v3089_v17 = vsel %vm840_vm4, %v3080_v26, %v3074_v45  ;;  %v3057_v45 = vsel %vm786_vm3, %v8112_v14, %v8114_v53 }
 0x5ce   : > { %v3090_v48 = vmul.f32 %v3081_v8, %v9328_v38  ;;  %v3093_v58 = vmul.f32 %v3089_v17, %v9329_v29  ;;  %v3066_v53 = vmul.f32 %v3057_v45, %v9334_v21  ;;  %v3067_v8 = vmul.f32 %v3058_v3, %v9335_v30  ;;  %v9337_v45 = vld [vmem:[#allocation15_spill] sm:$0xff] }
 0x5d0   : > { %v3078_v11 = vpop.permute.xlu0 %3077  ;;  %v3098_v22 = vrot.slane %v3090_v48, 4  ;;  %v3101_v17 = vrot.slane %v3093_v58, 4 }
 0x5d1   : > { %v8132_v10 = vpop.permute.xlu1 %3145  ;;  %v3082_v52 = vsel %vm840_vm4, %v3076_v56, %v3078_v11  ;;  %v3083_v25 = vsel %vm840_vm4, %v3078_v11, %v3080_v26  ;;  %v9331_v56 = vld [vmem:[#allocation122_spill] sm:$0xff]  ;;  %v3004_v11 = vadd.f32 %v3000_v57, %v2975_v50  ;;  %v3005_v26 = vadd.f32 %v3001_v9, %v2976_v40 }
 0x5d2   : > { %v3068_v33 = vmul.f32 %v3064_v20, %v9331_v56  ;;  %v3091_v37 = vmul.f32 %v3082_v52, %v9332_v2  ;;  %v3092_v14 = vmul.f32 %v3083_v25, %v9333_v41  ;;  %v3069_v57 = vadd.f32 %v3065_v59, %v3040_v12  ;;  %v9336_v52 = vld [vmem:[#allocation9_spill] sm:$0xff] }
 0x5d3   : > { %v3041_v23 = vadd.f32 %v3033_v28, %v3004_v11  ;;  %v3042_v55 = vadd.f32 %v3034_v36, %v3005_v26  ;;  %v9338_v11 = vld [vmem:[#allocation48_spill] sm:$0xff] }
 0x5d4   : > { %v8118_v62 = vpop.permute.xlu0 %3114  ;;  %v3072_v9 = vadd.f32 %v3068_v33, %v3043_v6  ;;  %v3099_v44 = vrot.slane %v3091_v37, 4  ;;  %v3100_v20 = vrot.slane %v3092_v14, 4  ;;  %v3106_v58 = vadd.f32 %v3098_v22, %v3069_v57 }
 0x5d5   : > { %v8136_v19 = vpop.permute.xlu1 %3182  ;;  %v3122_v50 = vsel %vm898_vm5, %v8118_v62, %v8120_v42  ;;  %v3130_v40 = vsel %vm898_vm5, %v8124_v60, %v8118_v62  ;;  %v3070_v48 = vadd.f32 %v3066_v53, %v3041_v23  ;;  %v3071_v29 = vadd.f32 %v3067_v8, %v3042_v55  ;;  %v9341_v23 = vld [vmem:[#allocation27_spill] sm:$0xff] }
 0x5d6   : > { %v3131_v25 = vmul.f32 %v3122_v50, %v9336_v52  ;;  %v3134_v3 = vmul.f32 %v3130_v40, %v9337_v45  ;;  %v3109_v28 = vadd.f32 %v3101_v17, %v3072_v9  ;;  %v9340_v50 = vld [vmem:[#allocation26_spill] sm:$0xff] }
 0x5d7   : > { %v3107_v2 = vadd.f32 %v3099_v44, %v3070_v48  ;;  %v3108_v37 = vadd.f32 %v3100_v20, %v3071_v29  ;;  %v9342_v44 = vld [vmem:[#allocation22_spill] sm:$0xff]  ;;  %v9343_v20 = vld [vmem:[#allocation24_spill] sm:$0xff] }
 0x5d8   : > { %v8122_v39 = vpop.permute.xlu0 %3118  ;;  %v3135_v41 = vadd.f32 %v3131_v25, %v3106_v58  ;;  %v3138_v14 = vadd.f32 %v3134_v3, %v3109_v28  ;;  %v9345_v28 = vld [vmem:[#allocation45_spill] sm:$0xff] }
 0x5d9   : > { %v8148_v47 = vpop.permute.xlu1 %3186  ;;  %v3123_v62 = vsel %vm898_vm5, %v8120_v42, %v8122_v39  ;;  %v3124_v38 = vsel %vm898_vm5, %v8122_v39, %v8124_v60  ;;  %v9339_v60 = vld [vmem:[#allocation16_spill] sm:$0xff] }
 0x5da   : > { %v3132_v39 = vmul.f32 %v3123_v62, %v9338_v11  ;;  %v3133_v26 = vmul.f32 %v3124_v38, %v9339_v60 }
 0x5dc   : > { %v8126_v13 = vpop.permute.xlu0 %3139  ;;  %v3136_v21 = vadd.f32 %v3132_v39, %v3107_v2  ;;  %v9347_v39 = vld [vmem:[#allocation32_spill] sm:$0xff] }
 0x5dd   : > { %v8158_v27 = vpop.permute.xlu1 %3207  ;;  %v3147_v61 = vsel %vm940_vm6, %v8126_v13, %v8128_v16  ;;  %v3155_v36 = vsel %vm940_vm6, %v8132_v10, %v8126_v13 }
 0x5de   : > { %v3156_v1 = vmul.f32 %v3147_v61, %v9219_v34  ;;  %v3159_v13 = vmul.f32 %v3155_v36, %v9220_v32  ;;  %v3137_v32 = vadd.f32 %v3133_v26, %v3108_v37 }
 0x5e0   : > { %v8130_v35 = vpop.permute.xlu0 %3143  ;;  %v3167_v22 = vrot.slane %v3159_v13, 4 }
 0x5e1   : > { %v3212_v4 = vpop.permute.xlu1 %3211  ;;  %v3149_v43 = vsel %vm940_vm6, %v8130_v35, %v8132_v10  ;;  %v3148_v59 = vsel %vm940_vm6, %v8128_v16, %v8130_v35  ;;  %v3164_v35 = vrot.slane %v3156_v1, 4 }
 0x5e2   : > { %v3158_v42 = vmul.f32 %v3149_v43, %v9222_v51  ;;  %v3157_v34 = vmul.f32 %v3148_v59, %v9221_v24  ;;  %v3175_v3 = vadd.f32 %v3167_v22, %v3138_v14 }
 0x5e3   : > { %v3172_v57 = vadd.f32 %v3164_v35, %v3135_v41 }
 0x5e4   : > { %v8134_v54 = vpop.permute.xlu0 %3180  ;;  %v3166_v10 = vrot.slane %v3158_v42, 4  ;;  %v3165_v17 = vrot.slane %v3157_v34, 4  ;;  %v9346_v42 = vld [vmem:[#allocation58_spill] sm:$0xff] }
 0x5e5   : > { %v3188_v24 = vsel %vm994_vm7, %v8134_v54, %v8136_v19  ;;  %v3196_v30 = vsel %vm994_vm7, %v8148_v47, %v8134_v54 }
 0x5e6   : > { %v3174_v9 = vadd.f32 %v3166_v10, %v3137_v32  ;;  %v3197_v54 = vmul.f32 %v3188_v24, %v9342_v44  ;;  %v3173_v62 = vadd.f32 %v3165_v17, %v3136_v21 }
 0x5e8   : > { %v8142_v7 = vpop.permute.xlu0 %3184  ;;  %v3201_v29 = vadd.f32 %v3197_v54, %v3172_v57  ;;  %v4998_v57 = vld [vmem:[%s5111_s26 + $0x10] sm:$0xff] }
 0x5e9   : > { %v3190_v53 = vsel %vm994_vm7, %v8142_v7, %v8148_v47 }
 0x5ea   : > { %v3199_v47 = vmul.f32 %v3190_v53, %v9236_v46 }
 0x5ec   : > { %v8152_v0 = vpop.permute.xlu0 %3205  ;;  %v3203_v46 = vadd.f32 %v3199_v47, %v3174_v9  ;;  %v4999_v47 = vld [vmem:[%s5111_s26 + $0x18] sm:$0xff] }
 0x5ed   : > { %v3213_v16 = vsel %vm1048_vm8, %v8152_v0, %v8158_v27  ;;  %v3221_v12 = vsel %vm1048_vm8, %v3212_v4, %v8152_v0  ;;  %v3189_v0 = vsel %vm994_vm7, %v8136_v19, %v8142_v7  ;;  %v3200_v19 = vmul.f32 %v3196_v30, %v9343_v20  ;;  %v9344_v7 = vld [vmem:[#allocation18_spill] sm:$0xff] }
 0x5ee   : > { %v3225_v40 = vmul.f32 %v3221_v12, %v9340_v50 }
 0x5ef   : > { %v3204_v1 = vadd.f32 %v3200_v19, %v3175_v3  ;;  %v5000_v19 = vld [vmem:[%s5111_s26 + $0x8] sm:$0xff] }
 0x5f0   : > { %v8170_v31 = vpop.permute.xlu0 %3209  ;;  %v3233_v38 = vrot.slane %v3225_v40, 4 }
 0x5f1   : > { %v3215_v51 = vsel %vm1048_vm8, %v8170_v31, %v3212_v4  ;;  %v3214_v6 = vsel %vm1048_vm8, %v8158_v27, %v8170_v31  ;;  %v3222_v27 = vmul.f32 %v3213_v16, %v9229_v63  ;;  %v3198_v63 = vmul.f32 %v3189_v0, %v9344_v7 }
 0x5f2   : > { %v8194_v49 = vpop.permute.xlu1 %3274  ;;  %v3224_v31 = vmul.f32 %v3215_v51, %v9232_v15  ;;  %v3223_v55 = vmul.f32 %v3214_v6, %v9341_v23  ;;  %v3241_v2 = vadd.f32 %v3233_v38, %v3204_v1 }
 0x5f3   : > { %v3230_v43 = vrot.slane %v3222_v27, 4  ;;  %v3202_v59 = vadd.f32 %v3198_v63, %v3173_v62 }
 0x5f4   : > { %v8196_v18 = vpop.permute.xlu0 %4631  ;;  %v3232_v52 = vrot.slane %v3224_v31, 4  ;;  %v3231_v48 = vrot.slane %v3223_v55, 4 }
 0x5f5   : > { %v3238_v26 = vadd.f32 %v3230_v43, %v3201_v29 }
 0x5f6   : > { %v3249_v56 = vpop.permute.xlu1 %3248 }
 0x5f8   : > { %v3247_v33 = vpop.permute.xlu0 %3246 }
 0x5f9   : > { %v3254_v15 = vsel %vm1106_vm9, %v3247_v33, %v3249_v56 }
 0x5fa   : > { %v3253_v4 = vpop.permute.xlu1 %3252  ;;  %v3263_v58 = vmul.f32 %v3254_v15, %v9237_v5 }
 0x5fb   : > { %v3262_v25 = vsel %vm1106_vm9, %v3253_v4, %v3247_v33  ;;  %v3240_v33 = vadd.f32 %v3232_v52, %v3203_v46 }
 0x5fc   : > { %v3251_v8 = vpop.permute.xlu0 %3250  ;;  %v3266_v11 = vmul.f32 %v3262_v25, %v9346_v42  ;;  %v3267_v37 = vadd.f32 %v3263_v58, %v3238_v26 }
 0x5fd   : > { %v3256_v61 = vsel %vm1106_vm9, %v3251_v8, %v3253_v4  ;;  %v3255_v45 = vsel %vm1106_vm9, %v3249_v56, %v3251_v8  ;;  %v3239_v56 = vadd.f32 %v3231_v48, %v3202_v59 }
 0x5fe   : > { %v3265_v36 = vmul.f32 %v3256_v61, %v9345_v28  ;;  %v3264_v60 = vmul.f32 %v3255_v45, %v9347_v39  ;;  %v3270_v14 = vadd.f32 %v3266_v11, %v3241_v2  ;;  %v3277_v34 = vadd.f32 %v8194_v49, %v3267_v37 }
 0x600   : > { %v3269_v41 = vadd.f32 %v3265_v36, %v3240_v33  ;;  %v3268_v13 = vadd.f32 %v3264_v60, %v3239_v56  ;;  %v3280_v16 = vadd.f32 %v8194_v49, %v3270_v14  ;;  %v3281_v30 = vmax.f32 %v3277_v34, 0.0 }
 0x602   : > { %v3279_v5 = vadd.f32 %v8194_v49, %v3269_v41  ;;  %v3278_v51 = vadd.f32 %v8194_v49, %v3268_v13  ;;  %v3284_v49 = vmax.f32 %v3280_v16, 0.0 }
 0x604   : > { %v3283_v0 = vmax.f32 %v3279_v5, 0.0  ;;  %v3282_v4 = vmax.f32 %v3278_v51, 0.0  ;;  %v4798_v20 = vadd.f32 %v4999_v47, %v3284_v49 }
 0x606   : > { %v4797_v9 = vadd.f32 %v4998_v57, %v3283_v0  ;;  %v4796_v7 = vadd.f32 %v5000_v19, %v3282_v4 }
 0x65a   : > { %v4715_v35 = vpop.f32.mrb[58].mxu0  ;;  %v4786_v10 = vpop.f32.mrb[58].mxu1 }
 0x65b   : > { %v4716_v12 = vadd.f32 %v4715_v35, %v8196_v18  ;;  %v4787_v6 = vadd.f32 %v4786_v10, %v8196_v18  ;;  %v4717_v21 = vpop.f32.mrb[59].mxu0  ;;  %v4788_v32 = vpop.f32.mrb[59].mxu1 }
 0x65c   : > { %v4718_v24 = vadd.f32 %v4717_v21, %v8196_v18  ;;  %v4789_v53 = vadd.f32 %v4788_v32, %v8196_v18  ;;  %v4997_v18 = vld [vmem:[%s5111_s26] sm:$0xff] }
 0x65d   : > { %v4791_v27 = vmax.f32 %v4716_v12, 0.0  ;;  %v4793_v31 = vmax.f32 %v4787_v6, 0.0  ;;  %v4795_v55 = vadd.f32 %v4997_v18, %v3281_v30 }
 0x65e   : > { %v4792_v8 = vmax.f32 %v4718_v24, 0.0  ;;  %v4794_v22 = vmax.f32 %v4789_v53, 0.0 }
 0x65f   : > { %v4803_v17 = vrot.slane %v4791_v27, 4  ;;  %v4805_v50 = vrot.slane %v4793_v31, 4 }
 0x660   : > { %v4804_v40 = vrot.slane %v4792_v8, 4  ;;  %v4806_v23 = vrot.slane %v4794_v22, 4 }
 0x661   : > { %v4811_v44 = vadd.f32 %v4997_v18, %v4803_v17  ;;  %v4813_v54 = vadd.f32 %v4998_v57, %v4805_v50 }
 0x662   : > { %v4812_v63 = vadd.f32 %v5000_v19, %v4804_v40  ;;  %v4814_v15 = vadd.f32 %v4999_v47, %v4806_v23 }
 0x663   : > { %v4816_v61 = vsel %vm4815_vm1, %v4795_v55, %v4811_v44  ;;  %v4818_v43 = vsel %vm4815_vm1, %v4797_v9, %v4813_v54 }
 0x664   : > { %4820 = vst [vmem:[%s413_s25] sm:$0xff] %v4816_v61  ;;  %4822 = vst [vmem:[%s413_s25 + $0x10] sm:$0xff] %v4818_v43  ;;  %v4817_v52 = vsel %vm4815_vm1, %v4796_v7, %v4812_v63  ;;  %v4819_v25 = vsel %vm4815_vm1, %v4798_v20, %v4814_v15 }
 0x665   : > { %4821 = vst [vmem:[%s413_s25 + $0x8] sm:$0xff] %v4817_v52  ;;  %4823 = vst [vmem:[%s413_s25 + $0x18] sm:$0xff] %v4819_v25 }
 0x666 PF: > { %s22_s21 = sadd.s32 1, %s5007_s21  }
 0x667   : > { %p19_p4 = scmp.ge.s32.totalorder %s22_s21, 4  }
 0x669   :  { %21 = sbr.rel (!%p19_p4) target bundleno = 1 (0x1), region = 98 }

</bundles_post_ra>
